<compile_context>
chip_gen: v7x
topology: tpu7x:2x2x1
jax: 0.10.0
libtpu: 0.0.40
codegen_flags: <defaults>
</compile_context>

<pallas_src>
import functools

import numpy as np

import jax
import jax.numpy as jnp
from jax.experimental import pallas as pl
from jax.experimental.pallas import tpu as pltpu

_VMEM_LIMIT_BYTES = 32 * 1024 * 1024
_COMPUTE_DTYPE = jnp.bfloat16          # MXU operand dtype; accumulation is f32
_GN_EPS = 1e-5                         # torch GroupNorm default


def _pick_bt(batch):
    """Batch-tile size: multiple of 8 when tiled, capped so per-step VMEM stays
    small, and >=2 grid steps whenever the batch allows (v7x has 2 TCs)."""
    if batch <= 8:
        return int(batch)              # single step, block == full array
    return int(min(32, 8 * pl.cdiv(batch, 16)))


# -----------------------------------------------------------------------------
# Fused kernel: conv1 -> GN(1,6) -> ReLU -> pool -> conv2 -> GN(1,16) -> ReLU
#               -> pool -> fc1 -> ReLU -> fc2 -> ReLU -> fc3
# -----------------------------------------------------------------------------
def _fused_cnn_kernel(x5_ref, m1_ref, m2_ref, aff1_ref, aff2_ref,
                      fc1_ref, fc2_ref, fc3_ref, fcb_ref, o_ref, *, bt, eps):
    """One batch tile (bt samples); everything stays VMEM/vreg-resident.

    x5_ref  : (8, bt*6, 28)   row-regrouped input, x5[t, b*6+q, :] = img[b, 4q+t, :]
    m1_ref  : (5, 28, 144)    conv1 shifted-row matrices, lanes = (dw1, wp1, c)
    m2_ref  : (5, 72, 128)    conv2 shifted-row matrices, lanes = (dw2, wp2, co)
    aff1_ref: (3, 144)        [conv1 bias ; n1 gamma ; n1 beta], lane-tiled
    aff2_ref: (3, 128)        [conv2 bias ; n2 gamma ; n2 beta], lane-tiled
    fc*_ref : (256,128)/(128,128)/(128,128) padded, pre-transposed fc weights
    fcb_ref : (3, 128)        padded fc biases
    o_ref   : (bt, 128)       padded logits (real logits in cols [0, 62))
    """
    f32 = jnp.float32
    cdt = m1_ref.dtype

    # ---------------- stage 1: conv1 (5x5, cin=1) as shifted-row GEMMs --------
    # acc1[p][dh][b, q, dw*72 + wp*6 + c] = conv1(x)[b, 4q + 2p + dh, 2wp + dw, c]
    xs = [x5_ref[t] for t in range(8)]                      # each (bt*6, 28) bf16
    bias1 = aff1_ref[0:1, :]
    acc1 = [[None, None], [None, None]]
    for p in range(2):                 # parity of pooled row hp1
        for dh in range(2):            # pool offset in H
            a = jnp.dot(xs[2 * p + dh], m1_ref[0], preferred_element_type=f32)
            for kh in range(1, 5):
                a = a + jnp.dot(xs[2 * p + dh + kh], m1_ref[kh],
                                preferred_element_type=f32)
            acc1[p][dh] = (a + bias1).reshape(bt, 6, 144)

    # GroupNorm(1, 6): one-pass per-sample stats over all 24*24*6 elements.
    n1 = float(4 * 6 * 144)
    s_sum = None
    s_sq = None
    for p in range(2):
        for dh in range(2):
            a = acc1[p][dh]
            ps = a.sum(axis=2, keepdims=True).sum(axis=1, keepdims=True)
            pq = (a * a).sum(axis=2, keepdims=True).sum(axis=1, keepdims=True)
            s_sum = ps if s_sum is None else s_sum + ps
            s_sq = pq if s_sq is None else s_sq + pq
    mean1 = s_sum / n1
    var1 = jnp.maximum(s_sq / n1 - mean1 * mean1, 0.0)
    rstd1 = jax.lax.rsqrt(var1 + eps)
    g1 = aff1_ref[1:2, :]
    be1 = aff1_ref[2:3, :]

    # normalize + affine + ReLU, then 2x2 maxpool: H via the two dh accumulators,
    # W via the two contiguous 72-lane halves.  pooled[p][b, q, wp*6 + c] holds
    # row hp1 = 2q + p of the (12, 12, 6) pooled map.
    pooled = []
    for p in range(2):
        y0 = jnp.maximum((acc1[p][0] - mean1) * rstd1 * g1 + be1, 0.0)
        y1 = jnp.maximum((acc1[p][1] - mean1) * rstd1 * g1 + be1, 0.0)
        y = jnp.maximum(y0, y1)
        pooled.append(jnp.maximum(y[:, :, 0:72], y[:, :, 72:144]))  # (bt, 6, 72)

    # ---------------- stage 2: conv2 (5x5, cin=6) as shifted-row GEMMs --------
    # x2s[s][b*4 + hp2, :] = pooled1[b, 2*hp2 + s, :, :]    (s = dh2 + kh2)
    x2s = []
    for s in range(6):
        v = pooled[s % 2][:, (s // 2):(s // 2) + 4, :]      # (bt, 4, 72) f32
        x2s.append(v.reshape(bt * 4, 72).astype(cdt))

    bias2 = aff2_ref[0:1, :]
    acc2 = [None, None]
    for dh in range(2):
        a = jnp.dot(x2s[dh], m2_ref[0], preferred_element_type=f32)
        for kh in range(1, 5):
            a = a + jnp.dot(x2s[dh + kh], m2_ref[kh], preferred_element_type=f32)
        acc2[dh] = (a + bias2).reshape(bt, 4, 128)

    # GroupNorm(1, 16): one-pass per-sample stats over all 8*8*16 elements.
    n2 = float(2 * 4 * 128)
    s_sum = None
    s_sq = None
    for dh in range(2):
        a = acc2[dh]
        ps = a.sum(axis=2, keepdims=True).sum(axis=1, keepdims=True)
        pq = (a * a).sum(axis=2, keepdims=True).sum(axis=1, keepdims=True)
        s_sum = ps if s_sum is None else s_sum + ps
        s_sq = pq if s_sq is None else s_sq + pq
    mean2 = s_sum / n2
    var2 = jnp.maximum(s_sq / n2 - mean2 * mean2, 0.0)
    rstd2 = jax.lax.rsqrt(var2 + eps)
    g2 = aff2_ref[1:2, :]
    be2 = aff2_ref[2:3, :]
    z0 = jnp.maximum((acc2[0] - mean2) * rstd2 * g2 + be2, 0.0)
    z1 = jnp.maximum((acc2[1] - mean2) * rstd2 * g2 + be2, 0.0)
    z = jnp.maximum(z0, z1)                                 # maxpool over dh2
    z = jnp.maximum(z[:, :, 0:64], z[:, :, 64:128])         # (bt, 4, 64): hp2 | (wp2, co)

    # ---------------- fc chain (all widths zero-padded to 128) ----------------
    # fc1 consumes the NHWC flatten (hp2, wp2, co) as 4 row-chunks of fc1_w so
    # the (bt, 4, 64) feature never needs a lane-merging reshape.
    h = None
    for hp in range(4):
        part = jnp.dot(z[:, hp, :].astype(cdt),
                       fc1_ref[(hp * 64):(hp * 64) + 64, :],
                       preferred_element_type=f32)
        h = part if h is None else h + part
    h = jnp.maximum(h + fcb_ref[0:1, :], 0.0).astype(cdt)
    h = jnp.dot(h, fc2_ref[...], preferred_element_type=f32) + fcb_ref[1:2, :]
    h = jnp.maximum(h, 0.0).astype(cdt)
    out = jnp.dot(h, fc3_ref[...], preferred_element_type=f32) + fcb_ref[2:3, :]
    o_ref[...] = out.astype(o_ref.dtype)


def _linear_kernel(x_ref, w_ref, b_ref, o_ref):
    o_ref[...] = (jnp.dot(x_ref[...], w_ref[...], preferred_element_type=jnp.float32)
                  + b_ref[...]).astype(o_ref.dtype)


def _fc3_head(prepared, x, out_dim):
    """start_layer_idx == -1 path: just fc3 on the given activations."""
    w = prepared["fc3_w"]                                    # (128, 128) bf16
    b = prepared["fc_b"][2:3, :]                             # (1, 128) f32
    M, K = x.shape
    assert K <= w.shape[0]
    xp = jnp.pad(x.astype(w.dtype), ((0, 0), (0, w.shape[0] - K)))
    tm = M if M <= 512 else 512
    m_pad = int(pl.cdiv(M, tm) * tm)
    if m_pad != M:
        xp = jnp.pad(xp, ((0, m_pad - M), (0, 0)))
    out = pl.pallas_call(
        _linear_kernel,
        out_shape=jax.ShapeDtypeStruct((m_pad, 128), jnp.float32),
        grid=(m_pad // tm,),
        in_specs=[pl.BlockSpec((tm, 128), lambda i: (i, 0)),
                  pl.BlockSpec((128, 128), lambda i: (0, 0)),
                  pl.BlockSpec((1, 128), lambda i: (0, 0))],
        out_specs=pl.BlockSpec((tm, 128), lambda i: (i, 0)),
        compiler_params=pltpu.CompilerParams(
            dimension_semantics=("parallel",),
            vmem_limit_bytes=_VMEM_LIMIT_BYTES),
    )(xp, w, b)
    return out[:M, :out_dim]


# -----------------------------------------------------------------------------
# Parameters
# -----------------------------------------------------------------------------
def init_params(key, input_dim=16 * 4 * 4, hidden_dims=(120, 84), output_dim=62):
    """PyTorch-layout parameters (same shapes as SimpleCNNMNIST)."""
    ks = jax.random.split(key, 14)
    s = 0.1
    return {
        "conv1_w": s * jax.random.normal(ks[0], (6, 1, 5, 5), jnp.float32),
        "conv1_b": s * jax.random.normal(ks[1], (6,), jnp.float32),
        "n1_g": 1.0 + s * jax.random.normal(ks[2], (6,), jnp.float32),
        "n1_b": s * jax.random.normal(ks[3], (6,), jnp.float32),
        "conv2_w": s * jax.random.normal(ks[4], (16, 6, 5, 5), jnp.float32),
        "conv2_b": s * jax.random.normal(ks[5], (16,), jnp.float32),
        "n2_g": 1.0 + s * jax.random.normal(ks[6], (16,), jnp.float32),
        "n2_b": s * jax.random.normal(ks[7], (16,), jnp.float32),
        "fc1_w": s * jax.random.normal(ks[8], (hidden_dims[0], input_dim), jnp.float32),
        "fc1_b": s * jax.random.normal(ks[9], (hidden_dims[0],), jnp.float32),
        "fc2_w": s * jax.random.normal(ks[10], (hidden_dims[1], hidden_dims[0]), jnp.float32),
        "fc2_b": s * jax.random.normal(ks[11], (hidden_dims[1],), jnp.float32),
        "fc3_w": s * jax.random.normal(ks[12], (output_dim, hidden_dims[1]), jnp.float32),
        "fc3_b": s * jax.random.normal(ks[13], (output_dim,), jnp.float32),
    }


def prepare_params(params, compute_dtype=_COMPUTE_DTYPE):
    """One-time re-layout of PyTorch params into kernel-ready form."""
    f32 = jnp.float32

    # --- conv1 -> 5 shifted-row matrices (5, 28, 144); lanes = (dw1, wp1, c) so
    #     the W half of the 2x2 maxpool is a max over two 72-lane halves.
    w1 = params["conv1_w"].astype(f32)
    assert w1.shape == (6, 1, 5, 5), w1.shape
    w1_kkc = jnp.transpose(w1[:, 0], (1, 2, 0))              # (kh, kw, c)
    w_in = np.arange(28)[:, None, None]
    dw1 = np.arange(2)[None, :, None]
    wp1 = np.arange(12)[None, None, :]
    kw1 = w_in - (2 * wp1 + dw1)                             # (28, 2, 12)
    valid1 = (kw1 >= 0) & (kw1 < 5)
    m1 = w1_kkc[:, np.clip(kw1, 0, 4), :]                    # (5, 28, 2, 12, 6)
    m1 = m1 * jnp.asarray(valid1, f32)[None, :, :, :, None]
    m1 = m1.reshape(5, 28, 144).astype(compute_dtype)

    # --- conv2 -> (5, 72, 128); rows = (wp1_in, ci), lanes = (dw2, wp2, co).
    w2 = params["conv2_w"].astype(f32)
    assert w2.shape == (16, 6, 5, 5), w2.shape
    w2_kkcc = jnp.transpose(w2, (2, 3, 1, 0))                # (kh, kw, ci, co)
    win = np.arange(12)[:, None, None]
    dw2 = np.arange(2)[None, :, None]
    wp2 = np.arange(4)[None, None, :]
    kw2 = win - (2 * wp2 + dw2)                              # (12, 2, 4)
    valid2 = (kw2 >= 0) & (kw2 < 5)
    m2 = w2_kkcc[:, np.clip(kw2, 0, 4), :, :]                # (5, 12, 2, 4, 6, 16)
    m2 = m2 * jnp.asarray(valid2, f32)[None, :, :, :, None, None]
    m2 = jnp.transpose(m2, (0, 1, 4, 2, 3, 5))               # (kh, win, ci, dw2, wp2, co)
    m2 = m2.reshape(5, 72, 128).astype(compute_dtype)

    # --- packed conv bias / GN affine, tiled to the conv lane layouts.
    aff1 = jnp.stack([jnp.tile(params["conv1_b"], 24),
                      jnp.tile(params["n1_g"], 24),
                      jnp.tile(params["n1_b"], 24)]).astype(f32)        # (3, 144)
    aff2 = jnp.stack([jnp.tile(params["conv2_b"], 8),
                      jnp.tile(params["n2_g"], 8),
                      jnp.tile(params["n2_b"], 8)]).astype(f32)         # (3, 128)

    # --- fc weights: pre-transposed (in, out), zero-padded to 128 outputs;
    #     fc1 columns permuted from NCHW-flatten to NHWC-flatten order so the
    #     numerics match x.view(-1, 16*4*4) in the original module.
    h1, in_dim = params["fc1_w"].shape
    h2 = params["fc2_w"].shape[0]
    out_dim = params["fc3_w"].shape[0]
    assert in_dim == 256 and h1 <= 128 and h2 <= 128 and out_dim <= 128

    def pad2(a, rows, cols):
        return jnp.pad(a, ((0, rows - a.shape[0]), (0, cols - a.shape[1])))

    fc1 = params["fc1_w"].reshape(h1, 16, 4, 4).transpose(0, 2, 3, 1).reshape(h1, 256)
    fc1_wm = pad2(fc1.T, 256, 128).astype(compute_dtype)
    fc2_wm = pad2(params["fc2_w"].T, 128, 128).astype(compute_dtype)
    fc3_wm = pad2(params["fc3_w"].T, 128, 128).astype(compute_dtype)
    fc_b = jnp.stack([jnp.pad(params["fc1_b"], (0, 128 - h1)),
                      jnp.pad(params["fc2_b"], (0, 128 - h2)),
                      jnp.pad(params["fc3_b"], (0, 128 - out_dim))]).astype(f32)

    return {"m1": m1, "m2": m2, "aff1": aff1, "aff2": aff2,
            "fc1_w": fc1_wm, "fc2_w": fc2_wm, "fc3_w": fc3_wm, "fc_b": fc_b}


# -----------------------------------------------------------------------------
# Model forward (mirrors SimpleCNNMNIST.f)
# -----------------------------------------------------------------------------
def simple_cnn_mnist_forward(prepared, x, start_layer_idx=None, *, out_dim=62):
    """Returns {'target': logits}."""
    if start_layer_idx == -1:
        return {"target": _fc3_head(prepared, x, out_dim)}

    B, cin, H, W = x.shape
    assert cin == 1 and H == 28 and W == 28, (cin, H, W)
    bt = _pick_bt(B)
    b_pad = int(pl.cdiv(B, bt) * bt)
    ximg = x[:, 0, :, :].astype(prepared["m1"].dtype)        # (B, 28, 28) bf16
    if b_pad != B:
        ximg = jnp.pad(ximg, ((0, b_pad - B), (0, 0), (0, 0)))
    # Row-regroup once in XLA: x5[t, b*6 + q, :] = image row 4q + t of sample b.
    # (~2x the raw image; replaces the old 25x im2col + 7-D transpose glue.)
    x5 = jnp.stack([ximg[:, t:t + 24:4, :] for t in range(8)], axis=0)
    x5 = x5.reshape(8, b_pad * 6, 28)

    logits = pl.pallas_call(
        functools.partial(_fused_cnn_kernel, bt=bt, eps=_GN_EPS),
        out_shape=jax.ShapeDtypeStruct((b_pad, 128), jnp.float32),
        grid=(b_pad // bt,),
        in_specs=[
            pl.BlockSpec((8, bt * 6, 28), lambda i: (0, i, 0)),
            pl.BlockSpec((5, 28, 144), lambda i: (0, 0, 0)),
            pl.BlockSpec((5, 72, 128), lambda i: (0, 0, 0)),
            pl.BlockSpec((3, 144), lambda i: (0, 0)),
            pl.BlockSpec((3, 128), lambda i: (0, 0)),
            pl.BlockSpec((256, 128), lambda i: (0, 0)),
            pl.BlockSpec((128, 128), lambda i: (0, 0)),
            pl.BlockSpec((128, 128), lambda i: (0, 0)),
            pl.BlockSpec((3, 128), lambda i: (0, 0)),
        ],
        out_specs=pl.BlockSpec((bt, 128), lambda i: (i, 0)),
        compiler_params=pltpu.CompilerParams(
            dimension_semantics=("parallel",),
            vmem_limit_bytes=_VMEM_LIMIT_BYTES),
    )(x5, prepared["m1"], prepared["m2"], prepared["aff1"], prepared["aff2"],
      prepared["fc1_w"], prepared["fc2_w"], prepared["fc3_w"], prepared["fc_b"])
    # TODO(synk): loss_fn referenced in forward() is defined outside the module
    # source; only the 'target' head is implemented.
    return {"target": logits[:B, :out_dim]}


if __name__ == "__main__":
    key = jax.random.PRNGKey(0)
    k_x, k_p = jax.random.split(key)
    # MNIST-like input implied by input_dim=16*4*4: (B, 1, 28, 28); batch=2.
    x = jax.random.normal(k_x, (2, 1, 28, 28), jnp.float32)
    params = init_params(k_p)
    prepared = prepare_params(params)        # one-time weight re-layout

    fwd = jax.jit(simple_cnn_mnist_forward,
                  static_argnames=("start_layer_idx", "out_dim"))
    out = fwd(prepared, x)
    jax.block_until_ready(out["target"])
    assert out["target"].shape == (2, 62)
    print("KERNEL_OK")
</pallas_src>

<mosaic_0001>
module attributes {stable_mosaic.version = 11 : i64} {
  func.func @_fused_cnn_kernel(%arg0: i32, %arg1: memref<8x12x28xbf16, #tpu.memory_space<vmem>>, %arg2: memref<5x28x144xbf16, #tpu.memory_space<vmem>>, %arg3: memref<5x72x128xbf16, #tpu.memory_space<vmem>>, %arg4: memref<3x144xf32, #tpu.memory_space<vmem>>, %arg5: memref<3x128xf32, #tpu.memory_space<vmem>>, %arg6: memref<256x128xbf16, #tpu.memory_space<vmem>>, %arg7: memref<128x128xbf16, #tpu.memory_space<vmem>>, %arg8: memref<128x128xbf16, #tpu.memory_space<vmem>>, %arg9: memref<3x128xf32, #tpu.memory_space<vmem>>, %arg10: memref<2x128xf32, #tpu.memory_space<vmem>>) attributes {dimension_semantics = [#tpu.dimension_semantics<parallel>], iteration_bounds = array<i64: 1>, scalar_prefetch = 0 : i64, scratch_operands = 0 : i64, tpu.core_type = #tpu.core_type<tc>, window_params = [{transform_indices = @transform_0, window_bounds = array<i64: 8, 12, 28>}, {pipeline_mode = #tpu.pipeline_mode<synchronous>, transform_indices = @transform_1, window_bounds = array<i64: 5, 28, 144>}, {pipeline_mode = #tpu.pipeline_mode<synchronous>, transform_indices = @transform_2, window_bounds = array<i64: 5, 72, 128>}, {pipeline_mode = #tpu.pipeline_mode<synchronous>, transform_indices = @transform_3, window_bounds = array<i64: 3, 144>}, {pipeline_mode = #tpu.pipeline_mode<synchronous>, transform_indices = @transform_4, window_bounds = array<i64: 3, 128>}, {pipeline_mode = #tpu.pipeline_mode<synchronous>, transform_indices = @transform_5, window_bounds = array<i64: 256, 128>}, {pipeline_mode = #tpu.pipeline_mode<synchronous>, transform_indices = @transform_6, window_bounds = array<i64: 128, 128>}, {pipeline_mode = #tpu.pipeline_mode<synchronous>, transform_indices = @transform_7, window_bounds = array<i64: 128, 128>}, {pipeline_mode = #tpu.pipeline_mode<synchronous>, transform_indices = @transform_8, window_bounds = array<i64: 3, 128>}, {transform_indices = @transform_9, window_bounds = array<i64: 2, 128>}]} {
    %c0 = arith.constant 0 : index
    %c0_0 = arith.constant 0 : index
    %c0_1 = arith.constant 0 : index
    %0 = vector.load %arg1[%c0, %c0_0, %c0_1] : memref<8x12x28xbf16, #tpu.memory_space<vmem>>, vector<1x12x28xbf16>
    %1 = vector.shape_cast %0 : vector<1x12x28xbf16> to vector<12x28xbf16>
    %c1 = arith.constant 1 : index
    %c0_2 = arith.constant 0 : index
    %c0_3 = arith.constant 0 : index
    %2 = vector.load %arg1[%c1, %c0_2, %c0_3] : memref<8x12x28xbf16, #tpu.memory_space<vmem>>, vector<1x12x28xbf16>
    %3 = vector.shape_cast %2 : vector<1x12x28xbf16> to vector<12x28xbf16>
    %c2 = arith.constant 2 : index
    %c0_4 = arith.constant 0 : index
    %c0_5 = arith.constant 0 : index
    %4 = vector.load %arg1[%c2, %c0_4, %c0_5] : memref<8x12x28xbf16, #tpu.memory_space<vmem>>, vector<1x12x28xbf16>
    %5 = vector.shape_cast %4 : vector<1x12x28xbf16> to vector<12x28xbf16>
    %c3 = arith.constant 3 : index
    %c0_6 = arith.constant 0 : index
    %c0_7 = arith.constant 0 : index
    %6 = vector.load %arg1[%c3, %c0_6, %c0_7] : memref<8x12x28xbf16, #tpu.memory_space<vmem>>, vector<1x12x28xbf16>
    %7 = vector.shape_cast %6 : vector<1x12x28xbf16> to vector<12x28xbf16>
    %c4 = arith.constant 4 : index
    %c0_8 = arith.constant 0 : index
    %c0_9 = arith.constant 0 : index
    %8 = vector.load %arg1[%c4, %c0_8, %c0_9] : memref<8x12x28xbf16, #tpu.memory_space<vmem>>, vector<1x12x28xbf16>
    %9 = vector.shape_cast %8 : vector<1x12x28xbf16> to vector<12x28xbf16>
    %c5 = arith.constant 5 : index
    %c0_10 = arith.constant 0 : index
    %c0_11 = arith.constant 0 : index
    %10 = vector.load %arg1[%c5, %c0_10, %c0_11] : memref<8x12x28xbf16, #tpu.memory_space<vmem>>, vector<1x12x28xbf16>
    %11 = vector.shape_cast %10 : vector<1x12x28xbf16> to vector<12x28xbf16>
    %c6 = arith.constant 6 : index
    %c0_12 = arith.constant 0 : index
    %c0_13 = arith.constant 0 : index
    %12 = vector.load %arg1[%c6, %c0_12, %c0_13] : memref<8x12x28xbf16, #tpu.memory_space<vmem>>, vector<1x12x28xbf16>
    %13 = vector.shape_cast %12 : vector<1x12x28xbf16> to vector<12x28xbf16>
    %c7 = arith.constant 7 : index
    %c0_14 = arith.constant 0 : index
    %c0_15 = arith.constant 0 : index
    %14 = vector.load %arg1[%c7, %c0_14, %c0_15] : memref<8x12x28xbf16, #tpu.memory_space<vmem>>, vector<1x12x28xbf16>
    %15 = vector.shape_cast %14 : vector<1x12x28xbf16> to vector<12x28xbf16>
    %c0_16 = arith.constant 0 : index
    %c0_17 = arith.constant 0 : index
    %16 = vector.load %arg4[%c0_16, %c0_17] : memref<3x144xf32, #tpu.memory_space<vmem>>, vector<1x144xf32>
    %c0_18 = arith.constant 0 : index
    %c0_19 = arith.constant 0 : index
    %c0_20 = arith.constant 0 : index
    %17 = vector.load %arg2[%c0_18, %c0_19, %c0_20] : memref<5x28x144xbf16, #tpu.memory_space<vmem>>, vector<1x28x144xbf16>
    %18 = vector.shape_cast %17 : vector<1x28x144xbf16> to vector<28x144xbf16>
    %cst = arith.constant dense<0.000000e+00> : vector<12x144xf32>
    %19 = tpu.matmul %1, %18, %cst {dimension_numbers = #tpu.dot_dimension_numbers<[1], [0], [0], [1], [0, 0, 1, 1], [], []>} : vector<12x28xbf16>, vector<28x144xbf16>, vector<12x144xf32> -> vector<12x144xf32>
    %c1_21 = arith.constant 1 : index
    %c0_22 = arith.constant 0 : index
    %c0_23 = arith.constant 0 : index
    %20 = vector.load %arg2[%c1_21, %c0_22, %c0_23] : memref<5x28x144xbf16, #tpu.memory_space<vmem>>, vector<1x28x144xbf16>
    %21 = vector.shape_cast %20 : vector<1x28x144xbf16> to vector<28x144xbf16>
    %cst_24 = arith.constant dense<0.000000e+00> : vector<12x144xf32>
    %22 = tpu.matmul %3, %21, %cst_24 {dimension_numbers = #tpu.dot_dimension_numbers<[1], [0], [0], [1], [0, 0, 1, 1], [], []>} : vector<12x28xbf16>, vector<28x144xbf16>, vector<12x144xf32> -> vector<12x144xf32>
    %23 = arith.addf %19, %22 : vector<12x144xf32>
    %c2_25 = arith.constant 2 : index
    %c0_26 = arith.constant 0 : index
    %c0_27 = arith.constant 0 : index
    %24 = vector.load %arg2[%c2_25, %c0_26, %c0_27] : memref<5x28x144xbf16, #tpu.memory_space<vmem>>, vector<1x28x144xbf16>
    %25 = vector.shape_cast %24 : vector<1x28x144xbf16> to vector<28x144xbf16>
    %cst_28 = arith.constant dense<0.000000e+00> : vector<12x144xf32>
    %26 = tpu.matmul %5, %25, %cst_28 {dimension_numbers = #tpu.dot_dimension_numbers<[1], [0], [0], [1], [0, 0, 1, 1], [], []>} : vector<12x28xbf16>, vector<28x144xbf16>, vector<12x144xf32> -> vector<12x144xf32>
    %27 = arith.addf %23, %26 : vector<12x144xf32>
    %c3_29 = arith.constant 3 : index
    %c0_30 = arith.constant 0 : index
    %c0_31 = arith.constant 0 : index
    %28 = vector.load %arg2[%c3_29, %c0_30, %c0_31] : memref<5x28x144xbf16, #tpu.memory_space<vmem>>, vector<1x28x144xbf16>
    %29 = vector.shape_cast %28 : vector<1x28x144xbf16> to vector<28x144xbf16>
    %cst_32 = arith.constant dense<0.000000e+00> : vector<12x144xf32>
    %30 = tpu.matmul %7, %29, %cst_32 {dimension_numbers = #tpu.dot_dimension_numbers<[1], [0], [0], [1], [0, 0, 1, 1], [], []>} : vector<12x28xbf16>, vector<28x144xbf16>, vector<12x144xf32> -> vector<12x144xf32>
    %31 = arith.addf %27, %30 : vector<12x144xf32>
    %c4_33 = arith.constant 4 : index
    %c0_34 = arith.constant 0 : index
    %c0_35 = arith.constant 0 : index
    %32 = vector.load %arg2[%c4_33, %c0_34, %c0_35] : memref<5x28x144xbf16, #tpu.memory_space<vmem>>, vector<1x28x144xbf16>
    %33 = vector.shape_cast %32 : vector<1x28x144xbf16> to vector<28x144xbf16>
    %cst_36 = arith.constant dense<0.000000e+00> : vector<12x144xf32>
    %34 = tpu.matmul %9, %33, %cst_36 {dimension_numbers = #tpu.dot_dimension_numbers<[1], [0], [0], [1], [0, 0, 1, 1], [], []>} : vector<12x28xbf16>, vector<28x144xbf16>, vector<12x144xf32> -> vector<12x144xf32>
    %35 = arith.addf %31, %34 : vector<12x144xf32>
    %36 = vector.broadcast %16 : vector<1x144xf32> to vector<12x144xf32>
    %37 = arith.addf %35, %36 : vector<12x144xf32>
    %38 = vector.shape_cast %37 : vector<12x144xf32> to vector<2x6x144xf32>
    %c0_37 = arith.constant 0 : index
    %c0_38 = arith.constant 0 : index
    %c0_39 = arith.constant 0 : index
    %39 = vector.load %arg2[%c0_37, %c0_38, %c0_39] : memref<5x28x144xbf16, #tpu.memory_space<vmem>>, vector<1x28x144xbf16>
    %40 = vector.shape_cast %39 : vector<1x28x144xbf16> to vector<28x144xbf16>
    %cst_40 = arith.constant dense<0.000000e+00> : vector<12x144xf32>
    %41 = tpu.matmul %3, %40, %cst_40 {dimension_numbers = #tpu.dot_dimension_numbers<[1], [0], [0], [1], [0, 0, 1, 1], [], []>} : vector<12x28xbf16>, vector<28x144xbf16>, vector<12x144xf32> -> vector<12x144xf32>
    %c1_41 = arith.constant 1 : index
    %c0_42 = arith.constant 0 : index
    %c0_43 = arith.constant 0 : index
    %42 = vector.load %arg2[%c1_41, %c0_42, %c0_43] : memref<5x28x144xbf16, #tpu.memory_space<vmem>>, vector<1x28x144xbf16>
    %43 = vector.shape_cast %42 : vector<1x28x144xbf16> to vector<28x144xbf16>
    %cst_44 = arith.constant dense<0.000000e+00> : vector<12x144xf32>
    %44 = tpu.matmul %5, %43, %cst_44 {dimension_numbers = #tpu.dot_dimension_numbers<[1], [0], [0], [1], [0, 0, 1, 1], [], []>} : vector<12x28xbf16>, vector<28x144xbf16>, vector<12x144xf32> -> vector<12x144xf32>
    %45 = arith.addf %41, %44 : vector<12x144xf32>
    %c2_45 = arith.constant 2 : index
    %c0_46 = arith.constant 0 : index
    %c0_47 = arith.constant 0 : index
    %46 = vector.load %arg2[%c2_45, %c0_46, %c0_47] : memref<5x28x144xbf16, #tpu.memory_space<vmem>>, vector<1x28x144xbf16>
    %47 = vector.shape_cast %46 : vector<1x28x144xbf16> to vector<28x144xbf16>
    %cst_48 = arith.constant dense<0.000000e+00> : vector<12x144xf32>
    %48 = tpu.matmul %7, %47, %cst_48 {dimension_numbers = #tpu.dot_dimension_numbers<[1], [0], [0], [1], [0, 0, 1, 1], [], []>} : vector<12x28xbf16>, vector<28x144xbf16>, vector<12x144xf32> -> vector<12x144xf32>
    %49 = arith.addf %45, %48 : vector<12x144xf32>
    %c3_49 = arith.constant 3 : index
    %c0_50 = arith.constant 0 : index
    %c0_51 = arith.constant 0 : index
    %50 = vector.load %arg2[%c3_49, %c0_50, %c0_51] : memref<5x28x144xbf16, #tpu.memory_space<vmem>>, vector<1x28x144xbf16>
    %51 = vector.shape_cast %50 : vector<1x28x144xbf16> to vector<28x144xbf16>
    %cst_52 = arith.constant dense<0.000000e+00> : vector<12x144xf32>
    %52 = tpu.matmul %9, %51, %cst_52 {dimension_numbers = #tpu.dot_dimension_numbers<[1], [0], [0], [1], [0, 0, 1, 1], [], []>} : vector<12x28xbf16>, vector<28x144xbf16>, vector<12x144xf32> -> vector<12x144xf32>
    %53 = arith.addf %49, %52 : vector<12x144xf32>
    %c4_53 = arith.constant 4 : index
    %c0_54 = arith.constant 0 : index
    %c0_55 = arith.constant 0 : index
    %54 = vector.load %arg2[%c4_53, %c0_54, %c0_55] : memref<5x28x144xbf16, #tpu.memory_space<vmem>>, vector<1x28x144xbf16>
    %55 = vector.shape_cast %54 : vector<1x28x144xbf16> to vector<28x144xbf16>
    %cst_56 = arith.constant dense<0.000000e+00> : vector<12x144xf32>
    %56 = tpu.matmul %11, %55, %cst_56 {dimension_numbers = #tpu.dot_dimension_numbers<[1], [0], [0], [1], [0, 0, 1, 1], [], []>} : vector<12x28xbf16>, vector<28x144xbf16>, vector<12x144xf32> -> vector<12x144xf32>
    %57 = arith.addf %53, %56 : vector<12x144xf32>
    %58 = vector.broadcast %16 : vector<1x144xf32> to vector<12x144xf32>
    %59 = arith.addf %57, %58 : vector<12x144xf32>
    %60 = vector.shape_cast %59 : vector<12x144xf32> to vector<2x6x144xf32>
    %c0_57 = arith.constant 0 : index
    %c0_58 = arith.constant 0 : index
    %c0_59 = arith.constant 0 : index
    %61 = vector.load %arg2[%c0_57, %c0_58, %c0_59] : memref<5x28x144xbf16, #tpu.memory_space<vmem>>, vector<1x28x144xbf16>
    %62 = vector.shape_cast %61 : vector<1x28x144xbf16> to vector<28x144xbf16>
    %cst_60 = arith.constant dense<0.000000e+00> : vector<12x144xf32>
    %63 = tpu.matmul %5, %62, %cst_60 {dimension_numbers = #tpu.dot_dimension_numbers<[1], [0], [0], [1], [0, 0, 1, 1], [], []>} : vector<12x28xbf16>, vector<28x144xbf16>, vector<12x144xf32> -> vector<12x144xf32>
    %c1_61 = arith.constant 1 : index
    %c0_62 = arith.constant 0 : index
    %c0_63 = arith.constant 0 : index
    %64 = vector.load %arg2[%c1_61, %c0_62, %c0_63] : memref<5x28x144xbf16, #tpu.memory_space<vmem>>, vector<1x28x144xbf16>
    %65 = vector.shape_cast %64 : vector<1x28x144xbf16> to vector<28x144xbf16>
    %cst_64 = arith.constant dense<0.000000e+00> : vector<12x144xf32>
    %66 = tpu.matmul %7, %65, %cst_64 {dimension_numbers = #tpu.dot_dimension_numbers<[1], [0], [0], [1], [0, 0, 1, 1], [], []>} : vector<12x28xbf16>, vector<28x144xbf16>, vector<12x144xf32> -> vector<12x144xf32>
    %67 = arith.addf %63, %66 : vector<12x144xf32>
    %c2_65 = arith.constant 2 : index
    %c0_66 = arith.constant 0 : index
    %c0_67 = arith.constant 0 : index
    %68 = vector.load %arg2[%c2_65, %c0_66, %c0_67] : memref<5x28x144xbf16, #tpu.memory_space<vmem>>, vector<1x28x144xbf16>
    %69 = vector.shape_cast %68 : vector<1x28x144xbf16> to vector<28x144xbf16>
    %cst_68 = arith.constant dense<0.000000e+00> : vector<12x144xf32>
    %70 = tpu.matmul %9, %69, %cst_68 {dimension_numbers = #tpu.dot_dimension_numbers<[1], [0], [0], [1], [0, 0, 1, 1], [], []>} : vector<12x28xbf16>, vector<28x144xbf16>, vector<12x144xf32> -> vector<12x144xf32>
    %71 = arith.addf %67, %70 : vector<12x144xf32>
    %c3_69 = arith.constant 3 : index
    %c0_70 = arith.constant 0 : index
    %c0_71 = arith.constant 0 : index
    %72 = vector.load %arg2[%c3_69, %c0_70, %c0_71] : memref<5x28x144xbf16, #tpu.memory_space<vmem>>, vector<1x28x144xbf16>
    %73 = vector.shape_cast %72 : vector<1x28x144xbf16> to vector<28x144xbf16>
    %cst_72 = arith.constant dense<0.000000e+00> : vector<12x144xf32>
    %74 = tpu.matmul %11, %73, %cst_72 {dimension_numbers = #tpu.dot_dimension_numbers<[1], [0], [0], [1], [0, 0, 1, 1], [], []>} : vector<12x28xbf16>, vector<28x144xbf16>, vector<12x144xf32> -> vector<12x144xf32>
    %75 = arith.addf %71, %74 : vector<12x144xf32>
    %c4_73 = arith.constant 4 : index
    %c0_74 = arith.constant 0 : index
    %c0_75 = arith.constant 0 : index
    %76 = vector.load %arg2[%c4_73, %c0_74, %c0_75] : memref<5x28x144xbf16, #tpu.memory_space<vmem>>, vector<1x28x144xbf16>
    %77 = vector.shape_cast %76 : vector<1x28x144xbf16> to vector<28x144xbf16>
    %cst_76 = arith.constant dense<0.000000e+00> : vector<12x144xf32>
    %78 = tpu.matmul %13, %77, %cst_76 {dimension_numbers = #tpu.dot_dimension_numbers<[1], [0], [0], [1], [0, 0, 1, 1], [], []>} : vector<12x28xbf16>, vector<28x144xbf16>, vector<12x144xf32> -> vector<12x144xf32>
    %79 = arith.addf %75, %78 : vector<12x144xf32>
    %80 = vector.broadcast %16 : vector<1x144xf32> to vector<12x144xf32>
    %81 = arith.addf %79, %80 : vector<12x144xf32>
    %82 = vector.shape_cast %81 : vector<12x144xf32> to vector<2x6x144xf32>
    %c0_77 = arith.constant 0 : index
    %c0_78 = arith.constant 0 : index
    %c0_79 = arith.constant 0 : index
    %83 = vector.load %arg2[%c0_77, %c0_78, %c0_79] : memref<5x28x144xbf16, #tpu.memory_space<vmem>>, vector<1x28x144xbf16>
    %84 = vector.shape_cast %83 : vector<1x28x144xbf16> to vector<28x144xbf16>
    %cst_80 = arith.constant dense<0.000000e+00> : vector<12x144xf32>
    %85 = tpu.matmul %7, %84, %cst_80 {dimension_numbers = #tpu.dot_dimension_numbers<[1], [0], [0], [1], [0, 0, 1, 1], [], []>} : vector<12x28xbf16>, vector<28x144xbf16>, vector<12x144xf32> -> vector<12x144xf32>
    %c1_81 = arith.constant 1 : index
    %c0_82 = arith.constant 0 : index
    %c0_83 = arith.constant 0 : index
    %86 = vector.load %arg2[%c1_81, %c0_82, %c0_83] : memref<5x28x144xbf16, #tpu.memory_space<vmem>>, vector<1x28x144xbf16>
    %87 = vector.shape_cast %86 : vector<1x28x144xbf16> to vector<28x144xbf16>
    %cst_84 = arith.constant dense<0.000000e+00> : vector<12x144xf32>
    %88 = tpu.matmul %9, %87, %cst_84 {dimension_numbers = #tpu.dot_dimension_numbers<[1], [0], [0], [1], [0, 0, 1, 1], [], []>} : vector<12x28xbf16>, vector<28x144xbf16>, vector<12x144xf32> -> vector<12x144xf32>
    %89 = arith.addf %85, %88 : vector<12x144xf32>
    %c2_85 = arith.constant 2 : index
    %c0_86 = arith.constant 0 : index
    %c0_87 = arith.constant 0 : index
    %90 = vector.load %arg2[%c2_85, %c0_86, %c0_87] : memref<5x28x144xbf16, #tpu.memory_space<vmem>>, vector<1x28x144xbf16>
    %91 = vector.shape_cast %90 : vector<1x28x144xbf16> to vector<28x144xbf16>
    %cst_88 = arith.constant dense<0.000000e+00> : vector<12x144xf32>
    %92 = tpu.matmul %11, %91, %cst_88 {dimension_numbers = #tpu.dot_dimension_numbers<[1], [0], [0], [1], [0, 0, 1, 1], [], []>} : vector<12x28xbf16>, vector<28x144xbf16>, vector<12x144xf32> -> vector<12x144xf32>
    %93 = arith.addf %89, %92 : vector<12x144xf32>
    %c3_89 = arith.constant 3 : index
    %c0_90 = arith.constant 0 : index
    %c0_91 = arith.constant 0 : index
    %94 = vector.load %arg2[%c3_89, %c0_90, %c0_91] : memref<5x28x144xbf16, #tpu.memory_space<vmem>>, vector<1x28x144xbf16>
    %95 = vector.shape_cast %94 : vector<1x28x144xbf16> to vector<28x144xbf16>
    %cst_92 = arith.constant dense<0.000000e+00> : vector<12x144xf32>
    %96 = tpu.matmul %13, %95, %cst_92 {dimension_numbers = #tpu.dot_dimension_numbers<[1], [0], [0], [1], [0, 0, 1, 1], [], []>} : vector<12x28xbf16>, vector<28x144xbf16>, vector<12x144xf32> -> vector<12x144xf32>
    %97 = arith.addf %93, %96 : vector<12x144xf32>
    %c4_93 = arith.constant 4 : index
    %c0_94 = arith.constant 0 : index
    %c0_95 = arith.constant 0 : index
    %98 = vector.load %arg2[%c4_93, %c0_94, %c0_95] : memref<5x28x144xbf16, #tpu.memory_space<vmem>>, vector<1x28x144xbf16>
    %99 = vector.shape_cast %98 : vector<1x28x144xbf16> to vector<28x144xbf16>
    %cst_96 = arith.constant dense<0.000000e+00> : vector<12x144xf32>
    %100 = tpu.matmul %15, %99, %cst_96 {dimension_numbers = #tpu.dot_dimension_numbers<[1], [0], [0], [1], [0, 0, 1, 1], [], []>} : vector<12x28xbf16>, vector<28x144xbf16>, vector<12x144xf32> -> vector<12x144xf32>
    %101 = arith.addf %97, %100 : vector<12x144xf32>
    %102 = vector.broadcast %16 : vector<1x144xf32> to vector<12x144xf32>
    %103 = arith.addf %101, %102 : vector<12x144xf32>
    %104 = vector.shape_cast %103 : vector<12x144xf32> to vector<2x6x144xf32>
    %cst_97 = arith.constant dense<0.000000e+00> : vector<2x6xf32>
    %105 = vector.multi_reduction <add>, %38, %cst_97 [2] : vector<2x6x144xf32> to vector<2x6xf32>
    %106 = vector.shape_cast %105 : vector<2x6xf32> to vector<2x6x1xf32>
    %cst_98 = arith.constant dense<0.000000e+00> : vector<2x1xf32>
    %107 = vector.multi_reduction <add>, %106, %cst_98 [1] : vector<2x6x1xf32> to vector<2x1xf32>
    %108 = vector.shape_cast %107 : vector<2x1xf32> to vector<2x1x1xf32>
    %109 = arith.mulf %38, %38 : vector<2x6x144xf32>
    %cst_99 = arith.constant dense<0.000000e+00> : vector<2x6xf32>
    %110 = vector.multi_reduction <add>, %109, %cst_99 [2] : vector<2x6x144xf32> to vector<2x6xf32>
    %111 = vector.shape_cast %110 : vector<2x6xf32> to vector<2x6x1xf32>
    %cst_100 = arith.constant dense<0.000000e+00> : vector<2x1xf32>
    %112 = vector.multi_reduction <add>, %111, %cst_100 [1] : vector<2x6x1xf32> to vector<2x1xf32>
    %113 = vector.shape_cast %112 : vector<2x1xf32> to vector<2x1x1xf32>
    %cst_101 = arith.constant dense<0.000000e+00> : vector<2x6xf32>
    %114 = vector.multi_reduction <add>, %60, %cst_101 [2] : vector<2x6x144xf32> to vector<2x6xf32>
    %115 = vector.shape_cast %114 : vector<2x6xf32> to vector<2x6x1xf32>
    %cst_102 = arith.constant dense<0.000000e+00> : vector<2x1xf32>
    %116 = vector.multi_reduction <add>, %115, %cst_102 [1] : vector<2x6x1xf32> to vector<2x1xf32>
    %117 = vector.shape_cast %116 : vector<2x1xf32> to vector<2x1x1xf32>
    %118 = arith.mulf %60, %60 : vector<2x6x144xf32>
    %cst_103 = arith.constant dense<0.000000e+00> : vector<2x6xf32>
    %119 = vector.multi_reduction <add>, %118, %cst_103 [2] : vector<2x6x144xf32> to vector<2x6xf32>
    %120 = vector.shape_cast %119 : vector<2x6xf32> to vector<2x6x1xf32>
    %cst_104 = arith.constant dense<0.000000e+00> : vector<2x1xf32>
    %121 = vector.multi_reduction <add>, %120, %cst_104 [1] : vector<2x6x1xf32> to vector<2x1xf32>
    %122 = vector.shape_cast %121 : vector<2x1xf32> to vector<2x1x1xf32>
    %123 = arith.addf %108, %117 : vector<2x1x1xf32>
    %124 = arith.addf %113, %122 : vector<2x1x1xf32>
    %cst_105 = arith.constant dense<0.000000e+00> : vector<2x6xf32>
    %125 = vector.multi_reduction <add>, %82, %cst_105 [2] : vector<2x6x144xf32> to vector<2x6xf32>
    %126 = vector.shape_cast %125 : vector<2x6xf32> to vector<2x6x1xf32>
    %cst_106 = arith.constant dense<0.000000e+00> : vector<2x1xf32>
    %127 = vector.multi_reduction <add>, %126, %cst_106 [1] : vector<2x6x1xf32> to vector<2x1xf32>
    %128 = vector.shape_cast %127 : vector<2x1xf32> to vector<2x1x1xf32>
    %129 = arith.mulf %82, %82 : vector<2x6x144xf32>
    %cst_107 = arith.constant dense<0.000000e+00> : vector<2x6xf32>
    %130 = vector.multi_reduction <add>, %129, %cst_107 [2] : vector<2x6x144xf32> to vector<2x6xf32>
    %131 = vector.shape_cast %130 : vector<2x6xf32> to vector<2x6x1xf32>
    %cst_108 = arith.constant dense<0.000000e+00> : vector<2x1xf32>
    %132 = vector.multi_reduction <add>, %131, %cst_108 [1] : vector<2x6x1xf32> to vector<2x1xf32>
    %133 = vector.shape_cast %132 : vector<2x1xf32> to vector<2x1x1xf32>
    %134 = arith.addf %123, %128 : vector<2x1x1xf32>
    %135 = arith.addf %124, %133 : vector<2x1x1xf32>
    %cst_109 = arith.constant dense<0.000000e+00> : vector<2x6xf32>
    %136 = vector.multi_reduction <add>, %104, %cst_109 [2] : vector<2x6x144xf32> to vector<2x6xf32>
    %137 = vector.shape_cast %136 : vector<2x6xf32> to vector<2x6x1xf32>
    %cst_110 = arith.constant dense<0.000000e+00> : vector<2x1xf32>
    %138 = vector.multi_reduction <add>, %137, %cst_110 [1] : vector<2x6x1xf32> to vector<2x1xf32>
    %139 = vector.shape_cast %138 : vector<2x1xf32> to vector<2x1x1xf32>
    %140 = arith.mulf %104, %104 : vector<2x6x144xf32>
    %cst_111 = arith.constant dense<0.000000e+00> : vector<2x6xf32>
    %141 = vector.multi_reduction <add>, %140, %cst_111 [2] : vector<2x6x144xf32> to vector<2x6xf32>
    %142 = vector.shape_cast %141 : vector<2x6xf32> to vector<2x6x1xf32>
    %cst_112 = arith.constant dense<0.000000e+00> : vector<2x1xf32>
    %143 = vector.multi_reduction <add>, %142, %cst_112 [1] : vector<2x6x1xf32> to vector<2x1xf32>
    %144 = vector.shape_cast %143 : vector<2x1xf32> to vector<2x1x1xf32>
    %145 = arith.addf %134, %139 : vector<2x1x1xf32>
    %146 = arith.addf %135, %144 : vector<2x1x1xf32>
    %cst_113 = arith.constant 3.456000e+03 : f32
    %147 = vector.broadcast %cst_113 : f32 to vector<2x1x1xf32>
    %148 = arith.divf %145, %147 : vector<2x1x1xf32>
    %cst_114 = arith.constant 3.456000e+03 : f32
    %149 = vector.broadcast %cst_114 : f32 to vector<2x1x1xf32>
    %150 = arith.divf %146, %149 : vector<2x1x1xf32>
    %151 = arith.mulf %148, %148 : vector<2x1x1xf32>
    %152 = arith.subf %150, %151 : vector<2x1x1xf32>
    %cst_115 = arith.constant 0.000000e+00 : f32
    %153 = vector.broadcast %cst_115 : f32 to vector<2x1x1xf32>
    %154 = arith.maximumf %152, %153 : vector<2x1x1xf32>
    %cst_116 = arith.constant 9.99999974E-6 : f32
    %155 = vector.broadcast %cst_116 : f32 to vector<2x1x1xf32>
    %156 = arith.addf %154, %155 : vector<2x1x1xf32>
    %157 = math.rsqrt %156 : vector<2x1x1xf32>
    %c1_117 = arith.constant 1 : index
    %c0_118 = arith.constant 0 : index
    %158 = vector.load %arg4[%c1_117, %c0_118] : memref<3x144xf32, #tpu.memory_space<vmem>>, vector<1x144xf32>
    %c2_119 = arith.constant 2 : index
    %c0_120 = arith.constant 0 : index
    %159 = vector.load %arg4[%c2_119, %c0_120] : memref<3x144xf32, #tpu.memory_space<vmem>>, vector<1x144xf32>
    %160 = vector.broadcast %148 : vector<2x1x1xf32> to vector<2x6x144xf32>
    %161 = arith.subf %38, %160 : vector<2x6x144xf32>
    %162 = vector.broadcast %157 : vector<2x1x1xf32> to vector<2x6x144xf32>
    %163 = arith.mulf %161, %162 : vector<2x6x144xf32>
    %164 = vector.shape_cast %158 : vector<1x144xf32> to vector<1x1x144xf32>
    %165 = vector.broadcast %164 : vector<1x1x144xf32> to vector<2x6x144xf32>
    %166 = arith.mulf %163, %165 : vector<2x6x144xf32>
    %167 = vector.shape_cast %159 : vector<1x144xf32> to vector<1x1x144xf32>
    %168 = vector.broadcast %167 : vector<1x1x144xf32> to vector<2x6x144xf32>
    %169 = arith.addf %166, %168 : vector<2x6x144xf32>
    %cst_121 = arith.constant 0.000000e+00 : f32
    %170 = vector.broadcast %cst_121 : f32 to vector<2x6x144xf32>
    %171 = arith.maximumf %169, %170 : vector<2x6x144xf32>
    %172 = vector.broadcast %148 : vector<2x1x1xf32> to vector<2x6x144xf32>
    %173 = arith.subf %60, %172 : vector<2x6x144xf32>
    %174 = vector.broadcast %157 : vector<2x1x1xf32> to vector<2x6x144xf32>
    %175 = arith.mulf %173, %174 : vector<2x6x144xf32>
    %176 = vector.shape_cast %158 : vector<1x144xf32> to vector<1x1x144xf32>
    %177 = vector.broadcast %176 : vector<1x1x144xf32> to vector<2x6x144xf32>
    %178 = arith.mulf %175, %177 : vector<2x6x144xf32>
    %179 = vector.shape_cast %159 : vector<1x144xf32> to vector<1x1x144xf32>
    %180 = vector.broadcast %179 : vector<1x1x144xf32> to vector<2x6x144xf32>
    %181 = arith.addf %178, %180 : vector<2x6x144xf32>
    %cst_122 = arith.constant 0.000000e+00 : f32
    %182 = vector.broadcast %cst_122 : f32 to vector<2x6x144xf32>
    %183 = arith.maximumf %181, %182 : vector<2x6x144xf32>
    %184 = arith.maximumf %171, %183 : vector<2x6x144xf32>
    %185 = vector.extract_strided_slice %184 {offsets = [0, 0, 0], sizes = [2, 6, 72], strides = [1, 1, 1]} : vector<2x6x144xf32> to vector<2x6x72xf32>
    %186 = vector.extract_strided_slice %184 {offsets = [0, 0, 72], sizes = [2, 6, 72], strides = [1, 1, 1]} : vector<2x6x144xf32> to vector<2x6x72xf32>
    %187 = arith.maximumf %185, %186 : vector<2x6x72xf32>
    %188 = vector.broadcast %148 : vector<2x1x1xf32> to vector<2x6x144xf32>
    %189 = arith.subf %82, %188 : vector<2x6x144xf32>
    %190 = vector.broadcast %157 : vector<2x1x1xf32> to vector<2x6x144xf32>
    %191 = arith.mulf %189, %190 : vector<2x6x144xf32>
    %192 = vector.shape_cast %158 : vector<1x144xf32> to vector<1x1x144xf32>
    %193 = vector.broadcast %192 : vector<1x1x144xf32> to vector<2x6x144xf32>
    %194 = arith.mulf %191, %193 : vector<2x6x144xf32>
    %195 = vector.shape_cast %159 : vector<1x144xf32> to vector<1x1x144xf32>
    %196 = vector.broadcast %195 : vector<1x1x144xf32> to vector<2x6x144xf32>
    %197 = arith.addf %194, %196 : vector<2x6x144xf32>
    %cst_123 = arith.constant 0.000000e+00 : f32
    %198 = vector.broadcast %cst_123 : f32 to vector<2x6x144xf32>
    %199 = arith.maximumf %197, %198 : vector<2x6x144xf32>
    %200 = vector.broadcast %148 : vector<2x1x1xf32> to vector<2x6x144xf32>
    %201 = arith.subf %104, %200 : vector<2x6x144xf32>
    %202 = vector.broadcast %157 : vector<2x1x1xf32> to vector<2x6x144xf32>
    %203 = arith.mulf %201, %202 : vector<2x6x144xf32>
    %204 = vector.shape_cast %158 : vector<1x144xf32> to vector<1x1x144xf32>
    %205 = vector.broadcast %204 : vector<1x1x144xf32> to vector<2x6x144xf32>
    %206 = arith.mulf %203, %205 : vector<2x6x144xf32>
    %207 = vector.shape_cast %159 : vector<1x144xf32> to vector<1x1x144xf32>
    %208 = vector.broadcast %207 : vector<1x1x144xf32> to vector<2x6x144xf32>
    %209 = arith.addf %206, %208 : vector<2x6x144xf32>
    %cst_124 = arith.constant 0.000000e+00 : f32
    %210 = vector.broadcast %cst_124 : f32 to vector<2x6x144xf32>
    %211 = arith.maximumf %209, %210 : vector<2x6x144xf32>
    %212 = arith.maximumf %199, %211 : vector<2x6x144xf32>
    %213 = vector.extract_strided_slice %212 {offsets = [0, 0, 0], sizes = [2, 6, 72], strides = [1, 1, 1]} : vector<2x6x144xf32> to vector<2x6x72xf32>
    %214 = vector.extract_strided_slice %212 {offsets = [0, 0, 72], sizes = [2, 6, 72], strides = [1, 1, 1]} : vector<2x6x144xf32> to vector<2x6x72xf32>
    %215 = arith.maximumf %213, %214 : vector<2x6x72xf32>
    %216 = vector.extract_strided_slice %187 {offsets = [0, 0, 0], sizes = [2, 4, 72], strides = [1, 1, 1]} : vector<2x6x72xf32> to vector<2x4x72xf32>
    %217 = vector.shape_cast %216 : vector<2x4x72xf32> to vector<8x72xf32>
    %218 = arith.truncf %217 : vector<8x72xf32> to vector<8x72xbf16>
    %219 = vector.extract_strided_slice %215 {offsets = [0, 0, 0], sizes = [2, 4, 72], strides = [1, 1, 1]} : vector<2x6x72xf32> to vector<2x4x72xf32>
    %220 = vector.shape_cast %219 : vector<2x4x72xf32> to vector<8x72xf32>
    %221 = arith.truncf %220 : vector<8x72xf32> to vector<8x72xbf16>
    %222 = vector.extract_strided_slice %187 {offsets = [0, 1, 0], sizes = [2, 4, 72], strides = [1, 1, 1]} : vector<2x6x72xf32> to vector<2x4x72xf32>
    %223 = vector.shape_cast %222 : vector<2x4x72xf32> to vector<8x72xf32>
    %224 = arith.truncf %223 : vector<8x72xf32> to vector<8x72xbf16>
    %225 = vector.extract_strided_slice %215 {offsets = [0, 1, 0], sizes = [2, 4, 72], strides = [1, 1, 1]} : vector<2x6x72xf32> to vector<2x4x72xf32>
    %226 = vector.shape_cast %225 : vector<2x4x72xf32> to vector<8x72xf32>
    %227 = arith.truncf %226 : vector<8x72xf32> to vector<8x72xbf16>
    %228 = vector.extract_strided_slice %187 {offsets = [0, 2, 0], sizes = [2, 4, 72], strides = [1, 1, 1]} : vector<2x6x72xf32> to vector<2x4x72xf32>
    %229 = vector.shape_cast %228 : vector<2x4x72xf32> to vector<8x72xf32>
    %230 = arith.truncf %229 : vector<8x72xf32> to vector<8x72xbf16>
    %231 = vector.extract_strided_slice %215 {offsets = [0, 2, 0], sizes = [2, 4, 72], strides = [1, 1, 1]} : vector<2x6x72xf32> to vector<2x4x72xf32>
    %232 = vector.shape_cast %231 : vector<2x4x72xf32> to vector<8x72xf32>
    %233 = arith.truncf %232 : vector<8x72xf32> to vector<8x72xbf16>
    %c0_125 = arith.constant 0 : index
    %c0_126 = arith.constant 0 : index
    %234 = vector.load %arg5[%c0_125, %c0_126] : memref<3x128xf32, #tpu.memory_space<vmem>>, vector<1x128xf32>
    %c0_127 = arith.constant 0 : index
    %c0_128 = arith.constant 0 : index
    %c0_129 = arith.constant 0 : index
    %235 = vector.load %arg3[%c0_127, %c0_128, %c0_129] : memref<5x72x128xbf16, #tpu.memory_space<vmem>>, vector<1x72x128xbf16>
    %236 = vector.shape_cast %235 : vector<1x72x128xbf16> to vector<72x128xbf16>
    %cst_130 = arith.constant dense<0.000000e+00> : vector<8x128xf32>
    %237 = tpu.matmul %218, %236, %cst_130 {dimension_numbers = #tpu.dot_dimension_numbers<[1], [0], [0], [1], [0, 0, 1, 1], [], []>} : vector<8x72xbf16>, vector<72x128xbf16>, vector<8x128xf32> -> vector<8x128xf32>
    %c1_131 = arith.constant 1 : index
    %c0_132 = arith.constant 0 : index
    %c0_133 = arith.constant 0 : index
    %238 = vector.load %arg3[%c1_131, %c0_132, %c0_133] : memref<5x72x128xbf16, #tpu.memory_space<vmem>>, vector<1x72x128xbf16>
    %239 = vector.shape_cast %238 : vector<1x72x128xbf16> to vector<72x128xbf16>
    %cst_134 = arith.constant dense<0.000000e+00> : vector<8x128xf32>
    %240 = tpu.matmul %221, %239, %cst_134 {dimension_numbers = #tpu.dot_dimension_numbers<[1], [0], [0], [1], [0, 0, 1, 1], [], []>} : vector<8x72xbf16>, vector<72x128xbf16>, vector<8x128xf32> -> vector<8x128xf32>
    %241 = arith.addf %237, %240 : vector<8x128xf32>
    %c2_135 = arith.constant 2 : index
    %c0_136 = arith.constant 0 : index
    %c0_137 = arith.constant 0 : index
    %242 = vector.load %arg3[%c2_135, %c0_136, %c0_137] : memref<5x72x128xbf16, #tpu.memory_space<vmem>>, vector<1x72x128xbf16>
    %243 = vector.shape_cast %242 : vector<1x72x128xbf16> to vector<72x128xbf16>
    %cst_138 = arith.constant dense<0.000000e+00> : vector<8x128xf32>
    %244 = tpu.matmul %224, %243, %cst_138 {dimension_numbers = #tpu.dot_dimension_numbers<[1], [0], [0], [1], [0, 0, 1, 1], [], []>} : vector<8x72xbf16>, vector<72x128xbf16>, vector<8x128xf32> -> vector<8x128xf32>
    %245 = arith.addf %241, %244 : vector<8x128xf32>
    %c3_139 = arith.constant 3 : index
    %c0_140 = arith.constant 0 : index
    %c0_141 = arith.constant 0 : index
    %246 = vector.load %arg3[%c3_139, %c0_140, %c0_141] : memref<5x72x128xbf16, #tpu.memory_space<vmem>>, vector<1x72x128xbf16>
    %247 = vector.shape_cast %246 : vector<1x72x128xbf16> to vector<72x128xbf16>
    %cst_142 = arith.constant dense<0.000000e+00> : vector<8x128xf32>
    %248 = tpu.matmul %227, %247, %cst_142 {dimension_numbers = #tpu.dot_dimension_numbers<[1], [0], [0], [1], [0, 0, 1, 1], [], []>} : vector<8x72xbf16>, vector<72x128xbf16>, vector<8x128xf32> -> vector<8x128xf32>
    %249 = arith.addf %245, %248 : vector<8x128xf32>
    %c4_143 = arith.constant 4 : index
    %c0_144 = arith.constant 0 : index
    %c0_145 = arith.constant 0 : index
    %250 = vector.load %arg3[%c4_143, %c0_144, %c0_145] : memref<5x72x128xbf16, #tpu.memory_space<vmem>>, vector<1x72x128xbf16>
    %251 = vector.shape_cast %250 : vector<1x72x128xbf16> to vector<72x128xbf16>
    %cst_146 = arith.constant dense<0.000000e+00> : vector<8x128xf32>
    %252 = tpu.matmul %230, %251, %cst_146 {dimension_numbers = #tpu.dot_dimension_numbers<[1], [0], [0], [1], [0, 0, 1, 1], [], []>} : vector<8x72xbf16>, vector<72x128xbf16>, vector<8x128xf32> -> vector<8x128xf32>
    %253 = arith.addf %249, %252 : vector<8x128xf32>
    %254 = vector.broadcast %234 : vector<1x128xf32> to vector<8x128xf32>
    %255 = arith.addf %253, %254 : vector<8x128xf32>
    %256 = vector.shape_cast %255 : vector<8x128xf32> to vector<2x4x128xf32>
    %c0_147 = arith.constant 0 : index
    %c0_148 = arith.constant 0 : index
    %c0_149 = arith.constant 0 : index
    %257 = vector.load %arg3[%c0_147, %c0_148, %c0_149] : memref<5x72x128xbf16, #tpu.memory_space<vmem>>, vector<1x72x128xbf16>
    %258 = vector.shape_cast %257 : vector<1x72x128xbf16> to vector<72x128xbf16>
    %cst_150 = arith.constant dense<0.000000e+00> : vector<8x128xf32>
    %259 = tpu.matmul %221, %258, %cst_150 {dimension_numbers = #tpu.dot_dimension_numbers<[1], [0], [0], [1], [0, 0, 1, 1], [], []>} : vector<8x72xbf16>, vector<72x128xbf16>, vector<8x128xf32> -> vector<8x128xf32>
    %c1_151 = arith.constant 1 : index
    %c0_152 = arith.constant 0 : index
    %c0_153 = arith.constant 0 : index
    %260 = vector.load %arg3[%c1_151, %c0_152, %c0_153] : memref<5x72x128xbf16, #tpu.memory_space<vmem>>, vector<1x72x128xbf16>
    %261 = vector.shape_cast %260 : vector<1x72x128xbf16> to vector<72x128xbf16>
    %cst_154 = arith.constant dense<0.000000e+00> : vector<8x128xf32>
    %262 = tpu.matmul %224, %261, %cst_154 {dimension_numbers = #tpu.dot_dimension_numbers<[1], [0], [0], [1], [0, 0, 1, 1], [], []>} : vector<8x72xbf16>, vector<72x128xbf16>, vector<8x128xf32> -> vector<8x128xf32>
    %263 = arith.addf %259, %262 : vector<8x128xf32>
    %c2_155 = arith.constant 2 : index
    %c0_156 = arith.constant 0 : index
    %c0_157 = arith.constant 0 : index
    %264 = vector.load %arg3[%c2_155, %c0_156, %c0_157] : memref<5x72x128xbf16, #tpu.memory_space<vmem>>, vector<1x72x128xbf16>
    %265 = vector.shape_cast %264 : vector<1x72x128xbf16> to vector<72x128xbf16>
    %cst_158 = arith.constant dense<0.000000e+00> : vector<8x128xf32>
    %266 = tpu.matmul %227, %265, %cst_158 {dimension_numbers = #tpu.dot_dimension_numbers<[1], [0], [0], [1], [0, 0, 1, 1], [], []>} : vector<8x72xbf16>, vector<72x128xbf16>, vector<8x128xf32> -> vector<8x128xf32>
    %267 = arith.addf %263, %266 : vector<8x128xf32>
    %c3_159 = arith.constant 3 : index
    %c0_160 = arith.constant 0 : index
    %c0_161 = arith.constant 0 : index
    %268 = vector.load %arg3[%c3_159, %c0_160, %c0_161] : memref<5x72x128xbf16, #tpu.memory_space<vmem>>, vector<1x72x128xbf16>
    %269 = vector.shape_cast %268 : vector<1x72x128xbf16> to vector<72x128xbf16>
    %cst_162 = arith.constant dense<0.000000e+00> : vector<8x128xf32>
    %270 = tpu.matmul %230, %269, %cst_162 {dimension_numbers = #tpu.dot_dimension_numbers<[1], [0], [0], [1], [0, 0, 1, 1], [], []>} : vector<8x72xbf16>, vector<72x128xbf16>, vector<8x128xf32> -> vector<8x128xf32>
    %271 = arith.addf %267, %270 : vector<8x128xf32>
    %c4_163 = arith.constant 4 : index
    %c0_164 = arith.constant 0 : index
    %c0_165 = arith.constant 0 : index
    %272 = vector.load %arg3[%c4_163, %c0_164, %c0_165] : memref<5x72x128xbf16, #tpu.memory_space<vmem>>, vector<1x72x128xbf16>
    %273 = vector.shape_cast %272 : vector<1x72x128xbf16> to vector<72x128xbf16>
    %cst_166 = arith.constant dense<0.000000e+00> : vector<8x128xf32>
    %274 = tpu.matmul %233, %273, %cst_166 {dimension_numbers = #tpu.dot_dimension_numbers<[1], [0], [0], [1], [0, 0, 1, 1], [], []>} : vector<8x72xbf16>, vector<72x128xbf16>, vector<8x128xf32> -> vector<8x128xf32>
    %275 = arith.addf %271, %274 : vector<8x128xf32>
    %276 = vector.broadcast %234 : vector<1x128xf32> to vector<8x128xf32>
    %277 = arith.addf %275, %276 : vector<8x128xf32>
    %278 = vector.shape_cast %277 : vector<8x128xf32> to vector<2x4x128xf32>
    %cst_167 = arith.constant dense<0.000000e+00> : vector<2x4xf32>
    %279 = vector.multi_reduction <add>, %256, %cst_167 [2] : vector<2x4x128xf32> to vector<2x4xf32>
    %280 = vector.shape_cast %279 : vector<2x4xf32> to vector<2x4x1xf32>
    %cst_168 = arith.constant dense<0.000000e+00> : vector<2x1xf32>
    %281 = vector.multi_reduction <add>, %280, %cst_168 [1] : vector<2x4x1xf32> to vector<2x1xf32>
    %282 = vector.shape_cast %281 : vector<2x1xf32> to vector<2x1x1xf32>
    %283 = arith.mulf %256, %256 : vector<2x4x128xf32>
    %cst_169 = arith.constant dense<0.000000e+00> : vector<2x4xf32>
    %284 = vector.multi_reduction <add>, %283, %cst_169 [2] : vector<2x4x128xf32> to vector<2x4xf32>
    %285 = vector.shape_cast %284 : vector<2x4xf32> to vector<2x4x1xf32>
    %cst_170 = arith.constant dense<0.000000e+00> : vector<2x1xf32>
    %286 = vector.multi_reduction <add>, %285, %cst_170 [1] : vector<2x4x1xf32> to vector<2x1xf32>
    %287 = vector.shape_cast %286 : vector<2x1xf32> to vector<2x1x1xf32>
    %cst_171 = arith.constant dense<0.000000e+00> : vector<2x4xf32>
    %288 = vector.multi_reduction <add>, %278, %cst_171 [2] : vector<2x4x128xf32> to vector<2x4xf32>
    %289 = vector.shape_cast %288 : vector<2x4xf32> to vector<2x4x1xf32>
    %cst_172 = arith.constant dense<0.000000e+00> : vector<2x1xf32>
    %290 = vector.multi_reduction <add>, %289, %cst_172 [1] : vector<2x4x1xf32> to vector<2x1xf32>
    %291 = vector.shape_cast %290 : vector<2x1xf32> to vector<2x1x1xf32>
    %292 = arith.mulf %278, %278 : vector<2x4x128xf32>
    %cst_173 = arith.constant dense<0.000000e+00> : vector<2x4xf32>
    %293 = vector.multi_reduction <add>, %292, %cst_173 [2] : vector<2x4x128xf32> to vector<2x4xf32>
    %294 = vector.shape_cast %293 : vector<2x4xf32> to vector<2x4x1xf32>
    %cst_174 = arith.constant dense<0.000000e+00> : vector<2x1xf32>
    %295 = vector.multi_reduction <add>, %294, %cst_174 [1] : vector<2x4x1xf32> to vector<2x1xf32>
    %296 = vector.shape_cast %295 : vector<2x1xf32> to vector<2x1x1xf32>
    %297 = arith.addf %282, %291 : vector<2x1x1xf32>
    %298 = arith.addf %287, %296 : vector<2x1x1xf32>
    %cst_175 = arith.constant 1.024000e+03 : f32
    %299 = vector.broadcast %cst_175 : f32 to vector<2x1x1xf32>
    %300 = arith.divf %297, %299 : vector<2x1x1xf32>
    %cst_176 = arith.constant 1.024000e+03 : f32
    %301 = vector.broadcast %cst_176 : f32 to vector<2x1x1xf32>
    %302 = arith.divf %298, %301 : vector<2x1x1xf32>
    %303 = arith.mulf %300, %300 : vector<2x1x1xf32>
    %304 = arith.subf %302, %303 : vector<2x1x1xf32>
    %cst_177 = arith.constant 0.000000e+00 : f32
    %305 = vector.broadcast %cst_177 : f32 to vector<2x1x1xf32>
    %306 = arith.maximumf %304, %305 : vector<2x1x1xf32>
    %cst_178 = arith.constant 9.99999974E-6 : f32
    %307 = vector.broadcast %cst_178 : f32 to vector<2x1x1xf32>
    %308 = arith.addf %306, %307 : vector<2x1x1xf32>
    %309 = math.rsqrt %308 : vector<2x1x1xf32>
    %c1_179 = arith.constant 1 : index
    %c0_180 = arith.constant 0 : index
    %310 = vector.load %arg5[%c1_179, %c0_180] : memref<3x128xf32, #tpu.memory_space<vmem>>, vector<1x128xf32>
    %c2_181 = arith.constant 2 : index
    %c0_182 = arith.constant 0 : index
    %311 = vector.load %arg5[%c2_181, %c0_182] : memref<3x128xf32, #tpu.memory_space<vmem>>, vector<1x128xf32>
    %312 = vector.broadcast %300 : vector<2x1x1xf32> to vector<2x4x128xf32>
    %313 = arith.subf %256, %312 : vector<2x4x128xf32>
    %314 = vector.broadcast %309 : vector<2x1x1xf32> to vector<2x4x128xf32>
    %315 = arith.mulf %313, %314 : vector<2x4x128xf32>
    %316 = vector.shape_cast %310 : vector<1x128xf32> to vector<1x1x128xf32>
    %317 = vector.broadcast %316 : vector<1x1x128xf32> to vector<2x4x128xf32>
    %318 = arith.mulf %315, %317 : vector<2x4x128xf32>
    %319 = vector.shape_cast %311 : vector<1x128xf32> to vector<1x1x128xf32>
    %320 = vector.broadcast %319 : vector<1x1x128xf32> to vector<2x4x128xf32>
    %321 = arith.addf %318, %320 : vector<2x4x128xf32>
    %cst_183 = arith.constant 0.000000e+00 : f32
    %322 = vector.broadcast %cst_183 : f32 to vector<2x4x128xf32>
    %323 = arith.maximumf %321, %322 : vector<2x4x128xf32>
    %324 = vector.broadcast %300 : vector<2x1x1xf32> to vector<2x4x128xf32>
    %325 = arith.subf %278, %324 : vector<2x4x128xf32>
    %326 = vector.broadcast %309 : vector<2x1x1xf32> to vector<2x4x128xf32>
    %327 = arith.mulf %325, %326 : vector<2x4x128xf32>
    %328 = vector.shape_cast %310 : vector<1x128xf32> to vector<1x1x128xf32>
    %329 = vector.broadcast %328 : vector<1x1x128xf32> to vector<2x4x128xf32>
    %330 = arith.mulf %327, %329 : vector<2x4x128xf32>
    %331 = vector.shape_cast %311 : vector<1x128xf32> to vector<1x1x128xf32>
    %332 = vector.broadcast %331 : vector<1x1x128xf32> to vector<2x4x128xf32>
    %333 = arith.addf %330, %332 : vector<2x4x128xf32>
    %cst_184 = arith.constant 0.000000e+00 : f32
    %334 = vector.broadcast %cst_184 : f32 to vector<2x4x128xf32>
    %335 = arith.maximumf %333, %334 : vector<2x4x128xf32>
    %336 = arith.maximumf %323, %335 : vector<2x4x128xf32>
    %337 = vector.extract_strided_slice %336 {offsets = [0, 0, 0], sizes = [2, 4, 64], strides = [1, 1, 1]} : vector<2x4x128xf32> to vector<2x4x64xf32>
    %338 = vector.extract_strided_slice %336 {offsets = [0, 0, 64], sizes = [2, 4, 64], strides = [1, 1, 1]} : vector<2x4x128xf32> to vector<2x4x64xf32>
    %339 = arith.maximumf %337, %338 : vector<2x4x64xf32>
    %340 = vector.extract_strided_slice %339 {offsets = [0, 0, 0], sizes = [2, 1, 64], strides = [1, 1, 1]} : vector<2x4x64xf32> to vector<2x1x64xf32>
    %341 = vector.shape_cast %340 : vector<2x1x64xf32> to vector<2x64xf32>
    %342 = arith.truncf %341 : vector<2x64xf32> to vector<2x64xbf16>
    %c0_185 = arith.constant 0 : index
    %c0_186 = arith.constant 0 : index
    %343 = vector.load %arg6[%c0_185, %c0_186] : memref<256x128xbf16, #tpu.memory_space<vmem>>, vector<64x128xbf16>
    %cst_187 = arith.constant dense<0.000000e+00> : vector<2x128xf32>
    %344 = tpu.matmul %342, %343, %cst_187 {dimension_numbers = #tpu.dot_dimension_numbers<[1], [0], [0], [1], [0, 0, 1, 1], [], []>} : vector<2x64xbf16>, vector<64x128xbf16>, vector<2x128xf32> -> vector<2x128xf32>
    %345 = vector.extract_strided_slice %339 {offsets = [0, 1, 0], sizes = [2, 1, 64], strides = [1, 1, 1]} : vector<2x4x64xf32> to vector<2x1x64xf32>
    %346 = vector.shape_cast %345 : vector<2x1x64xf32> to vector<2x64xf32>
    %347 = arith.truncf %346 : vector<2x64xf32> to vector<2x64xbf16>
    %c64 = arith.constant 64 : index
    %c0_188 = arith.constant 0 : index
    %348 = vector.load %arg6[%c64, %c0_188] : memref<256x128xbf16, #tpu.memory_space<vmem>>, vector<64x128xbf16>
    %cst_189 = arith.constant dense<0.000000e+00> : vector<2x128xf32>
    %349 = tpu.matmul %347, %348, %cst_189 {dimension_numbers = #tpu.dot_dimension_numbers<[1], [0], [0], [1], [0, 0, 1, 1], [], []>} : vector<2x64xbf16>, vector<64x128xbf16>, vector<2x128xf32> -> vector<2x128xf32>
    %350 = arith.addf %344, %349 : vector<2x128xf32>
    %351 = vector.extract_strided_slice %339 {offsets = [0, 2, 0], sizes = [2, 1, 64], strides = [1, 1, 1]} : vector<2x4x64xf32> to vector<2x1x64xf32>
    %352 = vector.shape_cast %351 : vector<2x1x64xf32> to vector<2x64xf32>
    %353 = arith.truncf %352 : vector<2x64xf32> to vector<2x64xbf16>
    %c128 = arith.constant 128 : index
    %c0_190 = arith.constant 0 : index
    %354 = vector.load %arg6[%c128, %c0_190] : memref<256x128xbf16, #tpu.memory_space<vmem>>, vector<64x128xbf16>
    %cst_191 = arith.constant dense<0.000000e+00> : vector<2x128xf32>
    %355 = tpu.matmul %353, %354, %cst_191 {dimension_numbers = #tpu.dot_dimension_numbers<[1], [0], [0], [1], [0, 0, 1, 1], [], []>} : vector<2x64xbf16>, vector<64x128xbf16>, vector<2x128xf32> -> vector<2x128xf32>
    %356 = arith.addf %350, %355 : vector<2x128xf32>
    %357 = vector.extract_strided_slice %339 {offsets = [0, 3, 0], sizes = [2, 1, 64], strides = [1, 1, 1]} : vector<2x4x64xf32> to vector<2x1x64xf32>
    %358 = vector.shape_cast %357 : vector<2x1x64xf32> to vector<2x64xf32>
    %359 = arith.truncf %358 : vector<2x64xf32> to vector<2x64xbf16>
    %c192 = arith.constant 192 : index
    %c0_192 = arith.constant 0 : index
    %360 = vector.load %arg6[%c192, %c0_192] : memref<256x128xbf16, #tpu.memory_space<vmem>>, vector<64x128xbf16>
    %cst_193 = arith.constant dense<0.000000e+00> : vector<2x128xf32>
    %361 = tpu.matmul %359, %360, %cst_193 {dimension_numbers = #tpu.dot_dimension_numbers<[1], [0], [0], [1], [0, 0, 1, 1], [], []>} : vector<2x64xbf16>, vector<64x128xbf16>, vector<2x128xf32> -> vector<2x128xf32>
    %362 = arith.addf %356, %361 : vector<2x128xf32>
    %c0_194 = arith.constant 0 : index
    %c0_195 = arith.constant 0 : index
    %363 = vector.load %arg9[%c0_194, %c0_195] : memref<3x128xf32, #tpu.memory_space<vmem>>, vector<1x128xf32>
    %364 = vector.broadcast %363 : vector<1x128xf32> to vector<2x128xf32>
    %365 = arith.addf %362, %364 : vector<2x128xf32>
    %cst_196 = arith.constant 0.000000e+00 : f32
    %366 = vector.broadcast %cst_196 : f32 to vector<2x128xf32>
    %367 = arith.maximumf %365, %366 : vector<2x128xf32>
    %368 = arith.truncf %367 : vector<2x128xf32> to vector<2x128xbf16>
    %c0_197 = arith.constant 0 : index
    %c0_198 = arith.constant 0 : index
    %369 = vector.load %arg7[%c0_197, %c0_198] : memref<128x128xbf16, #tpu.memory_space<vmem>>, vector<128x128xbf16>
    %cst_199 = arith.constant dense<0.000000e+00> : vector<2x128xf32>
    %370 = tpu.matmul %368, %369, %cst_199 {dimension_numbers = #tpu.dot_dimension_numbers<[1], [0], [0], [1], [0, 0, 1, 1], [], []>} : vector<2x128xbf16>, vector<128x128xbf16>, vector<2x128xf32> -> vector<2x128xf32>
    %c1_200 = arith.constant 1 : index
    %c0_201 = arith.constant 0 : index
    %371 = vector.load %arg9[%c1_200, %c0_201] : memref<3x128xf32, #tpu.memory_space<vmem>>, vector<1x128xf32>
    %372 = vector.broadcast %371 : vector<1x128xf32> to vector<2x128xf32>
    %373 = arith.addf %370, %372 : vector<2x128xf32>
    %cst_202 = arith.constant 0.000000e+00 : f32
    %374 = vector.broadcast %cst_202 : f32 to vector<2x128xf32>
    %375 = arith.maximumf %373, %374 : vector<2x128xf32>
    %376 = arith.truncf %375 : vector<2x128xf32> to vector<2x128xbf16>
    %c0_203 = arith.constant 0 : index
    %c0_204 = arith.constant 0 : index
    %377 = vector.load %arg8[%c0_203, %c0_204] : memref<128x128xbf16, #tpu.memory_space<vmem>>, vector<128x128xbf16>
    %cst_205 = arith.constant dense<0.000000e+00> : vector<2x128xf32>
    %378 = tpu.matmul %376, %377, %cst_205 {dimension_numbers = #tpu.dot_dimension_numbers<[1], [0], [0], [1], [0, 0, 1, 1], [], []>} : vector<2x128xbf16>, vector<128x128xbf16>, vector<2x128xf32> -> vector<2x128xf32>
    %c2_206 = arith.constant 2 : index
    %c0_207 = arith.constant 0 : index
    %379 = vector.load %arg9[%c2_206, %c0_207] : memref<3x128xf32, #tpu.memory_space<vmem>>, vector<1x128xf32>
    %380 = vector.broadcast %379 : vector<1x128xf32> to vector<2x128xf32>
    %381 = arith.addf %378, %380 : vector<2x128xf32>
    %c0_208 = arith.constant 0 : index
    %c0_209 = arith.constant 0 : index
    %382 = vector.load %arg10[%c0_208, %c0_209] : memref<2x128xf32, #tpu.memory_space<vmem>>, vector<2x128xf32>
    tpu.vector_store %arg10[%c0_208, %c0_209], %381 {strides = array<i32>} : memref<2x128xf32, #tpu.memory_space<vmem>>, vector<2x128xf32>,
    return
  }
  func.func @transform_0(%arg0: i32) -> (i32, i32, i32) {
    %c0_i32 = arith.constant 0 : i32
    %c0_i32_0 = arith.constant 0 : i32
    %c0_i32_1 = arith.constant 0 : i32
    return %c0_i32, %arg0, %c0_i32_0 : i32, i32, i32
  }
  func.func @transform_1(%arg0: i32) -> (i32, i32, i32) {
    %c0_i32 = arith.constant 0 : i32
    %c0_i32_0 = arith.constant 0 : i32
    %c0_i32_1 = arith.constant 0 : i32
    %c0_i32_2 = arith.constant 0 : i32
    return %c0_i32, %c0_i32_0, %c0_i32_1 : i32, i32, i32
  }
  func.func @transform_2(%arg0: i32) -> (i32, i32, i32) {
    %c0_i32 = arith.constant 0 : i32
    %c0_i32_0 = arith.constant 0 : i32
    %c0_i32_1 = arith.constant 0 : i32
    %c0_i32_2 = arith.constant 0 : i32
    return %c0_i32, %c0_i32_0, %c0_i32_1 : i32, i32, i32
  }
  func.func @transform_3(%arg0: i32) -> (i32, i32) {
    %c0_i32 = arith.constant 0 : i32
    %c0_i32_0 = arith.constant 0 : i32
    %c0_i32_1 = arith.constant 0 : i32
    return %c0_i32, %c0_i32_0 : i32, i32
  }
  func.func @transform_4(%arg0: i32) -> (i32, i32) {
    %c0_i32 = arith.constant 0 : i32
    %c0_i32_0 = arith.constant 0 : i32
    %c0_i32_1 = arith.constant 0 : i32
    return %c0_i32, %c0_i32_0 : i32, i32
  }
  func.func @transform_5(%arg0: i32) -> (i32, i32) {
    %c0_i32 = arith.constant 0 : i32
    %c0_i32_0 = arith.constant 0 : i32
    %c0_i32_1 = arith.constant 0 : i32
    return %c0_i32, %c0_i32_0 : i32, i32
  }
  func.func @transform_6(%arg0: i32) -> (i32, i32) {
    %c0_i32 = arith.constant 0 : i32
    %c0_i32_0 = arith.constant 0 : i32
    %c0_i32_1 = arith.constant 0 : i32
    return %c0_i32, %c0_i32_0 : i32, i32
  }
  func.func @transform_7(%arg0: i32) -> (i32, i32) {
    %c0_i32 = arith.constant 0 : i32
    %c0_i32_0 = arith.constant 0 : i32
    %c0_i32_1 = arith.constant 0 : i32
    return %c0_i32, %c0_i32_0 : i32, i32
  }
  func.func @transform_8(%arg0: i32) -> (i32, i32) {
    %c0_i32 = arith.constant 0 : i32
    %c0_i32_0 = arith.constant 0 : i32
    %c0_i32_1 = arith.constant 0 : i32
    return %c0_i32, %c0_i32_0 : i32, i32
  }
  func.func @transform_9(%arg0: i32) -> (i32, i32) {
    %c0_i32 = arith.constant 0 : i32
    %c0_i32_0 = arith.constant 0 : i32
    return %arg0, %c0_i32 : i32, i32
  }
}

</mosaic_0001>

<bundles_post_ra>
// kernel: simple_cnn_mnist_forward.1
= control target key start
LH: loop header
LB: loop body
LE: loop exit
PB: predicated region body
PF: predicated region fallthrough
CT: control target
= control target key end

     0   :  { %vm94_vm0 = vcmask 1045504   ;;  %v4454_v2 = vmov 0   ;;  %vm90_vm1 = vcmask 228352   ;;  %s5900_s0 = inlined_call_operand.vmem [shape: bf16[8,12,28], index: 0, kind: input, shape index: {}]   ;;  %s5901_s1 = inlined_call_operand.vmem [shape: bf16[5,28,144], index: 1, kind: input, shape index: {}]   ;;  %s5902_s2 = inlined_call_operand.vmem [shape: bf16[5,72,128], index: 2, kind: input, shape index: {}]   ;;  %s5903_s3 = inlined_call_operand.vmem [shape: f32[3,144], index: 3, kind: input, shape index: {}]   ;;  %s5904_s4 = inlined_call_operand.vmem [shape: f32[3,128], index: 4, kind: input, shape index: {}]   ;;  %s5905_s5 = inlined_call_operand.vmem [shape: bf16[256,128], index: 5, kind: input, shape index: {}]   ;;  %s5906_s6 = inlined_call_operand.vmem [shape: bf16[128,128], index: 6, kind: input, shape index: {}]   ;;  %s5907_s7 = inlined_call_operand.vmem [shape: bf16[128,128], index: 7, kind: input, shape index: {}]   ;;  %s5908_s8 = inlined_call_operand.vmem [shape: f32[3,128], index: 8, kind: input, shape index: {}]   ;;  %s5909_s9 = inlined_call_operand.hbm [shape: f32[2,128], index: 9, kind: output, shape index: {}]  }
   0x1   :  { %v4514_v0 = vld [vmem:[%s5901_s1 + $0x24] ss:$8 sps:$4 sm:$0xff]   ;;  %v4519_v1 = vld [vmem:[%s5901_s1 + $0x20] ss:$8 sps:$4 sm:$0xff]   ;;  %133 = vmatprep.mubr.bf16.mxu0 %v4454_v2  ;;  %555 = vmatprep.mubr.bf16.mxu1 %v4454_v2  ;;  %v4553_v8 = vld [vmem:[%s5900_s0 + $0x10] sm:$0x3f]  }
   0x2   :  { %101 = vmatprep.subr.bf16.mxu0 %v4514_v0  ;;  %523 = vmatprep.subr.bf16.mxu1 %v4514_v0  ;;  %v4528_v3 = vld [vmem:[%s5901_s1 + $0x34] ss:$8 sps:$4 sm:$0x3f]   ;;  %v4332_v4 = vld [vmem:[%s5901_s1 + $0x30] ss:$8 sps:$4 sm:$0x3f]  }
   0x3   :  { %102 = vmatpush1.bf16.msra.mxu0 %v4519_v1  ;;  %524 = vmatpush1.bf16.msra.mxu1 %v4519_v1  ;;  %v4540_v5 = vsel %vm94_vm0, %v4332_v4, 0  ;;  %v4333_v6 = vld [vmem:[%s5900_s0 + $0x8] sm:$0x3f]   ;;  %v4565_v10 = vld [vmem:[%s5901_s1 + $0x14] ss:$8 sps:$4 sm:$0x3f]  }
   0x4   :  { %3736 = vmatprep.subr.msk.bf16.mxu0 %vm94_vm0, %v4528_v3  ;;  %3778 = vmatprep.subr.msk.bf16.mxu1 %vm94_vm0, %v4528_v3  ;;  %v4548_v7 = vld [vmem:[%s5901_s1 + $0x4] ss:$8 sps:$4 sm:$0xff]   ;;  %v4558_v9 = vld [vmem:[%s5901_s1] ss:$8 sps:$4 sm:$0xff]   ;;  %v4350_v24 = vld [vmem:[%s5900_s0 + $0x18] sm:$0x3f]  }
   0x5   :  { %v4340_v11 = vld [vmem:[%s5901_s1 + $0x10] ss:$8 sps:$4 sm:$0x3f]   ;;  %v4587_v13 = vld [vmem:[%s5901_s1 + $0x44] ss:$8 sps:$4 sm:$0xff]  }
   0x6   :  { %v4580_v12 = vsel %vm94_vm0, %v4340_v11, 0  ;;  %v4341_v14 = vld [vmem:[%s5900_s0] sm:$0x3f]   ;;  %v4606_v16 = vld [vmem:[%s5901_s1 + $0x54] ss:$8 sps:$4 sm:$0x3f]  }
   0x7   :  { %104 = vmatpush1.bf16.msra.mxu0 %v4540_v5  ;;  %526 = vmatpush1.bf16.msra.mxu1 %v4540_v5  ;;  %v4601_v15 = vld [vmem:[%s5901_s1 + $0x40] ss:$8 sps:$4 sm:$0xff]   ;;  %v4347_v17 = vld [vmem:[%s5901_s1 + $0x50] ss:$8 sps:$4 sm:$0x3f]  }
   0x8   :  { %176 = vmatprep.subr.bf16.mxu0 %v4548_v7  ;;  %566 = vmatprep.subr.bf16.mxu1 %v4548_v7  ;;  %v4354_v18 = vld [vmem:[%s5901_s1 + $0x70] ss:$8 sps:$4 sm:$0x3f]   ;;  %v4622_v20 = vsel %vm94_vm0, %v4347_v17, 0  ;;  %v4627_v21 = vld [vmem:[%s5901_s1 + $0x64] ss:$8 sps:$4 sm:$0xff]  }
   0x9   :  { %v4361_v19 = vld [vmem:[%s5901_s1 + $0x90] ss:$8 sps:$4 sm:$0x3f]   ;;  %v4630_v22 = vsel %vm94_vm0, %v4354_v18, 0  ;;  %v4651_v25 = vld [vmem:[%s5901_s1 + $0x60] ss:$8 sps:$4 sm:$0xff]  }
   0xa   :  { %3737 = vmatmul.mubr.msk.bf16.vlgmr.msra.gmra.mrb[0].mxu0 %vm90_vm1, %v4333_v6  ;;  %3779 = vmatmul.mubr.msk.bf16.vlgmr.msra.gmra.mrb[0].mxu1 %vm90_vm1, %v4553_v8  ;;  %v4633_v23 = vsel %vm94_vm0, %v4361_v19, 0  ;;  %v4656_v26 = vld [vmem:[%s5901_s1 + $0x74] ss:$8 sps:$4 sm:$0x3f]   ;;  %v4664_v27 = vld [vmem:[%s5901_s1 + $0x84] ss:$8 sps:$4 sm:$0xff]  }
   0xb   :  { %177 = vmatpush1.bf16.msra.mxu0 %v4558_v9  ;;  %567 = vmatpush1.bf16.msra.mxu1 %v4558_v9  ;;  %v4357_v28 = vld [vmem:[%s5900_s0 + $0x20] sm:$0x3f]   ;;  %v4689_v30 = vld [vmem:[%s5901_s1 + $0x94] ss:$8 sps:$4 sm:$0x3f]  }
   0xc   :  { %3743 = vmatprep.subr.msk.bf16.mxu0 %vm94_vm0, %v4565_v10  ;;  %3780 = vmatprep.subr.msk.bf16.mxu1 %vm94_vm0, %v4565_v10  ;;  %v4684_v29 = vld [vmem:[%s5901_s1 + $0x80] ss:$8 sps:$4 sm:$0xff]  }
   0xd   :  { %208 = vmatprep.mubr.bf16.mxu0 %v4454_v2  ;;  %598 = vmatprep.mubr.bf16.mxu1 %v4454_v2  ;;  %v4362_v31 = vld [vmem:[%s5900_s0 + $0x28] sm:$0x3f]  }
   0xf   :  { %179 = vmatpush1.bf16.msra.mxu0 %v4580_v12  ;;  %569 = vmatpush1.bf16.msra.mxu1 %v4580_v12 }
  0x10   :  { %256 = vmatprep.subr.bf16.mxu0 %v4587_v13  ;;  %609 = vmatprep.subr.bf16.mxu1 %v4587_v13 }
  0x16   :  { %3744 = vmatmul.mubr.msk.bf16.vlgmr.msra.gmra.mrb[0].mxu0 %vm90_vm1, %v4341_v14  ;;  %3781 = vmatmul.mubr.msk.bf16.vlgmr.msra.gmra.mrb[0].mxu1 %vm90_vm1, %v4333_v6 }
  0x17   :  { %257 = vmatpush1.bf16.msra.mxu0 %v4601_v15  ;;  %610 = vmatpush1.bf16.msra.mxu1 %v4601_v15 }
  0x18   :  { %3754 = vmatprep.subr.msk.bf16.mxu0 %vm94_vm0, %v4606_v16  ;;  %3782 = vmatprep.subr.msk.bf16.mxu1 %vm94_vm0, %v4606_v16 }
  0x19   :  { %288 = vmatprep.mubr.bf16.mxu0 %v4454_v2  ;;  %641 = vmatprep.mubr.bf16.mxu1 %v4454_v2 }
  0x1b   :  { %259 = vmatpush1.bf16.msra.mxu0 %v4622_v20  ;;  %612 = vmatpush1.bf16.msra.mxu1 %v4622_v20 }
  0x1c   :  { %340 = vmatprep.subr.bf16.mxu0 %v4627_v21  ;;  %656 = vmatprep.subr.bf16.mxu1 %v4627_v21 }
  0x22   :  { %3755 = vmatmul.mubr.msk.bf16.vlgmr.msra.gmra.mrb[0].mxu0 %vm90_vm1, %v4553_v8  ;;  %3783 = vmatmul.mubr.msk.bf16.vlgmr.msra.gmra.mrb[0].mxu1 %vm90_vm1, %v4350_v24 }
  0x23   :  { %341 = vmatpush1.bf16.msra.mxu0 %v4651_v25  ;;  %657 = vmatpush1.bf16.msra.mxu1 %v4651_v25 }
  0x24   :  { %3765 = vmatprep.subr.msk.bf16.mxu0 %vm94_vm0, %v4656_v26  ;;  %3784 = vmatprep.subr.msk.bf16.mxu1 %vm94_vm0, %v4656_v26 }
  0x25   :  { %372 = vmatprep.mubr.bf16.mxu0 %v4454_v2  ;;  %688 = vmatprep.mubr.bf16.mxu1 %v4454_v2 }
  0x27   :  { %343 = vmatpush1.bf16.msra.mxu0 %v4630_v22  ;;  %659 = vmatpush1.bf16.msra.mxu1 %v4630_v22 }
  0x28   :  { %424 = vmatprep.subr.bf16.mxu0 %v4664_v27  ;;  %711 = vmatprep.subr.bf16.mxu1 %v4664_v27 }
  0x2e   :  { %3766 = vmatmul.mubr.msk.bf16.vlgmr.msra.gmra.mrb[0].mxu0 %vm90_vm1, %v4350_v24  ;;  %3785 = vmatmul.mubr.msk.bf16.vlgmr.msra.gmra.mrb[0].mxu1 %vm90_vm1, %v4357_v28 }
  0x2f   :  { %425 = vmatpush1.bf16.msra.mxu0 %v4684_v29  ;;  %712 = vmatpush1.bf16.msra.mxu1 %v4684_v29 }
  0x30   :  { %3776 = vmatprep.subr.msk.bf16.mxu0 %vm94_vm0, %v4689_v30  ;;  %3787 = vmatprep.subr.msk.bf16.mxu1 %vm94_vm0, %v4689_v30 }
  0x31   :  { %456 = vmatprep.mubr.bf16.mxu0 %v4454_v2  ;;  %743 = vmatprep.mubr.bf16.mxu1 %v4454_v2 }
  0x33   :  { %427 = vmatpush1.bf16.msra.mxu0 %v4633_v23  ;;  %714 = vmatpush1.bf16.msra.mxu1 %v4633_v23 }
  0x34   :  { %799 = vmatprep.subr.bf16.mxu0 %v4514_v0  ;;  %1075 = vmatprep.subr.bf16.mxu1 %v4514_v0 }
  0x3a   :  { %3777 = vmatmul.mubr.msk.bf16.vlgmr.msra.gmra.mrb[0].mxu0 %vm90_vm1, %v4357_v28  ;;  %3788 = vmatmul.mubr.msk.bf16.vlgmr.msra.gmra.mrb[0].mxu1 %vm90_vm1, %v4362_v31 }
  0x3b   :  { %800 = vmatpush1.bf16.msra.mxu0 %v4519_v1  ;;  %1076 = vmatpush1.bf16.msra.mxu1 %v4519_v1 }
  0x3c   :  { %3789 = vmatprep.subr.msk.bf16.mxu0 %vm94_vm0, %v4528_v3  ;;  %3800 = vmatprep.subr.msk.bf16.mxu1 %vm94_vm0, %v4528_v3 }
  0x3d   :  { %14 = vsyncpa [#allocation3], 0  ;;  %831 = vmatprep.mubr.bf16.mxu0 %v4454_v2  ;;  %1107 = vmatprep.mubr.bf16.mxu1 %v4454_v2  ;;  %v4363_v32 = vld [vmem:[%s5900_s0 + $0x30] sm:$0x3f]   ;;  %v4364_v33 = vld [vmem:[%s5900_s0 + $0x38] sm:$0x3f]   ;;  %v472_v34 = vlaneseq }
  0x3e   :  { %v3811_v36 = vld [vmem:[%s5903_s3 + $0x1] ss:$4 sm:$0x3]  ;;  %v3812_v37 = vld [vmem:[%s5903_s3 + $0x2] ss:$4 sm:$0x3] }
  0x3f   :  { %802 = vmatpush1.bf16.msra.mxu0 %v4540_v5  ;;  %1078 = vmatpush1.bf16.msra.mxu1 %v4540_v5  ;;  %v473_v35 = vshrl.u32 %v472_v34, 7  ;;  %v57_v46 = vld [vmem:[%s5903_s3] ss:$4 sm:$0x3]  ;;  %v4455_v47 = vmov 1983009808  }
  0x40   :  { %842 = vmatprep.subr.bf16.mxu0 %v4548_v7  ;;  %1118 = vmatprep.subr.bf16.mxu1 %v4548_v7  ;;  %v493_v48 = vunpack.c.l.s4 %v4455_v47  ;;  %vm1390_vm2 = vcmask 128000   ;;  %s4456_s3 = smov 56   ;;  %vm4458_vm3 = vmmov 0   ;;  %vm2414_vm4 = vcmask 1043456   ;;  %s4459_s23 = smov 64  }
  0x41   :  { %v474_v38 = vsub.s32 0, %v473_v35  ;;  %v478_v41 = vsub.s32 1, %v473_v35  ;;  %vm2075_vm5 = vcmask 457728   ;;  %vm2250_vm6 = vcmask 1040384  }
  0x42   :  { %3790 = vmatmul.mubr.msk.bf16.vlgmr.msra.gmra.mrb[4].mxu0 %vm90_vm1, %v4350_v24  ;;  %3801 = vmatmul.mubr.msk.bf16.vlgmr.msra.gmra.mrb[4].mxu1 %vm90_vm1, %v4357_v28  ;;  %v494_v50 = vunpack.c.0.s8 %v493_v48  ;;  %vm2251_vm7 = vcmask 1042434   ;;  %vm2410_vm8 = vcmask 588800   ;;  %vm2253_vm10 = vcmask 1044484  }
  0x43   :  { %843 = vmatpush1.bf16.msra.mxu0 %v4558_v9  ;;  %1119 = vmatpush1.bf16.msra.mxu1 %v4558_v9  ;;  %v4791_v39 = vrot.slane %v3811_v36, %v474_v38  ;;  %v4793_v40 = vrot.slane %v3812_v37, %v474_v38  ;;  %v4795_v42 = vrot.slane %v3811_v36, %v478_v41  ;;  %vm2252_vm9 = vmor %vm2250_vm6, %vm2251_vm7  ;;  %vm2255_vm11 = vcmask 1046534  }
  0x44   :  { %3791 = vmatprep.subr.msk.bf16.mxu0 %vm94_vm0, %v4565_v10  ;;  %3802 = vmatprep.subr.msk.bf16.mxu1 %vm94_vm0, %v4565_v10  ;;  %v4797_v43 = vrot.slane %v3812_v37, %v478_v41  ;;  %v4806_v49 = vrot.slane %v57_v46, %v474_v38  ;;  %v4808_v51 = vrot.slane %v57_v46, %v478_v41  ;;  %vm5442_vm12 = vmor %vm2252_vm9, %vm2253_vm10  ;;  %vm3169_vm14 = vcmask 1041409  }
  0x45   :  { %874 = vmatprep.mubr.bf16.mxu0 %v4454_v2  ;;  %1150 = vmatprep.mubr.bf16.mxu1 %v4454_v2  ;;  %v4812_v58 = vsub.s32 %v494_v50, %v473_v35  ;;  %vm5469_vm13 = vmor %vm5442_vm12, %vm2255_vm11  ;;  %vm3196_vm15 = vcmask 523264  }
  0x47   :  { %845 = vmatpush1.bf16.msra.mxu0 %v4580_v12  ;;  %1121 = vmatpush1.bf16.msra.mxu1 %v4580_v12 }
  0x48   :  { %885 = vmatprep.subr.bf16.mxu0 %v4587_v13  ;;  %1161 = vmatprep.subr.bf16.mxu1 %v4587_v13 }
  0x4e   :  { %3792 = vmatmul.mubr.msk.bf16.vlgmr.msra.gmra.mrb[4].mxu0 %vm90_vm1, %v4553_v8  ;;  %3803 = vmatmul.mubr.msk.bf16.vlgmr.msra.gmra.mrb[4].mxu1 %vm90_vm1, %v4350_v24 }
  0x4f   :  { %886 = vmatpush1.bf16.msra.mxu0 %v4601_v15  ;;  %1162 = vmatpush1.bf16.msra.mxu1 %v4601_v15 }
  0x50   :  { %3793 = vmatprep.subr.msk.bf16.mxu0 %vm94_vm0, %v4606_v16  ;;  %3804 = vmatprep.subr.msk.bf16.mxu1 %vm94_vm0, %v4606_v16 }
  0x51   :  { %917 = vmatprep.mubr.bf16.mxu0 %v4454_v2  ;;  %1193 = vmatprep.mubr.bf16.mxu1 %v4454_v2 }
  0x53   :  { %888 = vmatpush1.bf16.msra.mxu0 %v4622_v20  ;;  %1164 = vmatpush1.bf16.msra.mxu1 %v4622_v20 }
  0x54   :  { %932 = vmatprep.subr.bf16.mxu0 %v4627_v21  ;;  %1208 = vmatprep.subr.bf16.mxu1 %v4627_v21 }
  0x5a   :  { %3794 = vmatmul.mubr.msk.bf16.vlgmr.msra.gmra.mrb[4].mxu0 %vm90_vm1, %v4357_v28  ;;  %3805 = vmatmul.mubr.msk.bf16.vlgmr.msra.gmra.mrb[4].mxu1 %vm90_vm1, %v4362_v31 }
  0x5b   :  { %933 = vmatpush1.bf16.msra.mxu0 %v4651_v25  ;;  %1209 = vmatpush1.bf16.msra.mxu1 %v4651_v25 }
  0x5c   :  { %3795 = vmatprep.subr.msk.bf16.mxu0 %vm94_vm0, %v4656_v26  ;;  %3806 = vmatprep.subr.msk.bf16.mxu1 %vm94_vm0, %v4656_v26 }
  0x5d   :  { %964 = vmatprep.mubr.bf16.mxu0 %v4454_v2  ;;  %1240 = vmatprep.mubr.bf16.mxu1 %v4454_v2 }
  0x5f   :  { %935 = vmatpush1.bf16.msra.mxu0 %v4630_v22  ;;  %1211 = vmatpush1.bf16.msra.mxu1 %v4630_v22 }
  0x60   :  { %987 = vmatprep.subr.bf16.mxu0 %v4664_v27  ;;  %1263 = vmatprep.subr.bf16.mxu1 %v4664_v27 }
  0x66   :  { %3796 = vmatmul.mubr.msk.bf16.vlgmr.msra.gmra.mrb[4].mxu0 %vm90_vm1, %v4362_v31  ;;  %3807 = vmatmul.mubr.msk.bf16.vlgmr.msra.gmra.mrb[4].mxu1 %vm90_vm1, %v4363_v32 }
  0x67   :  { %988 = vmatpush1.bf16.msra.mxu0 %v4684_v29  ;;  %1264 = vmatpush1.bf16.msra.mxu1 %v4684_v29 }
  0x68   :  { %3798 = vmatprep.subr.msk.bf16.mxu0 %vm94_vm0, %v4689_v30  ;;  %3809 = vmatprep.subr.msk.bf16.mxu1 %vm94_vm0, %v4689_v30 }
  0x69   :  { %1019 = vmatprep.mubr.bf16.mxu0 %v4454_v2  ;;  %1295 = vmatprep.mubr.bf16.mxu1 %v4454_v2 }
  0x6b   :  { %990 = vmatpush1.bf16.msra.mxu0 %v4633_v23  ;;  %1266 = vmatpush1.bf16.msra.mxu1 %v4633_v23 }
  0x72   :  { %3799 = vmatmul.mubr.msk.bf16.vlgmr.msra.gmra.mrb[4].mxu0 %vm90_vm1, %v4363_v32  ;;  %3810 = vmatmul.mubr.msk.bf16.vlgmr.msra.gmra.mrb[4].mxu1 %vm90_vm1, %v4364_v33 }
 0x10d   :  { %v458_v52 = vpop.f32.mrb[0].mxu0  ;;  %v745_v53 = vpop.f32.mrb[0].mxu1 }
 0x10e   :  { %v482_v54 = vadd.f32 %v4806_v49, %v458_v52  ;;  %v758_v55 = vadd.f32 %v745_v53, %v4806_v49  ;;  %v460_v56 = vpop.f32.mrb[1].mxu0  ;;  %v747_v57 = vpop.f32.mrb[1].mxu1 }
 0x10f   :  { %v483_v59 = vadd.f32 %v4808_v51, %v460_v56  ;;  %v759_v60 = vadd.f32 %v747_v57, %v4808_v51  ;;  %v462_v61 = vpop.f32.mrb[2].mxu0  ;;  %v749_v62 = vpop.f32.mrb[2].mxu1 }
 0x110   :  { %v484_v63 = vadd.f32 %v4806_v49, %v462_v61  ;;  %v760_v0 = vadd.f32 %v749_v62, %v4806_v49  ;;  %v464_v1 = vpop.f32.mrb[3].mxu0  ;;  %v751_v2 = vpop.f32.mrb[3].mxu1 }
 0x111   :  { %v490_v3 = vcombine.low %v482_v54, %v483_v59  ;;  %v491_v4 = vcombine.high %v482_v54, %v483_v59  ;;  %v766_v5 = vcombine.low %v758_v55, %v759_v60  ;;  %v767_v6 = vcombine.high %v758_v55, %v759_v60 }
 0x112   :  { %v485_v7 = vadd.f32 %v4808_v51, %v464_v1  ;;  %v761_v8 = vadd.f32 %v751_v2, %v4808_v51 }
 0x113   :  { %v4821_v9 = vrot.slane %v490_v3, %v4812_v58  ;;  %v4824_v10 = vrot.slane %v491_v4, %v4812_v58  ;;  %v4827_v11 = vrot.slane %v766_v5, %v4812_v58  ;;  %v4830_v12 = vrot.slane %v767_v6, %v4812_v58 }
 0x114   :  { %v508_v13 = vcombine.low %v484_v63, %v485_v7  ;;  %v784_v14 = vcombine.low %v760_v0, %v761_v8 }
 0x115   :  { %v4834_v15 = vcombine.high %v4824_v10, %v4824_v10  ;;  %v4838_v16 = vcombine.high %v4830_v12, %v4830_v12  ;;  %v4842_v17 = vcombine.high %v4827_v11, %v4827_v11  ;;  %v1502_v18 = vrot.slane %v4830_v12, %v4812_v58 }
 0x116   :  { %v4847_v19 = vrot.slane %v508_v13, %v4812_v58  ;;  %v4850_v20 = vrot.slane %v784_v14, %v4812_v58  ;;  %v4854_v21 = vcombine.high %v4821_v9, %v4821_v9  ;;  %v1365_v22 = vrot.slane %v4824_v10, %v4812_v58 }
 0x117   :  { %v1488_v23 = vcombine.low %v4827_v11, %v4842_v17  ;;  %v1417_v24 = vmul.f32 %v4834_v15, %v4834_v15  ;;  %v1414_v25 = vmul.f32 %v4821_v9, %v4821_v9  ;;  %v1416_v26 = vmul.f32 %v4824_v10, %v4824_v10 }
 0x118   :  { %5924 = vst [vmem:[#allocation5_spill] sm:$0xff] %v4850_v20  ;;  %v1351_v27 = vcombine.low %v4821_v9, %v4854_v21  ;;  %v4870_v28 = vcombine.high %v4850_v20, %v4850_v20  ;;  %v1505_v29 = vcombine.low %v4838_v16, %v4850_v20  ;;  %v4876_v30 = vcombine.high %v4847_v19, %v4847_v19 }
 0x119   :  { %v1495_v31 = vrot.slane %v1488_v23, %v4812_v58  ;;  %v1368_v32 = vcombine.low %v4834_v15, %v4847_v19  ;;  %v1418_v33 = vmul.f32 %v4847_v19, %v4847_v19  ;;  %v1415_v34 = vmul.f32 %v4854_v21, %v4854_v21 }
 0x11a   :  { %5925 = vst [vmem:[#allocation6_spill] sm:$0xff] %v4870_v28  ;;  %5926 = vst [vmem:[#allocation7_spill] sm:$0xff] %v4876_v30  ;;  %v1358_v35 = vrot.slane %v1351_v27, %v4812_v58  ;;  %v1512_v36 = vrot.slane %v1505_v29, %v4812_v58  ;;  %v1519_v37 = vrot.slane %v4870_v28, %v4812_v58 }
 0x11b   :  { %v1382_v38 = vrot.slane %v4876_v30, %v4812_v58  ;;  %v1503_v41 = vcombine.low %v1495_v31, %v1502_v18  ;;  %v1504_v46 = vcombine.high %v1495_v31, %v1502_v18  ;;  %v1375_v47 = vrot.slane %v1368_v32, %v4812_v58 }
 0x11c   :  { %v1419_v48 = vmul.f32 %v4876_v30, %v4876_v30  ;;  %v1366_v50 = vcombine.low %v1358_v35, %v1365_v22  ;;  %v1367_v52 = vcombine.high %v1358_v35, %v1365_v22  ;;  %v1520_v53 = vcombine.low %v1512_v36, %v1519_v37 }
 0x11d   :  { %v1521_v54 = vcombine.high %v1512_v36, %v1519_v37  ;;  %v1526_v55 = vsel %vm94_vm0, %v1503_v41, 0.0  ;;  %v1527_v56 = vsel %vm1390_vm2, %v1504_v46, 0.0  ;;  %v1383_v57 = vcombine.low %v1375_v47, %v1382_v38 }
 0x11e   :  { %v1384_v59 = vcombine.high %v1375_v47, %v1382_v38  ;;  %v1528_v60 = vadd.f32 %v1527_v56, %v1526_v55  ;;  %v1389_v61 = vsel %vm94_vm0, %v1366_v50, 0.0  ;;  %v1391_v62 = vsel %vm1390_vm2, %v1367_v52, 0.0 }
 0x11f   :  { %v1531_v63 = vsel %vm94_vm0, %v1520_v53, 0.0  ;;  %v1392_v0 = vadd.f32 %v1391_v62, %v1389_v61  ;;  %v1532_v1 = vsel %vm1390_vm2, %v1521_v54, 0.0  ;;  %v1395_v2 = vsel %vm94_vm0, %v1383_v57, 0.0 }
 0x120   :  { %v1396_v3 = vsel %vm1390_vm2, %v1384_v59, 0.0  ;;  %1529 = vadd.xlane.f32.xlu1 %v1528_v60  ;;  %v1533_v4 = vadd.f32 %v1532_v1, %v1531_v63  ;;  %v1443_v5 = vcombine.low %v1417_v24, %v1418_v33  ;;  %v1457_v6 = vrot.slane %v1419_v48, %v4812_v58 }
 0x121   :  { %1393 = vadd.xlane.f32.xlu0 %v1392_v0  ;;  %v1397_v7 = vadd.f32 %v1396_v3, %v1395_v2  ;;  %v1426_v8 = vcombine.low %v1414_v25, %v1415_v34  ;;  %v1553_v13 = vmul.f32 %v4838_v16, %v4838_v16  ;;  %v1554_v14 = vmul.f32 %v4850_v20, %v4850_v20 }
 0x122   :  { %v1450_v18 = vrot.slane %v1443_v5, %v4812_v58  ;;  %v1555_v22 = vmul.f32 %v4870_v28, %v4870_v28  ;;  %v1550_v23 = vmul.f32 %v4827_v11, %v4827_v11  ;;  %v1551_v24 = vmul.f32 %v4842_v17, %v4842_v17 }
 0x123   :  { %v1433_v27 = vrot.slane %v1426_v8, %v4812_v58  ;;  %v1440_v25 = vrot.slane %v1416_v26, %v4812_v58  ;;  %v1579_v29 = vcombine.low %v1553_v13, %v1554_v14  ;;  %v1552_v31 = vmul.f32 %v4830_v12, %v4830_v12 }
 0x124   :  { %1534 = vadd.xlane.f32.xlu1 %v1533_v4  ;;  %v1458_v32 = vcombine.low %v1450_v18, %v1457_v6  ;;  %v1459_v33 = vcombine.high %v1450_v18, %v1457_v6  ;;  %v1593_v34 = vrot.slane %v1555_v22, %v4812_v58  ;;  %v1562_v35 = vcombine.low %v1550_v23, %v1551_v24 }
 0x125   :  { %1398 = vadd.xlane.f32.xlu0 %v1397_v7  ;;  %v1441_v36 = vcombine.low %v1433_v27, %v1440_v25  ;;  %v1442_v37 = vcombine.high %v1433_v27, %v1440_v25  ;;  %v1586_v38 = vrot.slane %v1579_v29, %v4812_v58  ;;  %v1576_v47 = vrot.slane %v1552_v31, %v4812_v58 }
 0x126   :  { %v1469_v41 = vsel %vm94_vm0, %v1458_v32, 0.0  ;;  %v1470_v46 = vsel %vm1390_vm2, %v1459_v33, 0.0  ;;  %v1569_v26 = vrot.slane %v1562_v35, %v4812_v58 }
 0x127   :  { %v1471_v48 = vadd.f32 %v1470_v46, %v1469_v41  ;;  %v1464_v50 = vsel %vm94_vm0, %v1441_v36, 0.0  ;;  %v1465_v52 = vsel %vm1390_vm2, %v1442_v37, 0.0  ;;  %v1594_v53 = vcombine.low %v1586_v38, %v1593_v34 }
 0x128   :  { %v1466_v54 = vadd.f32 %v1465_v52, %v1464_v50  ;;  %v1595_v55 = vcombine.high %v1586_v38, %v1593_v34  ;;  %v1577_v56 = vcombine.low %v1569_v26, %v1576_v47  ;;  %v1578_v57 = vcombine.high %v1569_v26, %v1576_v47 }
 0x129   :  { %1472 = vadd.xlane.f32.xlu1 %v1471_v48  ;;  %v1605_v59 = vsel %vm94_vm0, %v1594_v53, 0.0 }
 0x12a   :  { %1467 = vadd.xlane.f32.xlu0 %v1466_v54  ;;  %v1606_v60 = vsel %vm1390_vm2, %v1595_v55, 0.0  ;;  %v1600_v61 = vsel %vm94_vm0, %v1577_v56, 0.0  ;;  %v1601_v62 = vsel %vm1390_vm2, %v1578_v57, 0.0 }
 0x12b   :  { %v1607_v63 = vadd.f32 %v1606_v60, %v1605_v59  ;;  %v1602_v0 = vadd.f32 %v1601_v62, %v1600_v61 }
 0x12d   :  { %1608 = vadd.xlane.f32.xlu1 %v1607_v63 }
 0x12e   :  { %1603 = vadd.xlane.f32.xlu0 %v1602_v0 }
 0x145   :  { %v1021_v1 = vpop.f32.mrb[4].mxu0  ;;  %v1297_v2 = vpop.f32.mrb[4].mxu1 }
 0x146   :  { %v1034_v3 = vadd.f32 %v1021_v1, %v4806_v49  ;;  %v1310_v4 = vadd.f32 %v1297_v2, %v4806_v49  ;;  %v1023_v5 = vpop.f32.mrb[5].mxu0  ;;  %v1299_v6 = vpop.f32.mrb[5].mxu1 }
 0x147   :  { %v1035_v7 = vadd.f32 %v1023_v5, %v4808_v51  ;;  %v1311_v8 = vadd.f32 %v1299_v6, %v4808_v51  ;;  %v1025_v13 = vpop.f32.mrb[6].mxu0  ;;  %v1301_v14 = vpop.f32.mrb[6].mxu1 }
 0x148   :  { %v1036_v18 = vadd.f32 %v1025_v13, %v4806_v49  ;;  %v1312_v22 = vadd.f32 %v1301_v14, %v4806_v49  ;;  %v1027_v23 = vpop.f32.mrb[7].mxu0  ;;  %v1303_v24 = vpop.f32.mrb[7].mxu1 }
 0x149   :  { %v1042_v27 = vcombine.low %v1034_v3, %v1035_v7  ;;  %v1043_v25 = vcombine.high %v1034_v3, %v1035_v7  ;;  %v1318_v29 = vcombine.low %v1310_v4, %v1311_v8  ;;  %v1319_v31 = vcombine.high %v1310_v4, %v1311_v8 }
 0x14a   :  { %v1037_v32 = vadd.f32 %v1027_v23, %v4808_v51  ;;  %v1313_v33 = vadd.f32 %v1303_v24, %v4808_v51 }
 0x14b   :  { %v4939_v34 = vrot.slane %v1042_v27, %v4812_v58  ;;  %v4942_v35 = vrot.slane %v1043_v25, %v4812_v58  ;;  %v4945_v36 = vrot.slane %v1318_v29, %v4812_v58  ;;  %v4948_v49 = vrot.slane %v1319_v31, %v4812_v58 }
 0x14c   :  { %v1060_v37 = vcombine.low %v1036_v18, %v1037_v32  ;;  %v1336_v38 = vcombine.low %v1312_v22, %v1313_v33 }
 0x14d   :  { %5927 = vst [vmem:[#allocation8_spill] sm:$0xff] %v4942_v35  ;;  %5928 = vst [vmem:[#allocation9_spill] sm:$0xff] %v4948_v49  ;;  %v4952_v41 = vcombine.high %v4939_v34, %v4939_v34  ;;  %v4956_v51 = vcombine.high %v4942_v35, %v4942_v35  ;;  %v4960_v46 = vcombine.high %v4945_v36, %v4945_v36 }
 0x14e   :  { %v4964_v26 = vcombine.high %v4948_v49, %v4948_v49  ;;  %v4967_v47 = vrot.slane %v1060_v37, %v4812_v58  ;;  %v4970_v48 = vrot.slane %v1336_v38, %v4812_v58  ;;  %v1642_v50 = vrot.slane %v4942_v35, %v4812_v58 }
 0x14f   :  { %v1782_v52 = vrot.slane %v4948_v49, %v4812_v58  ;;  %v1628_v53 = vcombine.low %v4939_v34, %v4952_v41  ;;  %v1768_v54 = vcombine.low %v4945_v36, %v4960_v46  ;;  %v1693_v55 = vmul.f32 %v4956_v51, %v4956_v51 }
 0x150   :  { %v1690_v56 = vmul.f32 %v4939_v34, %v4939_v34  ;;  %v4986_v57 = vcombine.high %v4967_v47, %v4967_v47  ;;  %v1645_v59 = vcombine.low %v4956_v51, %v4967_v47  ;;  %v4992_v60 = vcombine.high %v4970_v48, %v4970_v48 }
 0x151   :  { %v1785_v61 = vcombine.low %v4964_v26, %v4970_v48  ;;  %v1635_v62 = vrot.slane %v1628_v53, %v4812_v58  ;;  %v1775_v63 = vrot.slane %v1768_v54, %v4812_v58  ;;  %v1694_v0 = vmul.f32 %v4967_v47, %v4967_v47 }
 0x152   :  { %5929 = vst [vmem:[#allocation10_spill] sm:$0xff] %v4986_v57  ;;  %5930 = vst [vmem:[#allocation11_spill] sm:$0xff] %v4992_v60  ;;  %v1691_v1 = vmul.f32 %v4952_v41, %v4952_v41  ;;  %v1652_v2 = vrot.slane %v1645_v59, %v4812_v58  ;;  %v1659_v3 = vrot.slane %v4986_v57, %v4812_v58 }
 0x153   :  { %v1792_v4 = vrot.slane %v1785_v61, %v4812_v58  ;;  %v1799_v5 = vrot.slane %v4992_v60, %v4812_v58  ;;  %v1643_v6 = vcombine.low %v1635_v62, %v1642_v50  ;;  %v1644_v7 = vcombine.high %v1635_v62, %v1642_v50 }
 0x154   :  { %v1783_v8 = vcombine.low %v1775_v63, %v1782_v52  ;;  %v1784_v13 = vcombine.high %v1775_v63, %v1782_v52  ;;  %v1660_v14 = vcombine.low %v1652_v2, %v1659_v3  ;;  %v1661_v18 = vcombine.high %v1652_v2, %v1659_v3 }
 0x155   :  { %v1800_v22 = vcombine.low %v1792_v4, %v1799_v5  ;;  %v1801_v23 = vcombine.high %v1792_v4, %v1799_v5  ;;  %v1666_v24 = vsel %vm94_vm0, %v1643_v6, 0.0  ;;  %v1667_v27 = vsel %vm1390_vm2, %v1644_v7, 0.0 }
 0x156   :  { %v1806_v25 = vsel %vm94_vm0, %v1783_v8, 0.0  ;;  %v1807_v29 = vsel %vm1390_vm2, %v1784_v13, 0.0  ;;  %v1671_v31 = vsel %vm94_vm0, %v1660_v14, 0.0  ;;  %v1672_v32 = vsel %vm1390_vm2, %v1661_v18, 0.0 }
 0x157   :  { %v1668_v33 = vadd.f32 %v1667_v27, %v1666_v24  ;;  %v1811_v37 = vsel %vm94_vm0, %v1800_v22, 0.0  ;;  %v1673_v38 = vadd.f32 %v1672_v32, %v1671_v31  ;;  %v1812_v50 = vsel %vm1390_vm2, %v1801_v23, 0.0 }
 0x158   :  { %v1808_v52 = vadd.f32 %v1807_v29, %v1806_v25  ;;  %v1695_v53 = vmul.f32 %v4986_v57, %v4986_v57  ;;  %v1813_v54 = vadd.f32 %v1812_v50, %v1811_v37  ;;  %v1719_v59 = vcombine.low %v1693_v55, %v1694_v0 }
 0x159   :  { %1669 = vadd.xlane.f32.xlu0 %v1668_v33  ;;  %v1692_v61 = vmul.f32 %v4942_v35, %v4942_v35  ;;  %v1702_v62 = vcombine.low %v1690_v56, %v1691_v1  ;;  %1674 = vadd.xlane.f32.xlu1 %v1673_v38  ;;  %v1833_v2 = vmul.f32 %v4964_v26, %v4964_v26 }
 0x15a   :  { %v1733_v63 = vrot.slane %v1695_v53, %v4812_v58  ;;  %v1834_v3 = vmul.f32 %v4970_v48, %v4970_v48  ;;  %v1835_v4 = vmul.f32 %v4992_v60, %v4992_v60  ;;  %v1726_v5 = vrot.slane %v1719_v59, %v4812_v58 }
 0x15b   :  { %v1709_v55 = vrot.slane %v1702_v62, %v4812_v58  ;;  %v1716_v0 = vrot.slane %v1692_v61, %v4812_v58  ;;  %v1830_v56 = vmul.f32 %v4945_v36, %v4945_v36  ;;  %v1831_v7 = vmul.f32 %v4960_v46, %v4960_v46 }
 0x15c   :  { %v1859_v1 = vcombine.low %v1833_v2, %v1834_v3  ;;  %v1873_v6 = vrot.slane %v1835_v4, %v4812_v58  ;;  %v1832_v8 = vmul.f32 %v4948_v49, %v4948_v49  ;;  %v1734_v13 = vcombine.low %v1726_v5, %v1733_v63 }
 0x15d   :  { %1809 = vadd.xlane.f32.xlu0 %v1808_v52  ;;  %v1735_v14 = vcombine.high %v1726_v5, %v1733_v63  ;;  %v1717_v18 = vcombine.low %v1709_v55, %v1716_v0  ;;  %v1718_v22 = vcombine.high %v1709_v55, %v1716_v0  ;;  %1814 = vadd.xlane.f32.xlu1 %v1813_v54 }
 0x15e   :  { %v1866_v23 = vrot.slane %v1859_v1, %v4812_v58  ;;  %v1842_v24 = vcombine.low %v1830_v56, %v1831_v7  ;;  %v1745_v27 = vsel %vm94_vm0, %v1734_v13, 0.0  ;;  %v1856_v52 = vrot.slane %v1832_v8, %v4812_v58 }
 0x15f   :  { %v1746_v25 = vsel %vm1390_vm2, %v1735_v14, 0.0  ;;  %v1740_v29 = vsel %vm94_vm0, %v1717_v18, 0.0  ;;  %v1741_v31 = vsel %vm1390_vm2, %v1718_v22, 0.0 }
 0x160   :  { %v1747_v32 = vadd.f32 %v1746_v25, %v1745_v27  ;;  %v1742_v33 = vadd.f32 %v1741_v31, %v1740_v29  ;;  %v1874_v37 = vcombine.low %v1866_v23, %v1873_v6  ;;  %v1875_v38 = vcombine.high %v1866_v23, %v1873_v6 }
 0x161   :  { %v1849_v50 = vrot.slane %v1842_v24, %v4812_v58 }
 0x162   :  { %1748 = vadd.xlane.f32.xlu1 %v1747_v32  ;;  %1743 = vadd.xlane.f32.xlu0 %v1742_v33  ;;  %v1885_v53 = vsel %vm94_vm0, %v1874_v37, 0.0  ;;  %v1886_v54 = vsel %vm1390_vm2, %v1875_v38, 0.0 }
 0x163   :  { %v1857_v59 = vcombine.low %v1849_v50, %v1856_v52  ;;  %v1858_v61 = vcombine.high %v1849_v50, %v1856_v52  ;;  %v1887_v62 = vadd.f32 %v1886_v54, %v1885_v53 }
 0x165   :  { %v1880_v63 = vsel %vm94_vm0, %v1857_v59, 0.0  ;;  %v1881_v2 = vsel %vm1390_vm2, %v1858_v61, 0.0 }
 0x166   :  { %1888 = vadd.xlane.f32.xlu1 %v1887_v62  ;;  %v1882_v3 = vadd.f32 %v1881_v2, %v1880_v63 }
 0x168   :  { %1883 = vadd.xlane.f32.xlu0 %v1882_v3 }
 0x1ad   :  { %v1530_v55 = vpop.xlane.xlu1 %1529 }
 0x1ae   :  { %v1394_v0 = vpop.xlane.xlu0 %1393  ;;  %v1536_v1 = vsel %vm94_vm0, %v1530_v55, 0.0 }
 0x1af   :  { %v1400_v7 = vsel %vm94_vm0, %v1394_v0, 0.0  ;;  %v1537_v8 = vrot.slane %v1536_v1, 4 }
 0x1b0   :  { %v1401_v22 = vrot.slane %v1400_v7, 4 }
 0x1b1   :  { %v1535_v56 = vpop.xlane.xlu1 %1534  ;;  %v1538_v27 = vadd.f32 %v1537_v8, %v1536_v1 }
 0x1b2   :  { %v1399_v6 = vpop.xlane.xlu0 %1398  ;;  %v1543_v13 = vsel %vm94_vm0, %v1535_v56, 0.0  ;;  %v1402_v29 = vadd.f32 %v1401_v22, %v1400_v7 }
 0x1b3   :  { %v1407_v14 = vsel %vm94_vm0, %v1399_v6, 0.0  ;;  %v1544_v23 = vrot.slane %v1543_v13, 4  ;;  %v1539_v33 = vrot.slane %v1538_v27, 2 }
 0x1b4   :  { %v1408_v25 = vrot.slane %v1407_v14, 4  ;;  %v1403_v50 = vrot.slane %v1402_v29, 2 }
 0x1b5   :  { %v1545_v31 = vadd.f32 %v1544_v23, %v1543_v13  ;;  %v1540_v59 = vadd.f32 %v1539_v33, %v1538_v27 }
 0x1b6   :  { %v1473_v18 = vpop.xlane.xlu1 %1472  ;;  %v1409_v37 = vadd.f32 %v1408_v25, %v1407_v14  ;;  %v1404_v3 = vadd.f32 %v1403_v50, %v1402_v29 }
 0x1b7   :  { %v1468_v24 = vpop.xlane.xlu0 %1467  ;;  %v1546_v53 = vrot.slane %v1545_v31, 2  ;;  %v1481_v54 = vsel %vm94_vm0, %v1473_v18, 0.0  ;;  %v1541_v7 = vrot.slane %v1540_v59, 1 }
 0x1b8   :  { %v1410_v61 = vrot.slane %v1409_v37, 2  ;;  %v1474_v62 = vsel %vm94_vm0, %v1468_v24, 0.0  ;;  %v1482_v55 = vrot.slane %v1481_v54, 4  ;;  %v1405_v27 = vrot.slane %v1404_v3, 1 }
 0x1b9   :  { %v1547_v0 = vadd.f32 %v1546_v53, %v1545_v31  ;;  %v1475_v56 = vrot.slane %v1474_v62, 4  ;;  %v1542_v50 = vadd.f32 %v1541_v7, %v1540_v59 }
 0x1ba   :  { %v1609_v32 = vpop.xlane.xlu1 %1608  ;;  %v1411_v8 = vadd.f32 %v1410_v61, %v1409_v37  ;;  %v1483_v24 = vadd.f32 %v1482_v55, %v1481_v54 }
 0x1bb   :  { %v1604_v38 = vpop.xlane.xlu0 %1603  ;;  %v1617_v52 = vsel %vm94_vm0, %v1609_v32, 0.0  ;;  %v1548_v32 = vrot.slane %v1547_v0, 1  ;;  %v1476_v33 = vadd.f32 %v1475_v56, %v1474_v62 }
 0x1bc   :  { %v1610_v63 = vsel %vm94_vm0, %v1604_v38, 0.0  ;;  %v1618_v2 = vrot.slane %v1617_v52, 4  ;;  %v1412_v53 = vrot.slane %v1411_v8, 1  ;;  %v1484_v45 = vrot.slane %v1483_v24, 2 }
 0x1bd   :  { %v1611_v1 = vrot.slane %v1610_v63, 4  ;;  %v1549_v44 = vadd.f32 %v1548_v32, %v1547_v0  ;;  %v1477_v62 = vrot.slane %v1476_v33, 2 }
 0x1be   :  { %v1619_v22 = vadd.f32 %v1618_v2, %v1617_v52  ;;  %v1485_v0 = vadd.f32 %v1484_v45, %v1483_v24 }
 0x1bf   :  { %v1612_v29 = vadd.f32 %v1611_v1, %v1610_v63  ;;  %v1413_v1 = vadd.f32 %v1412_v53, %v1411_v8 }
 0x1c0   :  { %v1620_v61 = vrot.slane %v1619_v22, 2 }
 0x1c1   :  { %v1613_v63 = vrot.slane %v1612_v29, 2 }
 0x1c3   :  { %v1614_v32 = vadd.f32 %v1613_v63, %v1612_v29 }
 0x1e6   :  { %v1670_v6 = vpop.xlane.xlu0 %1669  ;;  %v1675_v13 = vpop.xlane.xlu1 %1674 }
 0x1e7   :  { %v1676_v14 = vsel %vm94_vm0, %v1670_v6, 0.0  ;;  %v1683_v18 = vsel %vm94_vm0, %v1675_v13, 0.0  ;;  %v1406_v13 = vadd.f32 %v1405_v27, %v1404_v3 }
 0x1e8   :  { %v1677_v23 = vrot.slane %v1676_v14, 4  ;;  %v1684_v25 = vrot.slane %v1683_v18, 4 }
 0x1e9   :  { %v1624_v3 = vadd.f32 %v1542_v50, %v1406_v13 }
 0x1ea   :  { %v1678_v38 = vadd.f32 %v1677_v23, %v1676_v14  ;;  %v1810_v31 = vpop.xlane.xlu0 %1809  ;;  %v1685_v5 = vadd.f32 %v1684_v25, %v1683_v18  ;;  %v1815_v4 = vpop.xlane.xlu1 %1814  ;;  %v1621_v25 = vadd.f32 %v1620_v61, %v1619_v22  ;;  %v1478_v22 = vadd.f32 %v1477_v62, %v1476_v33 }
 0x1eb   :  { %v1816_v37 = vsel %vm94_vm0, %v1810_v31, 0.0  ;;  %v1823_v52 = vsel %vm94_vm0, %v1815_v4, 0.0 }
 0x1ec   :  { %v1679_v6 = vrot.slane %v1678_v38, 2  ;;  %v1817_v2 = vrot.slane %v1816_v37, 4  ;;  %v1686_v54 = vrot.slane %v1685_v5, 2  ;;  %v1824_v55 = vrot.slane %v1823_v52, 4 }
 0x1ed   :  { %v1622_v61 = vrot.slane %v1621_v25, 1 }
 0x1ee   :  { %v1818_v56 = vadd.f32 %v1817_v2, %v1816_v37  ;;  %v1687_v59 = vadd.f32 %v1686_v54, %v1685_v5  ;;  %v1680_v7 = vadd.f32 %v1679_v6, %v1678_v38  ;;  %v1825_v14 = vadd.f32 %v1824_v55, %v1823_v52 }
 0x1ef   :  { %v1749_v18 = vpop.xlane.xlu1 %1748  ;;  %v1744_v23 = vpop.xlane.xlu0 %1743  ;;  %v1625_v52 = vadd.f32 %v1549_v44, %v1413_v1  ;;  %v1479_v44 = vrot.slane %v1478_v22, 1 }
 0x1f0   :  { %v1819_v31 = vrot.slane %v1818_v56, 2  ;;  %v1757_v60 = vsel %vm94_vm0, %v1749_v18, 0.0  ;;  %v1750_v4 = vsel %vm94_vm0, %v1744_v23, 0.0  ;;  %v1826_v27 = vrot.slane %v1825_v14, 2 }
 0x1f1   :  { %v1758_v57 = vrot.slane %v1757_v60, 4  ;;  %v1751_v28 = vrot.slane %v1750_v4, 4  ;;  %v1688_v30 = vrot.slane %v1687_v59, 1  ;;  %v1681_v8 = vrot.slane %v1680_v7, 1 }
 0x1f2   :  { %v1820_v37 = vadd.f32 %v1819_v31, %v1818_v56  ;;  %v1827_v5 = vadd.f32 %v1826_v27, %v1825_v14  ;;  %v1615_v23 = vrot.slane %v1614_v32, 1  ;;  %v1623_v27 = vadd.f32 %v1622_v61, %v1621_v25 }
 0x1f3   :  { %v1759_v38 = vadd.f32 %v1758_v57, %v1757_v60  ;;  %v1752_v53 = vadd.f32 %v1751_v28, %v1750_v4  ;;  %v1889_v6 = vpop.xlane.xlu1 %1888  ;;  %v1689_v45 = vadd.f32 %v1688_v30, %v1687_v59  ;;  %v1682_v63 = vadd.f32 %v1681_v8, %v1680_v7 }
 0x1f4   :  { %v1897_v2 = vsel %vm94_vm0, %v1889_v6, 0.0  ;;  %v1828_v54 = vrot.slane %v1827_v5, 1  ;;  %v1821_v55 = vrot.slane %v1820_v37, 1  ;;  %v1486_v60 = vrot.slane %v1485_v0, 1 }
 0x1f5   :  { %v1760_v50 = vrot.slane %v1759_v38, 2  ;;  %v1753_v13 = vrot.slane %v1752_v53, 2  ;;  %v1884_v18 = vpop.xlane.xlu0 %1883  ;;  %v1898_v24 = vrot.slane %v1897_v2, 4  ;;  %v1765_v6 = vadd.f32 %v1689_v45, %v1625_v52 }
 0x1f6   :  { %v1890_v29 = vsel %vm94_vm0, %v1884_v18, 0.0  ;;  %v1829_v33 = vadd.f32 %v1828_v54, %v1827_v5  ;;  %v1822_v1 = vadd.f32 %v1821_v55, %v1820_v37  ;;  %v1616_v35 = vadd.f32 %v1615_v23, %v1614_v32 }
 0x1f7   :  { %v1761_v56 = vadd.f32 %v1760_v50, %v1759_v38  ;;  %v1754_v57 = vadd.f32 %v1753_v13, %v1752_v53  ;;  %v1891_v28 = vrot.slane %v1890_v29, 4  ;;  %v1899_v62 = vadd.f32 %v1898_v24, %v1897_v2 }
 0x1f8   :  { %v1764_v30 = vadd.f32 %v1682_v63, %v1624_v3  ;;  %v1487_v20 = vadd.f32 %v1486_v60, %v1485_v0  ;;  %v1905_v18 = vadd.f32 %v1829_v33, %v1765_v6  ;;  %v1480_v38 = vadd.f32 %v1479_v44, %v1478_v22 }
 0x1f9   :  { %v1762_v14 = vrot.slane %v1761_v56, 1  ;;  %v1755_v31 = vrot.slane %v1754_v57, 1  ;;  %v1892_v4 = vadd.f32 %v1891_v28, %v1890_v29  ;;  %v1900_v49 = vrot.slane %v1899_v62, 2 }
 0x1fa   :  { %v1904_v53 = vadd.f32 %v1822_v1, %v1764_v30  ;;  %v1627_v5 = vadd.f32 %v1623_v27, %v1487_v20  ;;  %v1626_v37 = vadd.f32 %v1616_v35, %v1480_v38  ;;  %v5068_v55 = vmul.f32 0.00028935185, %v1905_v18 }
 0x1fb   :  { %v1893_v59 = vrot.slane %v1892_v4, 2  ;;  %v1763_v7 = vadd.f32 %v1762_v14, %v1761_v56  ;;  %v1901_v8 = vadd.f32 %v1900_v49, %v1899_v62  ;;  %v1756_v50 = vadd.f32 %v1755_v31, %v1754_v57 }
 0x1fc   :  { %v5070_v61 = vmul.f32 0.00028935185, %v1904_v53  ;;  %v1914_v49 = vmul.f32 %v5068_v55, %v5068_v55  ;;  %v5931_v28 = vcombine.low %v4791_v39, %v4795_v42  ;;  %v5932_v44 = vcombine.low %v4793_v40, %v4797_v43 }
 0x1fd   :  { %v1894_v13 = vadd.f32 %v1893_v59, %v1892_v4  ;;  %v1902_v2 = vrot.slane %v1901_v8, 1  ;;  %v1767_v25 = vadd.f32 %v1763_v7, %v1627_v5  ;;  %v1766_v3 = vadd.f32 %v1756_v50, %v1626_v37  ;;  %v5939_v50 = vld [vmem:[#allocation6_spill] sm:$0xff]  ;;  %v5941_v37 = vld [vmem:[#allocation11_spill] sm:$0xff] }
 0x1fe   :  { %v1913_v20 = vmul.f32 %v5070_v61, %v5070_v61  ;;  %v5080_v60 = vrot.slane %v5931_v28, %v4812_v58  ;;  %v5086_v33 = vrot.slane %v5932_v44, %v4812_v58  ;;  %v5933_v14 = vcombine.high %v4791_v39, %v4795_v42  ;;  %v5940_v5 = vld [vmem:[#allocation10_spill] sm:$0xff] }
 0x1ff   :  { %v1895_v54 = vrot.slane %v1894_v13, 1  ;;  %v1903_v52 = vadd.f32 %v1902_v2, %v1901_v8  ;;  %v5934_v4 = vcombine.high %v4793_v40, %v4797_v43  ;;  %v2095_v6 = vsub.f32 %v4952_v41, %v5070_v61 }
 0x200   :  { %v5090_v62 = vcombine.high %v5080_v60, %v5080_v60  ;;  %v5094_v1 = vcombine.high %v5086_v33, %v5086_v33  ;;  %v5100_v31 = vrot.slane %v5933_v14, %v4812_v58  ;;  %v2125_v30 = vsub.f32 %v4960_v46, %v5070_v61 }
 0x201   :  { %v1896_v32 = vadd.f32 %v1895_v54, %v1894_v13  ;;  %v1907_v0 = vadd.f32 %v1903_v52, %v1767_v25  ;;  %v5106_v27 = vrot.slane %v5934_v4, %v4812_v58  ;;  %v2094_v59 = vsub.f32 %v4939_v34, %v5070_v61 }
 0x202   :  { %v2124_v39 = vsub.f32 %v4945_v36, %v5070_v61  ;;  %v2097_v42 = vsub.f32 %v4956_v51, %v5068_v55  ;;  %v2127_v40 = vsub.f32 %v4964_v26, %v5068_v55  ;;  %v1927_v43 = vsub.f32 %v4821_v9, %v5070_v61 }
 0x203   :  { %v1906_v23 = vadd.f32 %v1896_v32, %v1766_v3  ;;  %v1912_v45 = vmul.f32 0.00028935185, %v1907_v0  ;;  %v2015_v41 = vsub.f32 %v4827_v11, %v5070_v61  ;;  %v2098_v46 = vsub.f32 %v4967_v47, %v5068_v55 }
 0x204   :  { %v2128_v34 = vsub.f32 %v4970_v48, %v5068_v55  ;;  %v1930_v36 = vsub.f32 %v4834_v15, %v5068_v55  ;;  %v2018_v51 = vsub.f32 %v4838_v16, %v5068_v55  ;;  %v1928_v26 = vsub.f32 %v4854_v21, %v5070_v61  ;;  %v5935_v15 = vld [vmem:[#allocation5_spill] sm:$0xff]  ;;  %v5936_v16 = vld [vmem:[#allocation8_spill] sm:$0xff] }
 0x205   :  { %v1911_v22 = vmul.f32 0.00028935185, %v1906_v23  ;;  %v1916_v35 = vsub.f32 %v1912_v45, %v1914_v49  ;;  %v2016_v9 = vsub.f32 %v4842_v17, %v5070_v61  ;;  %v1929_v11 = vsub.f32 %v4824_v10, %v5070_v61  ;;  %v5937_v21 = vld [vmem:[#allocation9_spill] sm:$0xff]  ;;  %v5938_v17 = vld [vmem:[#allocation7_spill] sm:$0xff] }
 0x206   :  { %v2017_v47 = vsub.f32 %v4830_v12, %v5070_v61  ;;  %v1931_v48 = vsub.f32 %v4847_v19, %v5068_v55  ;;  %v2019_v18 = vsub.f32 %v5935_v15, %v5068_v55  ;;  %v2096_v7 = vsub.f32 %v5936_v16, %v5070_v61 }
 0x207   :  { %v1915_v24 = vsub.f32 %v1911_v22, %v1913_v20  ;;  %v1918_v29 = vmax.f32 %v1916_v35, 0.0  ;;  %v2126_v8 = vsub.f32 %v5937_v21, %v5070_v61  ;;  %v1932_v53 = vsub.f32 %v5938_v17, %v5068_v55 }
 0x208   :  { %v2020_v13 = vsub.f32 %v5939_v50, %v5068_v55  ;;  %v2099_v2 = vsub.f32 %v5940_v5, %v5068_v55  ;;  %v2129_v54 = vsub.f32 %v5941_v37, %v5068_v55  ;;  %v5298_v37 = vld [vmem:[%s5902_s2 + $0x24] sm:$0xff]  }
 0x209   :  { %v1917_v63 = vmax.f32 %v1915_v24, 0.0  ;;  %v1920_v56 = vadd.f32 1e-05, %v1918_v29 }
 0x20b   :  { %v1919_v57 = vadd.f32 1e-05, %v1917_v63  ;;  %4422 = vrsqrt.f32 %v1920_v56 }
 0x20d   :  { %4424 = vrsqrt.f32 %v1919_v57 }
 0x215   :  { %v5148_v38 = vpop.eup %4422 }
 0x216   :  { %v2103_v52 = vmul.f32 %v5148_v38, %v2097_v42  ;;  %v2133_v3 = vmul.f32 %v5148_v38, %v2127_v40  ;;  %v2104_v32 = vmul.f32 %v5148_v38, %v2098_v46  ;;  %v2134_v0 = vmul.f32 %v5148_v38, %v2128_v34 }
 0x217   :  { %v5158_v25 = vpop.eup %4424  ;;  %v1937_v10 = vmul.f32 %v5148_v38, %v1931_v48  ;;  %v1938_v61 = vmul.f32 %v5148_v38, %v1932_v53  ;;  %v2026_v21 = vmul.f32 %v5148_v38, %v2020_v13  ;;  %v2135_v50 = vmul.f32 %v5148_v38, %v2129_v54 }
 0x218   :  { %v2101_v23 = vmul.f32 %v5158_v25, %v2095_v6  ;;  %v2131_v45 = vmul.f32 %v5158_v25, %v2125_v30  ;;  %v2100_v49 = vmul.f32 %v5158_v25, %v2094_v59  ;;  %v2130_v20 = vmul.f32 %v5158_v25, %v2124_v39 }
 0x219   :  { %v2109_v22 = vmul.f32 %v2103_v52, %v5080_v60  ;;  %v2139_v35 = vmul.f32 %v2133_v3, %v5080_v60  ;;  %v1933_v24 = vmul.f32 %v5158_v25, %v1927_v43  ;;  %v2021_v29 = vmul.f32 %v5158_v25, %v2015_v41 }
 0x21a   :  { %v2107_v63 = vmul.f32 %v2101_v23, %v5090_v62  ;;  %v2137_v56 = vmul.f32 %v2131_v45, %v5090_v62  ;;  %v2106_v57 = vmul.f32 %v2100_v49, %v5080_v60  ;;  %v2136_v28 = vmul.f32 %v2130_v20, %v5080_v60 }
 0x21b   :  { %v2115_v44 = vadd.f32 %v2109_v22, %v5086_v33  ;;  %v2145_v14 = vadd.f32 %v2139_v35, %v5086_v33  ;;  %v1968_v4 = vmul.f32 %v5080_v60, %v1933_v24  ;;  %v2027_v6 = vmul.f32 %v2021_v29, %v5080_v60 }
 0x21c   :  { %v2113_v30 = vadd.f32 %v2107_v63, %v5094_v1  ;;  %v2143_v59 = vadd.f32 %v2137_v56, %v5094_v1  ;;  %v2112_v39 = vadd.f32 %v2106_v57, %v5086_v33  ;;  %v2142_v42 = vadd.f32 %v2136_v28, %v5086_v33 }
 0x21d   :  { %v2121_v40 = vmax.f32 %v2115_v44, 0.0  ;;  %v2151_v43 = vmax.f32 %v2145_v14, 0.0  ;;  %v2003_v41 = vadd.f32 %v5086_v33, %v1968_v4  ;;  %v2033_v46 = vadd.f32 %v2027_v6, %v5086_v33 }
 0x21e   :  { %v2119_v34 = vmax.f32 %v2113_v30, 0.0  ;;  %v2149_v52 = vmax.f32 %v2143_v59, 0.0  ;;  %v2118_v3 = vmax.f32 %v2112_v39, 0.0  ;;  %v2148_v23 = vmax.f32 %v2142_v42, 0.0 }
 0x21f   :  { %v5186_v45 = vmax.f32 %v2121_v40, %v2151_v43  ;;  %v2009_v49 = vmax.f32 %v2003_v41, 0.0  ;;  %v2039_v20 = vmax.f32 %v2033_v46, 0.0  ;;  %v2110_v22 = vmul.f32 %v2104_v32, %v5090_v62 }
 0x220   :  { %v5189_v35 = vmax.f32 %v2119_v34, %v2149_v52  ;;  %v5191_v24 = vmax.f32 %v2118_v3, %v2148_v23  ;;  %v2140_v29 = vmul.f32 %v2134_v0, %v5090_v62  ;;  %v1936_v63 = vmul.f32 %v5148_v38, %v1930_v36 }
 0x221   :  { %v5195_v56 = vmax.f32 %v2009_v49, %v2039_v20  ;;  %v2116_v57 = vadd.f32 %v2110_v22, %v5094_v1  ;;  %v2024_v28 = vmul.f32 %v5148_v38, %v2018_v51  ;;  %v1934_v44 = vmul.f32 %v5158_v25, %v1928_v26 }
 0x222   :  { %2168 = vrot.lane.b32.xlu1 %v5189_v35, %s4456_s3  ;;  %2166 = vrot.lane.b32.xlu0 %v5191_v24, %s4456_s3  ;;  %v2146_v32 = vadd.f32 %v2140_v29, %v5094_v1  ;;  %v1971_v0 = vmul.f32 %v5080_v60, %v1936_v63  ;;  %v2022_v36 = vmul.f32 %v5158_v25, %v2016_v9 }
 0x223   :  { %v2122_v14 = vmax.f32 %v2116_v57, 0.0  ;;  %v2030_v4 = vmul.f32 %v2024_v28, %v5080_v60  ;;  %v1969_v51 = vmul.f32 %v5090_v62, %v1934_v44  ;;  %v1935_v26 = vmul.f32 %v5158_v25, %v1929_v11 }
 0x224   :  { %v2152_v6 = vmax.f32 %v2146_v32, 0.0  ;;  %v2006_v30 = vadd.f32 %v5086_v33, %v1971_v0  ;;  %v2028_v59 = vmul.f32 %v2022_v36, %v5090_v62  ;;  %v2023_v9 = vmul.f32 %v5158_v25, %v2017_v47 }
 0x225   :  { %v2036_v39 = vadd.f32 %v2030_v4, %v5086_v33  ;;  %v2004_v60 = vadd.f32 %v5094_v1, %v1969_v51  ;;  %v1970_v42 = vmul.f32 %v5100_v31, %v1935_v26  ;;  %v1972_v19 = vmul.f32 %v5090_v62, %v1937_v10  ;;  %v5306_v4 = vld [vmem:[%s5902_s2] sm:$0xff]   ;;  %v5368_v10 = vld [vmem:[%s5902_s2 + $0x18] sm:$0xff]  }
 0x226   :  { %2172 = vrot.lane.b32.xlu1 %v5186_v45, %s4456_s3  ;;  %2057 = vrot.lane.b32.xlu0 %v5195_v56, %s4456_s3  ;;  %v5230_v12 = vmax.f32 %v2122_v14, %v2152_v6  ;;  %v2012_v11 = vmax.f32 %v2006_v30, 0.0  ;;  %v2034_v33 = vadd.f32 %v2028_v59, %v5094_v1  ;;  %v2029_v47 = vmul.f32 %v2023_v9, %v5100_v31  ;;  %v5329_v59 = vld [vmem:[%s5902_s2 + $0x8] sm:$0xff]   ;;  %v5342_v9 = vld [vmem:[%s5902_s2 + $0x34] sm:$0xff]  }
 0x227   :  { %v2042_v40 = vmax.f32 %v2036_v39, 0.0  ;;  %v2010_v43 = vmax.f32 %v2004_v60, 0.0  ;;  %v2005_v41 = vadd.f32 %v5106_v27, %v1970_v42  ;;  %v2025_v34 = vmul.f32 %v5148_v38, %v2019_v18  ;;  %v5349_v39 = vld [vmem:[%s5902_s2 + $0x10] sm:$0xff]   ;;  %v5358_v60 = vld [vmem:[%s5902_s2 + $0x3c] sm:$0xff]   ;;  %v4371_v42 = vld [vmem:[%s5902_s2 + $0x44] ss:$0 sps:$4 sm:$0xff]  }
 0x228   :  { %v2040_v48 = vmax.f32 %v2034_v33, 0.0  ;;  %v2035_v46 = vadd.f32 %v2029_v47, %v5106_v27  ;;  %v2102_v52 = vmul.f32 %v5158_v25, %v2096_v7  ;;  %v2007_v49 = vadd.f32 %v5094_v1, %v1972_v19 }
 0x229   :  { %v5245_v3 = vmax.f32 %v2012_v11, %v2042_v40  ;;  %v2011_v23 = vmax.f32 %v2005_v41, 0.0  ;;  %v2132_v20 = vmul.f32 %v5158_v25, %v2126_v8  ;;  %v2031_v16 = vmul.f32 %v2025_v34, %v5090_v62  ;;  %v4375_v11 = vld [vmem:[%s5902_s2 + $0x20] ss:$0 sps:$4 sm:$0xff]  }
 0x22a   :  { %2174 = vrot.lane.b32.xlu1 %v5230_v12, %s4456_s3  ;;  %v5254_v15 = vmax.f32 %v2010_v43, %v2040_v48  ;;  %v2041_v18 = vmax.f32 %v2035_v46, 0.0  ;;  %v2108_v7 = vmul.f32 %v2102_v52, %v5100_v31  ;;  %v2013_v22 = vmax.f32 %v2007_v49, 0.0 }
 0x22b   :  { %2063 = vrot.lane.b32.xlu0 %v5245_v3, %s4456_s3  ;;  %v2138_v29 = vmul.f32 %v2132_v20, %v5100_v31  ;;  %v2037_v62 = vadd.f32 %v2031_v16, %v5094_v1  ;;  %v2105_v63 = vmul.f32 %v5148_v38, %v2099_v2  ;;  %v1973_v53 = vmul.f32 %v5100_v31, %v1938_v61 }
 0x22c   :  { %v5269_v8 = vmax.f32 %v2011_v23, %v2041_v18  ;;  %v2114_v25 = vadd.f32 %v2108_v7, %v5106_v27  ;;  %v2032_v57 = vmul.f32 %v2026_v21, %v5100_v31  ;;  %v2141_v32 = vmul.f32 %v2135_v50, %v5100_v31 }
 0x22d   :  { %v2144_v17 = vadd.f32 %v2138_v29, %v5106_v27  ;;  %v2043_v1 = vmax.f32 %v2037_v62, 0.0  ;;  %v2111_v5 = vmul.f32 %v2105_v63, %v5100_v31  ;;  %v2008_v28 = vadd.f32 %v5106_v27, %v1973_v53 }
 0x22e   :  { %2059 = vrot.lane.b32.xlu1 %v5254_v15, %s4456_s3  ;;  %v2120_v13 = vmax.f32 %v2114_v25, 0.0  ;;  %v2038_v44 = vadd.f32 %v2032_v57, %v5106_v27  ;;  %v2147_v14 = vadd.f32 %v2141_v32, %v5106_v27  ;;  %v4457_v6 = vmov 0.0  }
 0x22f   :  { %2061 = vrot.lane.b32.xlu0 %v5269_v8, %s4456_s3  ;;  %v2150_v2 = vmax.f32 %v2144_v17, 0.0  ;;  %v5292_v55 = vmax.f32 %v2013_v22, %v2043_v1  ;;  %v2117_v38 = vadd.f32 %v2111_v5, %v5106_v27  ;;  %v2014_v0 = vmax.f32 %v2008_v28, 0.0  ;;  %4028 = vmatprep.subr.bf16.mxu0 %v4457_v6  ;;  %v5319_v27 = vld [vmem:[%s5902_s2 + $0x2c] sm:$0xff]  }
 0x230   :  { %v2044_v36 = vmax.f32 %v2038_v44, 0.0  ;;  %v2153_v26 = vmax.f32 %v2147_v14, 0.0  ;;  %4029 = vmatpush3.bf16.msra.mxu0 %v5298_v37  ;;  %4042 = vmatprep.subr.bf16.mxu1 %v4457_v6  ;;  %v5377_v33 = vsel %vm2414_vm4, %v4371_v42, 0  ;;  %v5382_v47 = vsel %vm2414_vm4, %v4375_v11, 0 }
 0x231   :  { %v5300_v54 = vmax.f32 %v2120_v13, %v2150_v2  ;;  %v2123_v31 = vmax.f32 %v2117_v38, 0.0  ;;  %4030 = vmatprep.subr.bf16.mxu0 %v4457_v6  ;;  %4043 = vmatpush3.bf16.msra.mxu1 %v5306_v4 }
 0x232   :  { %2065 = vrot.lane.b32.xlu1 %v5292_v55, %s4456_s3  ;;  %v5312_v51 = vmax.f32 %v2014_v0, %v2044_v36  ;;  %4044 = vmatprep.subr.bf16.mxu1 %v4457_v6 }
 0x233   :  { %2170 = vrot.lane.b32.xlu0 %v5300_v54, %s4456_s3  ;;  %v5322_v30 = vmax.f32 %v2123_v31, %v2153_v26  ;;  %4038 = vmatprep.mubr.msk.bf16.mxu0 %vm4458_vm3, %v4457_v6 }
 0x234   :  { %4052 = vmatprep.mubr.msk.bf16.mxu1 %vm4458_vm3, %v4457_v6  ;;  %4031 = vmatpush3.bf16.msra.mxu0 %v5319_v27 }
 0x235   :  { %4032 = vmatprep.subr.bf16.mxu0 %v4457_v6  ;;  %4045 = vmatpush3.bf16.msra.mxu1 %v5329_v59 }
 0x236   :  { %2067 = vrot.lane.b32.xlu1 %v5312_v51, %s4456_s3  ;;  %4046 = vmatprep.subr.bf16.mxu1 %v4457_v6 }
 0x238   :  { %4033 = vmatpush3.bf16.msra.mxu0 %v5342_v9 }
 0x239   :  { %4034 = vmatprep.subr.bf16.mxu0 %v4457_v6  ;;  %4047 = vmatpush3.bf16.msra.mxu1 %v5349_v39 }
 0x23a   :  { %2176 = vrot.lane.b32.xlu1 %v5322_v30, %s4456_s3  ;;  %4048 = vmatprep.subr.bf16.mxu1 %v4457_v6 }
 0x23c   :  { %4035 = vmatpush3.bf16.msra.mxu0 %v5358_v60 }
 0x23d   :  { %4036 = vmatprep.subr.bf16.mxu0 %v4457_v6  ;;  %4049 = vmatpush3.bf16.msra.mxu1 %v5368_v10 }
 0x23e   :  { %4050 = vmatprep.subr.bf16.mxu1 %v4457_v6 }
 0x240   :  { %4037 = vmatpush3.bf16.msra.mxu0 %v5377_v33 }
 0x241   :  { %4056 = vmatprep.subr.bf16.mxu0 %v4457_v6  ;;  %4051 = vmatpush3.bf16.msra.mxu1 %v5382_v47 }
 0x242   :  { %4070 = vmatprep.subr.bf16.mxu1 %v4457_v6 }
 0x294   :  { %v2169_v40 = vpop.permute.xlu1 %2168  ;;  %v2167_v43 = vpop.permute.xlu0 %2166 }
 0x295   :  { %v2179_v41 = vrot.slane %v2169_v40, 2  ;;  %v2178_v19 = vrot.slane %v2167_v43, 2 }
 0x297   :  { %v2185_v34 = vsel %vm2075_vm5, %v2169_v40, %v2179_v41  ;;  %v2184_v52 = vsel %vm2075_vm5, %v2167_v43, %v2178_v19 }
 0x298   :  { %v2173_v48 = vpop.permute.xlu1 %2172  ;;  %v2058_v46 = vpop.permute.xlu0 %2057  ;;  %v5391_v49 = vmax.f32 %v5189_v35, %v2185_v34  ;;  %v5394_v20 = vmax.f32 %v5191_v24, %v2184_v52 }
 0x299   :  { %v2181_v23 = vrot.slane %v2173_v48, 2  ;;  %v2069_v62 = vrot.slane %v2058_v46, 2 }
 0x29a   :  { %v2229_v61 = vcombine.low %v5394_v20, %v5391_v49 }
 0x29b   :  { %v2187_v16 = vsel %vm2075_vm5, %v2173_v48, %v2181_v23 }
 0x29c   :  { %v2175_v18 = vpop.permute.xlu1 %2174  ;;  %v5401_v21 = vmax.f32 %v5186_v45, %v2187_v16  ;;  %v2237_v1 = vrot.slane %v2229_v61, %v4812_v58  ;;  %v2076_v45 = vsel %vm2075_vm5, %v2058_v46, %v2069_v62 }
 0x29d   :  { %v2182_v7 = vrot.slane %v2175_v18, 2  ;;  %v2064_v22 = vpop.permute.xlu0 %2063  ;;  %v2088_v36 = vmax.f32 %v5195_v56, %v2076_v45 }
 0x29e   :  { %v2072_v24 = vrot.slane %v2064_v22, 2 }
 0x29f   :  { %v2188_v29 = vsel %vm2075_vm5, %v2175_v18, %v2182_v7  ;;  %v3813_v61 = vrot.slane %v2088_v36, 9 }
 0x2a0   :  { %v5404_v35 = vmax.f32 %v5230_v12, %v2188_v29  ;;  %v2060_v25 = vpop.permute.xlu1 %2059  ;;  %v2079_v2 = vsel %vm2075_vm5, %v2064_v22, %v2072_v24 }
 0x2a1   :  { %v2070_v63 = vrot.slane %v2060_v25, 2  ;;  %v2062_v17 = vpop.permute.xlu0 %2061  ;;  %v2091_v42 = vmax.f32 %v5245_v3, %v2079_v2 }
 0x2a2   :  { %v2230_v53 = vcombine.low %v5401_v21, %v5404_v35  ;;  %v2071_v57 = vrot.slane %v2062_v17, 2  ;;  %v2301_v24 = vrot.slane %v5404_v35, 7 }
 0x2a3   :  { %v2077_v50 = vsel %vm2075_vm5, %v2060_v25, %v2070_v63  ;;  %v3814_v62 = vrot.slane %v2091_v42, 9 }
 0x2a4   :  { %v2244_v13 = vrot.slane %v2230_v53, %v4812_v58  ;;  %v5413_v12 = vmax.f32 %v5254_v15, %v2077_v50  ;;  %v2066_v5 = vpop.permute.xlu1 %2065  ;;  %v2078_v28 = vsel %vm2075_vm5, %v2062_v17, %v2071_v57  ;;  %v5423_v15 = vld [vmem:[%s5902_s2 + $0x48] sm:$0xff]   ;;  %v5481_v57 = vld [vmem:[%s5902_s2 + $0x58] sm:$0xff]   ;;  %v2294_v50 = vrot.slane %v5391_v49, 7 }
 0x2a5   :  { %v2073_v44 = vrot.slane %v2066_v5, 2  ;;  %v2171_v32 = vpop.permute.xlu0 %2170  ;;  %v5430_v11 = vmax.f32 %v5269_v8, %v2078_v28 }
 0x2a6   :  { %v2245_v38 = vcombine.low %v2237_v1, %v2244_v13  ;;  %v2180_v0 = vrot.slane %v2171_v32, 2  ;;  %v2259_v14 = vrot.slane %v5413_v12, 7  ;;  %v2206_v40 = vcombine.low %v2088_v36, %v5413_v12  ;;  %v5492_v13 = vld [vmem:[%s5902_s2 + $0x6c] sm:$0xff]  }
 0x2a7   :  { %v2080_v31 = vsel %vm2075_vm5, %v2066_v5, %v2073_v44  ;;  %v2262_v7 = vrot.slane %v5430_v11, 7 }
 0x2a8   :  { %v5426_v26 = vpack.c.bf16 %v2245_v38, %v2245_v38  ;;  %v2068_v56 = vpop.permute.xlu1 %2067  ;;  %v5434_v43 = vmax.f32 %v5292_v55, %v2080_v31  ;;  %v2186_v41 = vsel %vm2075_vm5, %v2171_v32, %v2180_v0  ;;  %v2261_v8 = vrot.slane %v2259_v14, 2  ;;  %v5503_v0 = vld [vmem:[%s5902_s2 + $0x60] sm:$0xff]  }
 0x2a9   :  { %v2074_v19 = vrot.slane %v2068_v56, 2  ;;  %v5438_v48 = vmax.f32 %v5300_v54, %v2186_v41  ;;  %v5453_v54 = vld [vmem:[%s5902_s2 + $0x50] sm:$0xff]   ;;  %v2214_v16 = vrot.slane %v2206_v40, %v4812_v58  ;;  %v2260_v5 = vsel %vm5469_vm13, %v3813_v61, %v2259_v14 }
 0x2aa   :  { %4039 = vmatmul.mubr.msk.bf16.vlgmr.msra.gmra.mrb[8].mxu0 %vm2410_vm8, %v5426_v26  ;;  %v2207_v46 = vcombine.low %v2091_v42, %v5434_v43  ;;  %v2266_v55 = vrot.slane %v5434_v43, 7  ;;  %v2263_v63 = vsel %vm5469_vm13, %v2261_v8, %v2262_v7  ;;  %v2303_v38 = vrot.slane %v2301_v24, 2 }
 0x2ab   :  { %v2081_v34 = vsel %vm2075_vm5, %v2068_v56, %v2074_v19  ;;  %4057 = vmatpush3.bf16.msra.mxu0 %v5423_v15  ;;  %4066 = vmatprep.mubr.msk.bf16.mxu0 %vm4458_vm3, %v4457_v6  ;;  %v2344_v52 = vcombine.low %v5391_v49, %v5438_v48  ;;  %v2271_v44 = vcombine.low %v2260_v5, %v2263_v63  ;;  %v2297_v36 = vrot.slane %v5438_v48, 7  ;;  %v4381_v56 = vld [vmem:[%s5902_s2 + $0x68] ss:$0 sps:$4 sm:$0xff]  }
 0x2ac   :  { %v5460_v23 = vmax.f32 %v5312_v51, %v2081_v34  ;;  %v2177_v18 = vpop.permute.xlu1 %2176  ;;  %4058 = vmatprep.subr.bf16.mxu0 %v4457_v6  ;;  %v2221_v22 = vrot.slane %v2207_v46, %v4812_v58  ;;  %v2268_v51 = vrot.slane %v2266_v55, 2  ;;  %v2267_v1 = vsel %vm5469_vm13, %v3814_v62, %v2266_v55  ;;  %v5543_v34 = vld [vmem:[%s5902_s2 + $0x7c] sm:$0xff]   ;;  %v5559_v62 = vld [vmem:[%s5902_s2 + $0x84] sm:$0xff]  }
 0x2ad   :  { %v2183_v53 = vrot.slane %v2177_v18, 2  ;;  %v2296_v40 = vrot.slane %v2294_v50, 2  ;;  %v3815_v41 = vrot.slane %v5394_v20, 9  ;;  %v3816_v19 = vrot.slane %v5401_v21, 9  ;;  %v5600_v5 = vld [vmem:[%s5902_s2 + $0xa8] sm:$0xff]  }
 0x2ae   :  { %v2269_v25 = vrot.slane %v5460_v23, 7  ;;  %v2222_v17 = vcombine.low %v2214_v16, %v2221_v22  ;;  %v2352_v48 = vrot.slane %v2344_v52, %v4812_v58  ;;  %v5538_v55 = vsel %vm2414_vm4, %v4381_v56, 0  ;;  %v5552_v22 = vld [vmem:[%s5902_s2 + $0x90] sm:$0xff]  }
 0x2af   :  { %4059 = vmatpush3.bf16.msra.mxu0 %v5453_v54  ;;  %v2189_v49 = vsel %vm2075_vm5, %v2177_v18, %v2183_v53  ;;  %v2302_v46 = vsel %vm5469_vm13, %v3816_v19, %v2301_v24  ;;  %v2298_v20 = vsel %vm5469_vm13, %v2296_v40, %v2297_v36  ;;  %v2295_v16 = vsel %vm5469_vm13, %v3815_v41, %v2294_v50  ;;  %v5572_v24 = vld [vmem:[%s5902_s2 + $0x98] sm:$0xff]   ;;  %v5586_v53 = vld [vmem:[%s5902_s2 + $0xa0] sm:$0xff]  }
 0x2b0   :  { %v2270_v45 = vsel %vm5469_vm13, %v2268_v51, %v2269_v25  ;;  %4060 = vmatprep.subr.bf16.mxu0 %v4457_v6  ;;  %v2224_v2 = vpack.c.bf16 %v2222_v17, %v2222_v17  ;;  %v2201_v32 = vmax.f32 %v5322_v30, %v2189_v49  ;;  %v5513_v30 = vld [vmem:[%s5902_s2 + $0x74] sm:$0xff]   ;;  %v2306_v7 = vcombine.low %v2295_v16, %v2298_v20  ;;  %v4385_v51 = vld [vmem:[%s5902_s2 + $0x8c] ss:$0 sps:$4 sm:$0xff]  }
 0x2b1   :  { %v2272_v28 = vcombine.low %v2267_v1, %v2270_v45  ;;  %v5580_v63 = vsel %vm2414_vm4, %v4385_v51, 0  ;;  %v2326_v50 = vcombine.low %v5434_v43, %v5460_v23  ;;  %v2325_v45 = vcombine.low %v5413_v12, %v5430_v11  ;;  %v4389_v23 = vld [vmem:[%s5902_s2 + $0xb0] ss:$0 sps:$4 sm:$0xff]  }
 0x2b2   :  { %4053 = vmatmul.mubr.msk.bf16.vlgmr.msra.gmra.mrb[8].mxu1 %vm2410_vm8, %v2224_v2  ;;  %v2304_v31 = vrot.slane %v2201_v32, 7  ;;  %v2345_v42 = vcombine.low %v5404_v35, %v2201_v32  ;;  %v2279_v35 = vrot.slane %v2271_v44, %v4812_v58  ;;  %v2314_v25 = vrot.slane %v2306_v7, %v4812_v58 }
 0x2b3   :  { %4061 = vmatpush3.bf16.msra.mxu0 %v5481_v57  ;;  %v2286_v14 = vrot.slane %v2272_v28, %v4812_v58  ;;  %4071 = vmatpush3.bf16.msra.mxu1 %v5492_v13  ;;  %v2340_v43 = vrot.slane %v2326_v50, %v4812_v58  ;;  %v2333_v12 = vrot.slane %v2325_v45, %v4812_v58 }
 0x2b4   :  { %4062 = vmatprep.subr.bf16.mxu0 %v4457_v6  ;;  %4072 = vmatprep.subr.bf16.mxu1 %v4457_v6  ;;  %v2305_v3 = vsel %vm5469_vm13, %v2303_v38, %v2304_v31  ;;  %v2359_v8 = vrot.slane %v2345_v42, %v4812_v58 }
 0x2b5   :  { %4080 = vmatprep.mubr.msk.bf16.mxu1 %vm4458_vm3, %v4457_v6  ;;  %v2287_v52 = vcombine.low %v2279_v35, %v2286_v14  ;;  %v2307_v18 = vcombine.low %v2302_v46, %v2305_v3  ;;  %v2341_v11 = vcombine.low %v2333_v12, %v2340_v43 }
 0x2b6   :  { %v5533_v21 = vcombine.low %v2352_v48, %v2359_v8 }
 0x2b7   :  { %4063 = vmatpush3.bf16.msra.mxu0 %v5503_v0  ;;  %4073 = vmatpush3.bf16.msra.mxu1 %v5513_v30  ;;  %v2289_v61 = vpack.c.bf16 %v2287_v52, %v2287_v52  ;;  %v2321_v29 = vrot.slane %v2307_v18, %v4812_v58  ;;  %v2343_v2 = vpack.c.bf16 %v2341_v11, %v2341_v11 }
 0x2b8   :  { %4064 = vmatprep.subr.bf16.mxu0 %v4457_v6  ;;  %4074 = vmatprep.subr.bf16.mxu1 %v4457_v6  ;;  %v2362_v58 = vpack.c.bf16 %v5533_v21, %v5533_v21 }
 0x2b9   :  { %v2322_v17 = vcombine.low %v2314_v25, %v2321_v29 }
 0x2bb   :  { %4065 = vmatpush3.bf16.msra.mxu0 %v5538_v55  ;;  %4075 = vmatpush3.bf16.msra.mxu1 %v5543_v34  ;;  %v2324_v1 = vpack.c.bf16 %v2322_v17, %v2322_v17 }
 0x2bc   :  { %4084 = vmatprep.subr.bf16.mxu0 %v4457_v6  ;;  %4076 = vmatprep.subr.bf16.mxu1 %v4457_v6 }
 0x2be   :  { %4067 = vmatmul.mubr.msk.bf16.vlgmr.msra.gmra.mrb[12].mxu0 %vm2410_vm8, %v2289_v61 }
 0x2bf   :  { %4085 = vmatpush3.bf16.msra.mxu0 %v5552_v22  ;;  %4094 = vmatprep.mubr.msk.bf16.mxu0 %vm4458_vm3, %v4457_v6 }
 0x2c0   :  { %4077 = vmatpush3.bf16.msra.mxu1 %v5559_v62  ;;  %4086 = vmatprep.subr.bf16.mxu0 %v4457_v6 }
 0x2c1   :  { %4078 = vmatprep.subr.bf16.mxu1 %v4457_v6 }
 0x2c3   :  { %4087 = vmatpush3.bf16.msra.mxu0 %v5572_v24 }
 0x2c4   :  { %4079 = vmatpush3.bf16.msra.mxu1 %v5580_v63  ;;  %4088 = vmatprep.subr.bf16.mxu0 %v4457_v6 }
 0x2c5   :  { %4098 = vmatprep.subr.bf16.mxu1 %v4457_v6 }
 0x2c7   :  { %4081 = vmatmul.mubr.msk.bf16.vlgmr.msra.gmra.mrb[12].mxu1 %vm2410_vm8, %v2324_v1  ;;  %4089 = vmatpush3.bf16.msra.mxu0 %v5586_v53 }
 0x2c8   :  { %4099 = vmatpush3.bf16.msra.mxu1 %v5298_v37  ;;  %4090 = vmatprep.subr.bf16.mxu0 %v4457_v6  ;;  %v2740_v37 = vsel %vm2414_vm4, %v4389_v23, 0 }
 0x2c9   :  { %4100 = vmatprep.subr.bf16.mxu1 %v4457_v6  ;;  %4108 = vmatprep.mubr.msk.bf16.mxu1 %vm4458_vm3, %v4457_v6 }
 0x2cb   :  { %4091 = vmatpush3.bf16.msra.mxu0 %v5600_v5 }
 0x2cc   :  { %4101 = vmatpush3.bf16.msra.mxu1 %v5319_v27  ;;  %4092 = vmatprep.subr.bf16.mxu0 %v4457_v6 }
 0x2cd   :  { %4102 = vmatprep.subr.bf16.mxu1 %v4457_v6 }
 0x2cf   :  { %4093 = vmatpush3.bf16.msra.mxu0 %v2740_v37 }
 0x2d0   :  { %4103 = vmatpush3.bf16.msra.mxu1 %v5342_v9  ;;  %4112 = vmatprep.subr.bf16.mxu0 %v4457_v6 }
 0x2d1   :  { %4104 = vmatprep.subr.bf16.mxu1 %v4457_v6 }
 0x2d2   :  { %4095 = vmatmul.mubr.msk.bf16.vlgmr.msra.gmra.mrb[16].mxu0 %vm2410_vm8, %v2343_v2 }
 0x2d3   :  { %4113 = vmatpush3.bf16.msra.mxu0 %v5306_v4  ;;  %4122 = vmatprep.mubr.msk.bf16.mxu0 %vm4458_vm3, %v4457_v6 }
 0x2d4   :  { %4105 = vmatpush3.bf16.msra.mxu1 %v5358_v60  ;;  %4114 = vmatprep.subr.bf16.mxu0 %v4457_v6 }
 0x2d5   :  { %4106 = vmatprep.subr.bf16.mxu1 %v4457_v6 }
 0x2d7   :  { %4115 = vmatpush3.bf16.msra.mxu0 %v5329_v59 }
 0x2d8   :  { %4107 = vmatpush3.bf16.msra.mxu1 %v5377_v33  ;;  %4116 = vmatprep.subr.bf16.mxu0 %v4457_v6 }
 0x2d9   :  { %4126 = vmatprep.subr.bf16.mxu1 %v4457_v6 }
 0x2db   :  { %4109 = vmatmul.mubr.msk.bf16.vlgmr.msra.gmra.mrb[16].mxu1 %vm2410_vm8, %v2289_v61  ;;  %4117 = vmatpush3.bf16.msra.mxu0 %v5349_v39 }
 0x2dc   :  { %4127 = vmatpush3.bf16.msra.mxu1 %v5423_v15  ;;  %4118 = vmatprep.subr.bf16.mxu0 %v4457_v6 }
 0x2dd   :  { %4128 = vmatprep.subr.bf16.mxu1 %v4457_v6  ;;  %4136 = vmatprep.mubr.msk.bf16.mxu1 %vm4458_vm3, %v4457_v6 }
 0x2df   :  { %4119 = vmatpush3.bf16.msra.mxu0 %v5368_v10 }
 0x2e0   :  { %4129 = vmatpush3.bf16.msra.mxu1 %v5453_v54  ;;  %4120 = vmatprep.subr.bf16.mxu0 %v4457_v6 }
 0x2e1   :  { %4130 = vmatprep.subr.bf16.mxu1 %v4457_v6 }
 0x2e3   :  { %4121 = vmatpush3.bf16.msra.mxu0 %v5382_v47 }
 0x2e4   :  { %4131 = vmatpush3.bf16.msra.mxu1 %v5481_v57  ;;  %4140 = vmatprep.subr.bf16.mxu0 %v4457_v6 }
 0x2e5   :  { %4132 = vmatprep.subr.bf16.mxu1 %v4457_v6 }
 0x2e6   :  { %4123 = vmatmul.mubr.msk.bf16.vlgmr.msra.gmra.mrb[20].mxu0 %vm2410_vm8, %v5426_v26 }
 0x2e7   :  { %4141 = vmatpush3.bf16.msra.mxu0 %v5492_v13  ;;  %4150 = vmatprep.mubr.msk.bf16.mxu0 %vm4458_vm3, %v4457_v6 }
 0x2e8   :  { %4133 = vmatpush3.bf16.msra.mxu1 %v5503_v0  ;;  %4142 = vmatprep.subr.bf16.mxu0 %v4457_v6  ;;  %v3883_v0 = vld [vmem:[%s5904_s4] ss:$0 sm:$0xff] }
 0x2e9   :  { %4134 = vmatprep.subr.bf16.mxu1 %v4457_v6 }
 0x2eb   :  { %4143 = vmatpush3.bf16.msra.mxu0 %v5513_v30 }
 0x2ec   :  { %4135 = vmatpush3.bf16.msra.mxu1 %v5538_v55  ;;  %4144 = vmatprep.subr.bf16.mxu0 %v4457_v6 }
 0x2ed   :  { %4154 = vmatprep.subr.bf16.mxu1 %v4457_v6 }
 0x2ef   :  { %4137 = vmatmul.mubr.msk.bf16.vlgmr.msra.gmra.mrb[20].mxu1 %vm2410_vm8, %v2324_v1  ;;  %4145 = vmatpush3.bf16.msra.mxu0 %v5543_v34 }
 0x2f0   :  { %4155 = vmatpush3.bf16.msra.mxu1 %v5552_v22  ;;  %4146 = vmatprep.subr.bf16.mxu0 %v4457_v6 }
 0x2f1   :  { %4156 = vmatprep.subr.bf16.mxu1 %v4457_v6  ;;  %4164 = vmatprep.mubr.msk.bf16.mxu1 %vm4458_vm3, %v4457_v6 }
 0x2f3   :  { %4147 = vmatpush3.bf16.msra.mxu0 %v5559_v62 }
 0x2f4   :  { %4157 = vmatpush3.bf16.msra.mxu1 %v5572_v24  ;;  %4148 = vmatprep.subr.bf16.mxu0 %v4457_v6 }
 0x2f5   :  { %4158 = vmatprep.subr.bf16.mxu1 %v4457_v6 }
 0x2f7   :  { %4149 = vmatpush3.bf16.msra.mxu0 %v5580_v63 }
 0x2f8   :  { %4159 = vmatpush3.bf16.msra.mxu1 %v5586_v53  ;;  %4168 = vmatprep.subr.bf16.mxu0 %v4457_v6 }
 0x2f9   :  { %4160 = vmatprep.subr.bf16.mxu1 %v4457_v6 }
 0x2fa   :  { %4151 = vmatmul.mubr.msk.bf16.vlgmr.msra.gmra.mrb[24].mxu0 %vm2410_vm8, %v2343_v2 }
 0x2fb   :  { %4176 = vmatprep.mubr.msk.bf16.mxu0 %vm4458_vm3, %v4457_v6 }
 0x2fc   :  { %4161 = vmatpush3.bf16.msra.mxu1 %v5600_v5 }
 0x2fd   :  { %4162 = vmatprep.subr.bf16.mxu1 %v4457_v6 }
 0x300   :  { %4163 = vmatpush3.bf16.msra.mxu1 %v2740_v37 }
 0x301   :  { %4180 = vmatprep.subr.bf16.mxu1 %v4457_v6 }
 0x303   :  { %4165 = vmatmul.mubr.msk.bf16.vlgmr.msra.gmra.mrb[24].mxu1 %vm2410_vm8, %v2362_v58 }
 0x304   :  { %4188 = vmatprep.mubr.msk.bf16.mxu1 %vm4458_vm3, %v4457_v6 }
 0x37d   :  { %v2452_v4 = vpop.f32.mrb[8].mxu0 }
 0x37e   :  { %v4040_v27 = vpop.f32.mrb[9].mxu0 }
 0x37f   :  { %v2455_v59 = vpop.f32.mrb[10].mxu0 }
 0x380   :  { %v4041_v9 = vpop.f32.mrb[11].mxu0  ;;  %v4390_v59 = vld [vmem:[%s5905_s5 + $0x20] sm:$0xff]  }
 0x381   :  { %v4391_v9 = vld [vmem:[%s5905_s5] sm:$0xff]   ;;  %4169 = vmatpush3.bf16.msra.mxu0 %v4390_v59 }
 0x382   :  { %4181 = vmatpush3.bf16.msra.mxu1 %v4391_v9  ;;  %4170 = vmatprep.subr.bf16.mxu0 %v4457_v6 }
 0x383   :  { %4182 = vmatprep.subr.bf16.mxu1 %v4457_v6 }
 0x385   :  { %v2525_v39 = vpop.f32.mrb[8].mxu1 }
 0x386   :  { %v2526_v60 = vadd.f32 %v2525_v39, %v2452_v4  ;;  %v4054_v10 = vpop.f32.mrb[9].mxu1 }
 0x387   :  { %v2528_v33 = vpop.f32.mrb[10].mxu1 }
 0x388   :  { %v4055_v47 = vpop.f32.mrb[11].mxu1 }
 0x391   :  { %v2608_v15 = vpop.f32.mrb[12].mxu0 }
 0x392   :  { %v2614_v26 = vadd.f32 %v2608_v15, %v2526_v60  ;;  %v4068_v54 = vpop.f32.mrb[13].mxu0 }
 0x393   :  { %v2611_v57 = vpop.f32.mrb[14].mxu0 }
 0x394   :  { %v4069_v13 = vpop.f32.mrb[15].mxu0 }
 0x39a   :  { %v2692_v28 = vpop.f32.mrb[12].mxu1 }
 0x39b   :  { %v2698_v49 = vadd.f32 %v2692_v28, %v2614_v26  ;;  %v4082_v44 = vpop.f32.mrb[13].mxu1 }
 0x39c   :  { %v2695_v32 = vpop.f32.mrb[14].mxu1 }
 0x39d   :  { %v4083_v38 = vpop.f32.mrb[15].mxu1 }
 0x3a5   :  { %v2776_v36 = vpop.f32.mrb[16].mxu0 }
 0x3a6   :  { %v2782_v14 = vadd.f32 %v2776_v36, %v2698_v49  ;;  %v4096_v31 = vpop.f32.mrb[17].mxu0 }
 0x3a7   :  { %v2779_v42 = vpop.f32.mrb[18].mxu0 }
 0x3a8   :  { %v5687_v30 = vadd.f32 %v3883_v0, %v2782_v14  ;;  %v4097_v56 = vpop.f32.mrb[19].mxu0 }
 0x3aa   :  { %v3001_v40 = vsel %vm2414_vm4, %v5687_v30, 0.0  ;;  %v5693_v41 = vcombine.high %v5687_v30, %v5687_v30  ;;  %v3021_v48 = vmul.f32 %v5687_v30, %v5687_v30 }
 0x3ab   :  { %3002 = vadd.xlane.f32.xlu0 %v3001_v40 }
 0x3ac   :  { %v3004_v35 = vsel %vm2414_vm4, %v5693_v41, 0.0  ;;  %v3023_v20 = vsel %vm2414_vm4, %v3021_v48, 0.0  ;;  %v3022_v37 = vmul.f32 %v5693_v41, %v5693_v41 }
 0x3ae   :  { %v2825_v19 = vpop.f32.mrb[16].mxu1  ;;  %v3026_v4 = vsel %vm2414_vm4, %v3022_v37, 0.0 }
 0x3af   :  { %v4110_v3 = vpop.f32.mrb[17].mxu1  ;;  %3005 = vadd.xlane.f32.xlu0 %v3004_v35 }
 0x3b0   :  { %v2828_v8 = vpop.f32.mrb[18].mxu1 }
 0x3b1   :  { %v4111_v46 = vpop.f32.mrb[19].mxu1 }
 0x3b3   :  { %3024 = vadd.xlane.f32.xlu0 %v3023_v20 }
 0x3b9   :  { %v2865_v21 = vpop.f32.mrb[20].mxu0 }
 0x3ba   :  { %v2866_v55 = vadd.f32 %v2865_v21, %v2825_v19  ;;  %v4124_v34 = vpop.f32.mrb[21].mxu0 }
 0x3bb   :  { %v2868_v52 = vpop.f32.mrb[22].mxu0 }
 0x3bc   :  { %v4125_v18 = vpop.f32.mrb[23].mxu0 }
 0x3c2   :  { %v2905_v16 = vpop.f32.mrb[20].mxu1 }
 0x3c3   :  { %v2911_v7 = vadd.f32 %v2905_v16, %v2866_v55  ;;  %v4138_v22 = vpop.f32.mrb[21].mxu1 }
 0x3c4   :  { %v2908_v61 = vpop.f32.mrb[22].mxu1 }
 0x3c5   :  { %v4139_v62 = vpop.f32.mrb[23].mxu1 }
 0x3cd   :  { %v2946_v29 = vpop.f32.mrb[24].mxu0 }
 0x3ce   :  { %v2952_v51 = vadd.f32 %v2946_v29, %v2911_v7  ;;  %v4152_v25 = vpop.f32.mrb[25].mxu0 }
 0x3cf   :  { %v2949_v24 = vpop.f32.mrb[26].mxu0 }
 0x3d0   :  { %v4153_v63 = vpop.f32.mrb[27].mxu0 }
 0x3d6   :  { %v2990_v17 = vpop.f32.mrb[24].mxu1 }
 0x3d7   :  { %v2996_v53 = vadd.f32 %v2990_v17, %v2952_v51  ;;  %v4166_v50 = vpop.f32.mrb[25].mxu1 }
 0x3d8   :  { %v2993_v1 = vpop.f32.mrb[26].mxu1 }
 0x3d9   :  { %v5700_v45 = vadd.f32 %v3883_v0, %v2996_v53  ;;  %v4167_v5 = vpop.f32.mrb[27].mxu1 }
 0x3db   :  { %v3043_v43 = vsel %vm2414_vm4, %v5700_v45, 0.0  ;;  %v5706_v23 = vcombine.high %v5700_v45, %v5700_v45  ;;  %v3063_v12 = vmul.f32 %v5700_v45, %v5700_v45 }
 0x3dc   :  { %3044 = vadd.xlane.f32.xlu1 %v3043_v43 }
 0x3dd   :  { %v3046_v11 = vsel %vm2414_vm4, %v5706_v23, 0.0  ;;  %v3065_v2 = vsel %vm2414_vm4, %v3063_v12, 0.0  ;;  %v3064_v58 = vmul.f32 %v5706_v23, %v5706_v23 }
 0x3de   :  { %3047 = vadd.xlane.f32.xlu0 %v3046_v11 }
 0x3df   :  { %v3068_v27 = vsel %vm2414_vm4, %v3064_v58, 0.0 }
 0x3e0   :  { %3066 = vadd.xlane.f32.xlu1 %v3065_v2 }
 0x3e2   :  { %3027 = vadd.xlane.f32.xlu0 %v3026_v4 }
 0x3e4   :  { %3069 = vadd.xlane.f32.xlu1 %v3068_v27 }
 0x438   :  { %v3003_v39 = vpop.xlane.xlu0 %3002 }
 0x439   :  { %v3007_v10 = vsel %vm2414_vm4, %v3003_v39, 0.0 }
 0x43a   :  { %v3008_v47 = vrot.slane %v3007_v10, 4 }
 0x43c   :  { %v3006_v60 = vpop.xlane.xlu0 %3005  ;;  %v3009_v54 = vadd.f32 %v3008_v47, %v3007_v10 }
 0x43d   :  { %v3014_v15 = vsel %vm2414_vm4, %v3006_v60, 0.0 }
 0x43e   :  { %v3015_v57 = vrot.slane %v3014_v15, 4  ;;  %v3010_v28 = vrot.slane %v3009_v54, 2 }
 0x440   :  { %v3025_v33 = vpop.xlane.xlu0 %3024  ;;  %v3016_v49 = vadd.f32 %v3015_v57, %v3014_v15  ;;  %v3011_v14 = vadd.f32 %v3010_v28, %v3009_v54 }
 0x441   :  { %v3029_v26 = vsel %vm2414_vm4, %v3025_v33, 0.0 }
 0x442   :  { %v3030_v13 = vrot.slane %v3029_v26, 4  ;;  %v3017_v31 = vrot.slane %v3016_v49, 2  ;;  %v3012_v21 = vrot.slane %v3011_v14, 1 }
 0x444   :  { %v3031_v44 = vadd.f32 %v3030_v13, %v3029_v26  ;;  %v3018_v55 = vadd.f32 %v3017_v31, %v3016_v49  ;;  %v3013_v63 = vadd.f32 %v3012_v21, %v3011_v14 }
 0x446   :  { %v3032_v42 = vrot.slane %v3031_v44, 2  ;;  %v3019_v17 = vrot.slane %v3018_v55, 1 }
 0x448   :  { %v3033_v34 = vadd.f32 %v3032_v42, %v3031_v44  ;;  %v3020_v27 = vadd.f32 %v3019_v17, %v3018_v55 }
 0x44a   :  { %v3034_v53 = vrot.slane %v3033_v34, 1 }
 0x44c   :  { %v3035_v9 = vadd.f32 %v3034_v53, %v3033_v34 }
 0x469   :  { %v3045_v32 = vpop.xlane.xlu1 %3044 }
 0x46a   :  { %v3049_v38 = vsel %vm2414_vm4, %v3045_v32, 0.0 }
 0x46b   :  { %v3050_v0 = vrot.slane %v3049_v38, 4  ;;  %v3048_v36 = vpop.xlane.xlu0 %3047 }
 0x46c   :  { %v3056_v56 = vsel %vm2414_vm4, %v3048_v36, 0.0 }
 0x46d   :  { %v3051_v40 = vadd.f32 %v3050_v0, %v3049_v38  ;;  %v3057_v19 = vrot.slane %v3056_v56, 4  ;;  %v3067_v35 = vpop.xlane.xlu1 %3066 }
 0x46e   :  { %v3071_v48 = vsel %vm2414_vm4, %v3067_v35, 0.0 }
 0x46f   :  { %v3052_v3 = vrot.slane %v3051_v40, 2  ;;  %v3058_v8 = vadd.f32 %v3057_v19, %v3056_v56  ;;  %v3072_v46 = vrot.slane %v3071_v48, 4  ;;  %v3028_v20 = vpop.xlane.xlu0 %3027 }
 0x470   :  { %v3036_v52 = vsel %vm2414_vm4, %v3028_v20, 0.0 }
 0x471   :  { %v3053_v18 = vadd.f32 %v3052_v3, %v3051_v40  ;;  %v3059_v16 = vrot.slane %v3058_v8, 2  ;;  %v3073_v7 = vadd.f32 %v3072_v46, %v3071_v48  ;;  %v3037_v22 = vrot.slane %v3036_v52, 4  ;;  %v3070_v61 = vpop.xlane.xlu1 %3069  ;;  %v3889_v48 = vld [vmem:[%s5904_s4 + $0x1] ss:$0 sm:$0xff]  ;;  %v3890_v46 = vld [vmem:[%s5904_s4 + $0x2] ss:$0 sm:$0xff] }
 0x472   :  { %v3078_v62 = vsel %vm2414_vm4, %v3070_v61, 0.0 }
 0x473   :  { %v3054_v29 = vrot.slane %v3053_v18, 1  ;;  %v3060_v51 = vadd.f32 %v3059_v16, %v3058_v8  ;;  %v3074_v25 = vrot.slane %v3073_v7, 2  ;;  %v3038_v24 = vadd.f32 %v3037_v22, %v3036_v52 }
 0x474   :  { %v3079_v50 = vrot.slane %v3078_v62, 4 }
 0x475   :  { %v3055_v1 = vadd.f32 %v3054_v29, %v3053_v18  ;;  %v3061_v5 = vrot.slane %v3060_v51, 1  ;;  %v3075_v43 = vadd.f32 %v3074_v25, %v3073_v7  ;;  %v3039_v12 = vrot.slane %v3038_v24, 2 }
 0x476   :  { %v3080_v11 = vadd.f32 %v3079_v50, %v3078_v62  ;;  %v4396_v50 = vld [vmem:[%s5905_s5 + $0x38] sm:$0xff]  }
 0x477   :  { %v3085_v37 = vadd.f32 %v3055_v1, %v3013_v63  ;;  %v3062_v2 = vadd.f32 %v3061_v5, %v3060_v51  ;;  %v3076_v58 = vrot.slane %v3075_v43, 1  ;;  %v3040_v4 = vadd.f32 %v3039_v12, %v3038_v24  ;;  %v4394_v24 = vld [vmem:[%s5905_s5 + $0x30] sm:$0xff]   ;;  %v4397_v1 = vld [vmem:[%s5905_s5 + $0x18] sm:$0xff]  }
 0x478   :  { %v3081_v59 = vrot.slane %v3080_v11, 2  ;;  %v4395_v63 = vld [vmem:[%s5905_s5 + $0x10] sm:$0xff]  }
 0x479   :  { %v3090_v39 = vmul.f32 0.0009765625, %v3085_v37  ;;  %v3077_v60 = vadd.f32 %v3076_v58, %v3075_v43  ;;  %v3086_v10 = vadd.f32 %v3062_v2, %v3020_v27  ;;  %v3041_v33 = vrot.slane %v3040_v4, 1 }
 0x47a   :  { %v3082_v47 = vadd.f32 %v3081_v59, %v3080_v11 }
 0x47b   :  { %v3087_v15 = vadd.f32 %v3077_v60, %v3035_v9  ;;  %v3094_v54 = vmul.f32 %v3090_v39, %v3090_v39  ;;  %v3091_v13 = vmul.f32 0.0009765625, %v3086_v10  ;;  %v3042_v28 = vadd.f32 %v3041_v33, %v3040_v4  ;;  %v4398_v60 = vld [vmem:[%s5905_s5 + $0x40] sm:$0xff]  }
 0x47c   :  { %v3083_v26 = vrot.slane %v3082_v47, 1  ;;  %v3106_v40 = vsub.f32 %v5687_v30, %v3090_v39  ;;  %v3124_v19 = vsub.f32 %v5700_v45, %v3090_v39  ;;  %v4392_v30 = vld [vmem:[%s5905_s5 + $0x28] sm:$0xff]  }
 0x47d   :  { %v3092_v57 = vmul.f32 0.0009765625, %v3087_v15  ;;  %v3095_v36 = vmul.f32 %v3091_v13, %v3091_v13  ;;  %v3107_v55 = vsub.f32 %v5693_v41, %v3091_v13  ;;  %v3125_v34 = vsub.f32 %v5706_v23, %v3091_v13  ;;  %v4393_v45 = vld [vmem:[%s5905_s5 + $0x8] sm:$0xff]   ;;  %4171 = vmatpush3.bf16.msra.mxu0 %v4392_v30  ;;  %v4418_v30 = vld [vmem:[%s5907_s7 + $0x20] sm:$0xff]  }
 0x47e   :  { %v3084_v49 = vadd.f32 %v3083_v26, %v3082_v47  ;;  %4183 = vmatpush3.bf16.msra.mxu1 %v4393_v45  ;;  %4172 = vmatprep.subr.bf16.mxu0 %v4457_v6  ;;  %v4399_v47 = vld [vmem:[%s5905_s5 + $0x60] sm:$0xff]   ;;  %v4400_v26 = vld [vmem:[%s5905_s5 + $0x48] sm:$0xff]  }
 0x47f   :  { %v3096_v44 = vsub.f32 %v3092_v57, %v3094_v54  ;;  %4184 = vmatprep.subr.bf16.mxu1 %v4457_v6  ;;  %v4401_v54 = vld [vmem:[%s5905_s5 + $0x68] sm:$0xff]   ;;  %v4402_v57 = vld [vmem:[%s5905_s5 + $0x50] sm:$0xff]  }
 0x480   :  { %v3088_v32 = vadd.f32 %v3084_v49, %v3042_v28  ;;  %v4403_v28 = vld [vmem:[%s5905_s5 + $0x70] sm:$0xff]   ;;  %v4419_v45 = vld [vmem:[%s5907_s7 + $0x28] sm:$0xff]  }
 0x481   :  { %v3098_v38 = vmax.f32 %v3096_v44, 0.0  ;;  %4173 = vmatpush3.bf16.msra.mxu0 %v4394_v24 }
 0x482   :  { %v3093_v0 = vmul.f32 0.0009765625, %v3088_v32  ;;  %4185 = vmatpush3.bf16.msra.mxu1 %v4395_v63  ;;  %4174 = vmatprep.subr.bf16.mxu0 %v4457_v6  ;;  %v4404_v32 = vld [vmem:[%s5905_s5 + $0x58] sm:$0xff]  }
 0x483   :  { %v3100_v14 = vadd.f32 1e-05, %v3098_v38  ;;  %4186 = vmatprep.subr.bf16.mxu1 %v4457_v6 }
 0x484   :  { %v3097_v31 = vsub.f32 %v3093_v0, %v3095_v36  ;;  %v4405_v0 = vld [vmem:[%s5905_s5 + $0x78] sm:$0xff]  }
 0x485   :  { %4426 = vrsqrt.f32 %v3100_v14  ;;  %4175 = vmatpush3.bf16.msra.mxu0 %v4396_v50 }
 0x486   :  { %v3099_v42 = vmax.f32 %v3097_v31, 0.0  ;;  %4187 = vmatpush3.bf16.msra.mxu1 %v4397_v1  ;;  %4192 = vmatprep.subr.bf16.mxu0 %v4457_v6  ;;  %v4406_v31 = vld [vmem:[%s5906_s6] sm:$0xff]  }
 0x487   :  { %4204 = vmatprep.subr.bf16.mxu1 %v4457_v6 }
 0x488   :  { %v3101_v56 = vadd.f32 1e-05, %v3099_v42 }
 0x48a   :  { %4428 = vrsqrt.f32 %v3101_v56 }
 0x48f   :  { %v4427_v35 = vpop.eup %4426 }
 0x490   :  { %v3108_v3 = vmul.f32 %v4427_v35, %v3106_v40  ;;  %v3126_v8 = vmul.f32 %v4427_v35, %v3124_v19  ;;  %v4407_v40 = vld [vmem:[%s5906_s6 + $0x8] sm:$0xff]   ;;  %v4408_v19 = vld [vmem:[%s5906_s6 + $0x10] sm:$0xff]   ;;  %v4409_v35 = vld [vmem:[%s5906_s6 + $0x18] sm:$0xff]  }
 0x492   :  { %v3114_v20 = vmul.f32 %v3889_v48, %v3108_v3  ;;  %v3128_v21 = vmul.f32 %v3889_v48, %v3126_v8  ;;  %v4411_v3 = vld [vmem:[%s5906_s6 + $0x28] sm:$0xff]   ;;  %v4412_v8 = vld [vmem:[%s5906_s6 + $0x30] sm:$0xff]  }
 0x494   :  { %v4429_v52 = vpop.eup %4428  ;;  %v3120_v18 = vadd.f32 %v3890_v46, %v3114_v20  ;;  %v3130_v16 = vadd.f32 %v3890_v46, %v3128_v21  ;;  %v4414_v20 = vld [vmem:[%s5907_s7] sm:$0xff]   ;;  %v4415_v21 = vld [vmem:[%s5907_s7 + $0x8] sm:$0xff]  }
 0x495   :  { %v3109_v7 = vmul.f32 %v4429_v52, %v3107_v55  ;;  %v3127_v22 = vmul.f32 %v4429_v52, %v3125_v34  ;;  %v4416_v55 = vld [vmem:[%s5907_s7 + $0x10] sm:$0xff]   ;;  %v4417_v34 = vld [vmem:[%s5907_s7 + $0x18] sm:$0xff]  }
 0x496   :  { %v3122_v61 = vmax.f32 %v3120_v18, 0.0  ;;  %v3132_v62 = vmax.f32 %v3130_v16, 0.0 }
 0x497   :  { %v3115_v41 = vmul.f32 %v3889_v48, %v3109_v7  ;;  %v3129_v23 = vmul.f32 %v3889_v48, %v3127_v22  ;;  %v4410_v48 = vld [vmem:[%s5906_s6 + $0x20] sm:$0xff]  }
 0x498   :  { %v3134_v29 = vmax.f32 %v3122_v61, %v3132_v62 }
 0x499   :  { %v3121_v51 = vadd.f32 %v3890_v46, %v3115_v41  ;;  %v3131_v25 = vadd.f32 %v3890_v46, %v3129_v23  ;;  %v4413_v46 = vld [vmem:[%s5906_s6 + $0x38] sm:$0xff]  }
 0x49a   :  { %3138 = vrot.lane.b32.xlu0 %v3134_v29, %s4459_s23 }
 0x49b   :  { %v3123_v17 = vmax.f32 %v3121_v51, 0.0  ;;  %v3133_v53 = vmax.f32 %v3131_v25, 0.0 }
 0x49d   :  { %v3135_v5 = vmax.f32 %v3123_v17, %v3133_v53  ;;  %v3911_v17 = vld [vmem:[%s5908_s8] ss:$0 sm:$0xff] }
 0x49f   :  { %3140 = vrot.lane.b32.xlu1 %v3135_v5, %s4459_s23 }
 0x50c   :  { %v3139_v43 = vpop.permute.xlu0 %3138 }
 0x50d   :  { %v3144_v12 = vmax.f32 %v3134_v29, %v3139_v43 }
 0x50f   :  { %v3146_v11 = vpack.c.bf16 %v3144_v12, %v3144_v12 }
 0x511   :  { %v3141_v37 = vpop.permute.xlu1 %3140  ;;  %v3166_v2 = vunpack.c.l.b16 %v3146_v11 }
 0x512   :  { %v3145_v58 = vmax.f32 %v3135_v5, %v3141_v37 }
 0x513   :  { %v3168_v27 = vrot.slane %v3166_v2, 1  ;;  %v3318_v49 = vrot.slane %v3166_v2, 2  ;;  %v3398_v38 = vrot.slane %v3166_v2, 3 }
 0x514   :  { %v3147_v4 = vpack.c.bf16 %v3145_v58, %v3145_v58  ;;  %v4421_v58 = vld [vmem:[%s5907_s7 + $0x38] sm:$0xff]  }
 0x516   :  { %v3167_v59 = vunpack.c.l.b16 %v3147_v4  ;;  %v3912_v4 = vld [vmem:[%s5908_s8 + $0x1] ss:$0 sm:$0xff] }
 0x518   :  { %v3170_v9 = vsel %vm3169_vm14, %v3167_v59, %v3168_v27  ;;  %v3240_v39 = vrot.slane %v3167_v59, 7  ;;  %v3319_v13 = vrot.slane %v3167_v59, 1  ;;  %v3399_v44 = vrot.slane %v3167_v59, 2 }
 0x519   :  { %v3171_v10 = vpack.c.b16 %v3170_v9, %v3170_v9 }
 0x51a   :  { %v3241_v33 = vsel %vm3169_vm14, %v3240_v39, %v3166_v2  ;;  %v3320_v36 = vsel %vm3169_vm14, %v3319_v13, %v3318_v49  ;;  %v3400_v14 = vsel %vm3169_vm14, %v3399_v44, %v3398_v38  ;;  %v4420_v2 = vld [vmem:[%s5907_s7 + $0x30] sm:$0xff]   ;;  %s4460_s7 = smov [#allocation2]  }
 0x51b   :  { %4177 = vmatmul.mubr.msk.bf16.vlgmr.msra.gmra.mrb[28].mxu0 %vm3196_vm15, %v3171_v10  ;;  %v3242_v15 = vpack.c.b16 %v3241_v33, %v3241_v33  ;;  %v3321_v42 = vpack.c.b16 %v3320_v36, %v3320_v36  ;;  %v3401_v56 = vpack.c.b16 %v3400_v14, %v3400_v14  ;;  %s3705_s26 = sshll.u32 %s4460_s7, 4  ;;  %s3706_s26 = int_to_ptr.vmem [resolvable:$true] %s3705_s26 }
 0x51c   :  { %4193 = vmatpush3.bf16.msra.mxu0 %v4398_v60  ;;  %4200 = vmatprep.mubr.msk.bf16.mxu0 %vm4458_vm3, %v4457_v6  ;;  %s4430_s3 = scalar_lea.vmem %s3706_s26, 32  ;;  %p4435_p1 = scmp.lt.s32.totalorder %s3706_s26, %s3706_s26 }
 0x51d   :  { %4189 = vmatmul.mubr.msk.bf16.vlgmr.msra.gmra.mrb[28].mxu1 %vm3196_vm15, %v3242_v15  ;;  %4194 = vmatprep.subr.bf16.mxu0 %v4457_v6  ;;  %p4431_p0 = scmp.ne.s32.totalorder %s3706_s26, %s4430_s3  ;;  %p4436_p2 = scmp.lt.s32.totalorder %s4430_s3, %s4430_s3 }
 0x51e   :  { %4205 = vmatpush3.bf16.msra.mxu1 %v4399_v47  ;;  %4212 = vmatprep.mubr.msk.bf16.mxu1 %vm4458_vm3, %v4457_v6  ;;  %v3921_v47 = vld [vmem:[%s5908_s8 + $0x2] ss:$0 sm:$0xff] }
 0x51f   :  { %4206 = vmatprep.subr.bf16.mxu1 %v4457_v6  ;;  %p4437_p3 = por %p4436_p2, %p4435_p1 }
 0x520   :  { %4195 = vmatpush3.bf16.msra.mxu0 %v4400_v26 }
 0x521   :  { %4196 = vmatprep.subr.bf16.mxu0 %v4457_v6  ;;  %p4438_p4 = pnand %p4437_p3, %p4431_p0 }
 0x522   :  { %4207 = vmatpush3.bf16.msra.mxu1 %v4401_v54 }
 0x523   :  { %4208 = vmatprep.subr.bf16.mxu1 %v4457_v6 }
 0x524   :  { %4197 = vmatpush3.bf16.msra.mxu0 %v4402_v57 }
 0x525   :  { %4198 = vmatprep.subr.bf16.mxu0 %v4457_v6 }
 0x526   :  { %4209 = vmatpush3.bf16.msra.mxu1 %v4403_v28 }
 0x527   :  { %4210 = vmatprep.subr.bf16.mxu1 %v4457_v6 }
 0x528   :  { %4199 = vmatpush3.bf16.msra.mxu0 %v4404_v32 }
 0x529   :  { %4216 = vmatprep.subr.bf16.mxu0 %v4457_v6 }
 0x52a   :  { %4211 = vmatpush3.bf16.msra.mxu1 %v4405_v0 }
 0x52b   :  { %4201 = vmatmul.mubr.msk.bf16.vlgmr.msra.gmra.mrb[32].mxu0 %vm3196_vm15, %v3321_v42  ;;  %4236 = vmatprep.subr.bf16.mxu1 %v4457_v6 }
 0x52c   :  { %4217 = vmatpush3.bf16.msra.mxu0 %v4406_v31  ;;  %4232 = vmatprep.mubr.msk.bf16.mxu0 %vm4458_vm3, %v4457_v6 }
 0x52d   :  { %4213 = vmatmul.mubr.msk.bf16.vlgmr.msra.gmra.mrb[32].mxu1 %vm3196_vm15, %v3401_v56  ;;  %4218 = vmatprep.subr.bf16.mxu0 %v4457_v6 }
 0x52e   :  { %4252 = vmatprep.mubr.msk.bf16.mxu1 %vm4458_vm3, %v4457_v6  ;;  %4237 = vmatpush3.bf16.msra.mxu1 %v4414_v20 }
 0x52f   :  { %4238 = vmatprep.subr.bf16.mxu1 %v4457_v6 }
 0x530   :  { %4219 = vmatpush3.bf16.msra.mxu0 %v4407_v40 }
 0x531   :  { %4220 = vmatprep.subr.bf16.mxu0 %v4457_v6 }
 0x532   :  { %4239 = vmatpush3.bf16.msra.mxu1 %v4415_v21 }
 0x533   :  { %4240 = vmatprep.subr.bf16.mxu1 %v4457_v6 }
 0x534   :  { %4221 = vmatpush3.bf16.msra.mxu0 %v4408_v19 }
 0x535   :  { %4222 = vmatprep.subr.bf16.mxu0 %v4457_v6 }
 0x536   :  { %4241 = vmatpush3.bf16.msra.mxu1 %v4416_v55 }
 0x537   :  { %4242 = vmatprep.subr.bf16.mxu1 %v4457_v6 }
 0x538   :  { %4223 = vmatpush3.bf16.msra.mxu0 %v4409_v35 }
 0x539   :  { %4224 = vmatprep.subr.bf16.mxu0 %v4457_v6 }
 0x53a   :  { %4243 = vmatpush3.bf16.msra.mxu1 %v4417_v34 }
 0x53b   :  { %4244 = vmatprep.subr.bf16.mxu1 %v4457_v6 }
 0x53c   :  { %4225 = vmatpush3.bf16.msra.mxu0 %v4410_v48 }
 0x53d   :  { %4226 = vmatprep.subr.bf16.mxu0 %v4457_v6 }
 0x53e   :  { %4245 = vmatpush3.bf16.msra.mxu1 %v4418_v30 }
 0x53f   :  { %4246 = vmatprep.subr.bf16.mxu1 %v4457_v6 }
 0x540   :  { %4227 = vmatpush3.bf16.msra.mxu0 %v4411_v3 }
 0x541   :  { %4228 = vmatprep.subr.bf16.mxu0 %v4457_v6 }
 0x542   :  { %4247 = vmatpush3.bf16.msra.mxu1 %v4419_v45 }
 0x543   :  { %4248 = vmatprep.subr.bf16.mxu1 %v4457_v6 }
 0x544   :  { %4229 = vmatpush3.bf16.msra.mxu0 %v4412_v8 }
 0x545   :  { %4230 = vmatprep.subr.bf16.mxu0 %v4457_v6 }
 0x546   :  { %4249 = vmatpush3.bf16.msra.mxu1 %v4420_v2 }
 0x547   :  { %4250 = vmatprep.subr.bf16.mxu1 %v4457_v6 }
 0x548   :  { %4231 = vmatpush3.bf16.msra.mxu0 %v4413_v46 }
 0x54a   :  { %4251 = vmatpush3.bf16.msra.mxu1 %v4421_v58 }
 0x5ee   :  { %v3234_v52 = vpop.f32.mrb[28].mxu0 }
 0x5ef   :  { %v4178_v18 = vpop.f32.mrb[29].mxu0 }
 0x5f0   :  { %v3237_v16 = vpop.f32.mrb[30].mxu0  ;;  %v3304_v7 = vpop.f32.mrb[28].mxu1 }
 0x5f1   :  { %v3305_v22 = vadd.f32 %v3304_v7, %v3234_v52  ;;  %v4179_v61 = vpop.f32.mrb[31].mxu0  ;;  %v4190_v62 = vpop.f32.mrb[29].mxu1 }
 0x5f2   :  { %v3307_v41 = vpop.f32.mrb[30].mxu1 }
 0x5f3   :  { %v4191_v23 = vpop.f32.mrb[31].mxu1 }
 0x5fe   :  { %v3383_v29 = vpop.f32.mrb[32].mxu0 }
 0x5ff   :  { %v3389_v51 = vadd.f32 %v3383_v29, %v3305_v22  ;;  %v4202_v25 = vpop.f32.mrb[33].mxu0 }
 0x600   :  { %v3386_v24 = vpop.f32.mrb[34].mxu0  ;;  %v3463_v63 = vpop.f32.mrb[32].mxu1 }
 0x601   :  { %v3469_v53 = vadd.f32 %v3463_v63, %v3389_v51  ;;  %v4203_v50 = vpop.f32.mrb[35].mxu0  ;;  %v4214_v1 = vpop.f32.mrb[33].mxu1 }
 0x602   :  { %v3466_v5 = vpop.f32.mrb[34].mxu1 }
 0x603   :  { %v3475_v43 = vadd.f32 %v3911_v17, %v3469_v53  ;;  %v4215_v12 = vpop.f32.mrb[35].mxu1 }
 0x605   :  { %v3476_v11 = vmax.f32 %v3475_v43, 0.0 }
 0x607   :  { %v3477_v37 = vpack.c.bf16 %v3476_v11, %v3476_v11 }
 0x609   :  { %4233 = vmatmul.mubr.bf16.vlgmr.msra.gmra.mrb[36].mxu0 %v3477_v37 }
 0x6dc   :  { %v3581_v27 = vpop.f32.mrb[36].mxu0 }
 0x6dd   :  { %v3582_v59 = vadd.f32 %v3912_v4, %v3581_v27  ;;  %v4234_v9 = vpop.f32.mrb[37].mxu0 }
 0x6de   :  { %v3584_v39 = vpop.f32.mrb[38].mxu0 }
 0x6df   :  { %v3587_v60 = vmax.f32 %v3582_v59, 0.0  ;;  %v4235_v10 = vpop.f32.mrb[39].mxu0 }
 0x6e1   :  { %v3588_v33 = vpack.c.bf16 %v3587_v60, %v3587_v60 }
 0x6e3   :  { %4253 = vmatmul.mubr.bf16.vlgmr.msra.gmra.mrb[36].mxu1 %v3588_v33 }
 0x7b6   :  { %v3692_v6 = vpop.f32.mrb[36].mxu1 }
 0x7b7   :  { %v3693_v15 = vadd.f32 %v3921_v47, %v3692_v6  ;;  %v4254_v26 = vpop.f32.mrb[37].mxu1 }
 0x7b8   :  { %v3695_v54 = vpop.f32.mrb[38].mxu1 }
 0x7b9   :  { %3698 = vst [vmem:[#allocation2] sm:$0x3] %v3693_v15  ;;  %v4255_v57 = vpop.f32.mrb[39].mxu1 }
 0x7ba   :  { %4441 = shalt.err (!%p4438_p4)
}
 0x7bb   :  { %s4442_s8 = scalar_lea.hbm %s5909_s9, 32 }
 0x7bc   :  { %p4443_p5 = scmp.ne.s32.totalorder %s5909_s9, %s4442_s8  ;;  %p4446_p6 = scmp.lt.u32.totalorder %s4442_s8, %s5909_s9 }
 0x7be   :  { %p4448_p7 = pnand %p4446_p6, %p4443_p5 }
 0x7c0   :  { %4451 = shalt.err (!%p4448_p7)
}
 0x7c1   :  { %3708 = dma.vmem_to_hbm [thread:$0]  %s3706_s26, 32, %s5909_s9, [#allocation3]  }
 0x7c2   :  { %4452 = dma.done.wait [#allocation3], 32  }
 0x7c3   :  { %4453 = vsyncadd [#allocation3], 4294967264 }
 0x7c4   :  { %3712 = vsyncpa [#allocation3], 1 }

</bundles_post_ra>
